<compile_context>
chip_gen: v6e
topology: v6e:2x2x1
jax: 0.10.0
libtpu: 0.0.40
codegen_flags: <defaults>
</compile_context>

<pallas_src>
import functools
import math

import jax
import jax.numpy as jnp
from jax import lax
from jax.experimental import pallas as pl
from jax.experimental.pallas import tpu as pltpu

_VMEM = pl.BlockSpec(memory_space=pltpu.MemorySpace.VMEM)


# ---------------------------------------------------------------------------
# Pallas kernels
# ---------------------------------------------------------------------------
def _matmul_bias_act_kernel(w_ref, p_ref, b_ref, o_ref, *, act):
    """o[o, m] = act( sum_k w[o, k] * p[k, m] + b[o, 0] ).

    Lane (last) axis is M = B*Ho*Wo (large) -> lane-dense output stores.
    No transposes / reshapes inside the kernel; weights arrive pre-flattened.
    """
    y = jnp.dot(w_ref[...], p_ref[...], preferred_element_type=jnp.float32)
    y = y + b_ref[...]                      # (O, 1) broadcast over lanes
    if act == "relu":
        y = jnp.maximum(y, 0.0)
    elif act == "sigmoid":
        y = 1.0 / (1.0 + jnp.exp(-y))       # exp on EUP
    o_ref[...] = y


def _matmul_bias_act(w, p, b, act):
    O, K = w.shape
    Kp, M = p.shape
    assert K == Kp
    return pl.pallas_call(
        functools.partial(_matmul_bias_act_kernel, act=act),
        out_shape=jax.ShapeDtypeStruct((O, M), jnp.float32),
        in_specs=[_VMEM, _VMEM, _VMEM],
        out_specs=_VMEM,
    )(w, p, b)


def _max_over_windows_kernel(x_ref, o_ref):
    # x: (k*k, N) stacked window views -> max over the window axis.
    o_ref[...] = jnp.max(x_ref[...], axis=0, keepdims=True)


# ---------------------------------------------------------------------------
# Layer wrappers (layout plumbing in XLA, compute in Pallas)
# ---------------------------------------------------------------------------
def _strided_windows(x, k, stride, Ho, Wo):
    """k*k strided views of shape (B, C, Ho, Wo), ordered (ky, kx)."""
    B, C, _, _ = x.shape
    wins = []
    for ky in range(k):
        for kx in range(k):
            wins.append(lax.slice(
                x,
                (0, 0, ky, kx),
                (B, C, ky + stride * (Ho - 1) + 1, kx + stride * (Wo - 1) + 1),
                (1, 1, stride, stride)))
    return wins


def conv2d(x, w, b, stride, padding, act):
    """nn.Conv2d(Cin, O, 3, stride, padding) (+ activation)."""
    B, C, H, W = x.shape
    O, _, k, _ = w.shape
    Ho = (H + 2 * padding - k) // stride + 1
    Wo = (W + 2 * padding - k) // stride + 1
    xp = jnp.pad(x, ((0, 0), (0, 0), (padding, padding), (padding, padding)))
    # im2col: rows ordered (c, ky, kx), cols ordered (b, i, j)
    cols = _strided_windows(xp, k, stride, Ho, Wo)
    p = jnp.stack(cols, axis=0).reshape(k, k, B, C, Ho, Wo)
    p = p.transpose(3, 0, 1, 2, 4, 5).reshape(C * k * k, B * Ho * Wo)
    wm = w.reshape(O, C * k * k)                      # pre-flattened weights
    y = _matmul_bias_act(wm, p, b.reshape(O, 1), act)  # (O, B*Ho*Wo)
    return y.reshape(O, B, Ho, Wo).transpose(1, 0, 2, 3)  # -> NCHW


def conv_transpose2d(x, w, b, stride, padding, act):
    """nn.ConvTranspose2d(Cin, Cout, 3, stride, padding) (+ activation).

    Equivalent stride-1 conv over the zero-dilated input with flipped,
    channel-swapped weights and padding (k-1-p).
    """
    B, C, H, W = x.shape
    Cin, Cout, k, _ = w.shape
    if stride > 1:
        xd = jnp.zeros((B, C, (H - 1) * stride + 1, (W - 1) * stride + 1),
                       x.dtype)
        xd = xd.at[:, :, ::stride, ::stride].set(x)
    else:
        xd = x
    w_eq = jnp.flip(w, axis=(2, 3)).transpose(1, 0, 2, 3)  # (Cout, Cin, k, k)
    return conv2d(xd, w_eq, b, 1, k - 1 - padding, act)


def maxpool2d(x, k, stride):
    """nn.MaxPool2d(k, stride) (floor mode, no padding)."""
    B, C, H, W = x.shape
    Ho = (H - k) // stride + 1
    Wo = (W - k) // stride + 1
    wins = _strided_windows(x, k, stride, Ho, Wo)
    N = B * C * Ho * Wo
    stacked = jnp.stack([wv.reshape(N) for wv in wins], axis=0)  # (k*k, N)
    out = pl.pallas_call(
        _max_over_windows_kernel,
        out_shape=jax.ShapeDtypeStruct((1, N), jnp.float32),
        in_specs=[_VMEM],
        out_specs=_VMEM,
    )(stacked)
    return out.reshape(B, C, Ho, Wo)


# ---------------------------------------------------------------------------
# Full forward (matches autoencoder_2.forward)
# ---------------------------------------------------------------------------
@jax.jit
def autoencoder_forward(x, p):
    # encoder
    x = conv2d(x, p['e1_w'], p['e1_b'], stride=3, padding=1, act='relu')
    x = maxpool2d(x, 2, 2)
    x = conv2d(x, p['e2_w'], p['e2_b'], stride=2, padding=1, act='relu')
    x = maxpool2d(x, 2, 1)
    x = conv2d(x, p['e3_w'], p['e3_b'], stride=1, padding=1, act='relu')
    x = maxpool2d(x, 2, 1)
    x = conv2d(x, p['e4_w'], p['e4_b'], stride=2, padding=1, act='relu')
    # decoder
    x = conv_transpose2d(x, p['d1_w'], p['d1_b'], stride=1, padding=1, act='relu')
    x = conv_transpose2d(x, p['d2_w'], p['d2_b'], stride=1, padding=0, act='relu')
    x = conv_transpose2d(x, p['d3_w'], p['d3_b'], stride=2, padding=0, act='relu')
    x = conv_transpose2d(x, p['d4_w'], p['d4_b'], stride=3, padding=0, act='relu')
    x = conv_transpose2d(x, p['d5_w'], p['d5_b'], stride=3, padding=0, act='sigmoid')
    return x


# ---------------------------------------------------------------------------
# Pure-XLA reference matching the PyTorch forward
# ---------------------------------------------------------------------------
@jax.jit
def ref_forward(x, p):
    dn = ('NCHW', 'OIHW', 'NCHW')
    hi = lax.Precision.HIGHEST

    def conv(x, w, b, s, pad):
        y = lax.conv_general_dilated(x, w, (s, s), [(pad, pad)] * 2,
                                     dimension_numbers=dn, precision=hi)
        return y + b[None, :, None, None]

    def deconv(x, w, b, s, pad):
        k = w.shape[2]
        w_t = jnp.flip(w, axis=(2, 3)).transpose(1, 0, 2, 3)
        q = k - 1 - pad
        y = lax.conv_general_dilated(x, w_t, (1, 1), [(q, q)] * 2,
                                     lhs_dilation=(s, s),
                                     dimension_numbers=dn, precision=hi)
        return y + b[None, :, None, None]

    def pool(x, k, s):
        return lax.reduce_window(x, -jnp.inf, lax.max,
                                 (1, 1, k, k), (1, 1, s, s), 'VALID')

    relu = lambda v: jnp.maximum(v, 0.0)
    x = relu(conv(x, p['e1_w'], p['e1_b'], 3, 1)); x = pool(x, 2, 2)
    x = relu(conv(x, p['e2_w'], p['e2_b'], 2, 1)); x = pool(x, 2, 1)
    x = relu(conv(x, p['e3_w'], p['e3_b'], 1, 1)); x = pool(x, 2, 1)
    x = relu(conv(x, p['e4_w'], p['e4_b'], 2, 1))
    x = relu(deconv(x, p['d1_w'], p['d1_b'], 1, 1))
    x = relu(deconv(x, p['d2_w'], p['d2_b'], 1, 0))
    x = relu(deconv(x, p['d3_w'], p['d3_b'], 2, 0))
    x = relu(deconv(x, p['d4_w'], p['d4_b'], 3, 0))
    x = jax.nn.sigmoid(deconv(x, p['d5_w'], p['d5_b'], 3, 0))
    return x


# ---------------------------------------------------------------------------
# Parameter construction
# ---------------------------------------------------------------------------
def make_params(key):
    def conv_init(k, cout, cin, ksz):
        kw, kb = jax.random.split(k)
        bound = 1.0 / math.sqrt(cin * ksz * ksz)
        w = jax.random.uniform(kw, (cout, cin, ksz, ksz), jnp.float32, -bound, bound)
        b = jax.random.uniform(kb, (cout,), jnp.float32, -bound, bound)
        return w, b

    def deconv_init(k, cin, cout, ksz):
        kw, kb = jax.random.split(k)
        bound = 1.0 / math.sqrt(cout * ksz * ksz)
        w = jax.random.uniform(kw, (cin, cout, ksz, ksz), jnp.float32, -bound, bound)
        b = jax.random.uniform(kb, (cout,), jnp.float32, -bound, bound)
        return w, b

    keys = jax.random.split(key, 9)
    p = {}
    p['e1_w'], p['e1_b'] = conv_init(keys[0], 16, 1, 3)
    p['e2_w'], p['e2_b'] = conv_init(keys[1], 8, 16, 3)
    p['e3_w'], p['e3_b'] = conv_init(keys[2], 2, 8, 3)
    p['e4_w'], p['e4_b'] = conv_init(keys[3], 1, 2, 3)
    p['d1_w'], p['d1_b'] = deconv_init(keys[4], 1, 2, 3)
    p['d2_w'], p['d2_b'] = deconv_init(keys[5], 2, 8, 3)
    p['d3_w'], p['d3_b'] = deconv_init(keys[6], 8, 16, 3)
    p['d4_w'], p['d4_b'] = deconv_init(keys[7], 16, 8, 3)
    p['d5_w'], p['d5_b'] = deconv_init(keys[8], 8, 1, 3)
    return p


if __name__ == "__main__":
    key = jax.random.PRNGKey(0)
    kx, kp = jax.random.split(key)
    x = jax.random.uniform(kx, (2, 1, 28, 28), jnp.float32)   # MNIST-like input
    params = make_params(kp)

    out = jax.block_until_ready(autoencoder_forward(x, params))
    ref = jax.block_until_ready(ref_forward(x, params))

    assert out.shape == ref.shape == (2, 1, 63, 63), out.shape
    err = float(jnp.max(jnp.abs(out - ref)))
    assert err < 1e-3, "max abs diff = %g" % err
    print("KERNEL_OK")
</pallas_src>

<mosaic_0001>
module attributes {stable_mosaic.version = 11 : i64} {
  func.func @_matmul_bias_act_kernel(%arg0: memref<16x9xf32, #tpu.memory_space<vmem>>, %arg1: memref<9x200xf32, #tpu.memory_space<vmem>>, %arg2: memref<16x1xf32, #tpu.memory_space<vmem>>, %arg3: memref<16x200xf32, #tpu.memory_space<vmem>>) attributes {dimension_semantics = [], scalar_prefetch = 0 : i64, scratch_operands = 0 : i64, tpu.core_type = #tpu.core_type<tc>} {
    %c0 = arith.constant 0 : index
    %c0_0 = arith.constant 0 : index
    %0 = vector.load %arg0[%c0, %c0_0] : memref<16x9xf32, #tpu.memory_space<vmem>>, vector<16x9xf32>
    %c0_1 = arith.constant 0 : index
    %c0_2 = arith.constant 0 : index
    %1 = vector.load %arg1[%c0_1, %c0_2] : memref<9x200xf32, #tpu.memory_space<vmem>>, vector<9x200xf32>
    %cst = arith.constant dense<0.000000e+00> : vector<16x200xf32>
    %2 = tpu.matmul %0, %1, %cst {dimension_numbers = #tpu.dot_dimension_numbers<[1], [0], [0], [1], [0, 0, 1, 1], [], []>} : vector<16x9xf32>, vector<9x200xf32>, vector<16x200xf32> -> vector<16x200xf32>
    %c0_3 = arith.constant 0 : index
    %c0_4 = arith.constant 0 : index
    %3 = vector.load %arg2[%c0_3, %c0_4] : memref<16x1xf32, #tpu.memory_space<vmem>>, vector<16x1xf32>
    %4 = vector.broadcast %3 : vector<16x1xf32> to vector<16x200xf32>
    %5 = arith.addf %2, %4 : vector<16x200xf32>
    %cst_5 = arith.constant 0.000000e+00 : f32
    %6 = vector.broadcast %cst_5 : f32 to vector<16x200xf32>
    %7 = arith.maximumf %5, %6 : vector<16x200xf32>
    %c0_6 = arith.constant 0 : index
    %c0_7 = arith.constant 0 : index
    %8 = vector.load %arg3[%c0_6, %c0_7] : memref<16x200xf32, #tpu.memory_space<vmem>>, vector<16x200xf32>
    tpu.vector_store %arg3[%c0_6, %c0_7], %7 {strides = array<i32>} : memref<16x200xf32, #tpu.memory_space<vmem>>, vector<16x200xf32>,
    return
  }
}

module attributes {stable_mosaic.version = 11 : i64} {
  func.func @_max_over_windows_kernel(%arg0: memref<4x800xf32, #tpu.memory_space<vmem>>, %arg1: memref<1x800xf32, #tpu.memory_space<vmem>>) attributes {dimension_semantics = [], scalar_prefetch = 0 : i64, scratch_operands = 0 : i64, tpu.core_type = #tpu.core_type<tc>} {
    %c0 = arith.constant 0 : index
    %c0_0 = arith.constant 0 : index
    %0 = vector.load %arg0[%c0, %c0_0] : memref<4x800xf32, #tpu.memory_space<vmem>>, vector<4x800xf32>
    %cst = arith.constant dense<0xFF800000> : vector<800xf32>
    %1 = vector.multi_reduction <maximumf>, %0, %cst [0] : vector<4x800xf32> to vector<800xf32>
    %2 = vector.shape_cast %1 : vector<800xf32> to vector<1x800xf32>
    %c0_1 = arith.constant 0 : index
    %c0_2 = arith.constant 0 : index
    %3 = vector.load %arg1[%c0_1, %c0_2] : memref<1x800xf32, #tpu.memory_space<vmem>>, vector<1x800xf32>
    tpu.vector_store %arg1[%c0_1, %c0_2], %2 {strides = array<i32>} : memref<1x800xf32, #tpu.memory_space<vmem>>, vector<1x800xf32>,
    return
  }
}

module attributes {stable_mosaic.version = 11 : i64} {
  func.func @_matmul_bias_act_kernel(%arg0: memref<8x144xf32, #tpu.memory_space<vmem>>, %arg1: memref<144x18xf32, #tpu.memory_space<vmem>>, %arg2: memref<8x1xf32, #tpu.memory_space<vmem>>, %arg3: memref<8x18xf32, #tpu.memory_space<vmem>>) attributes {dimension_semantics = [], scalar_prefetch = 0 : i64, scratch_operands = 0 : i64, tpu.core_type = #tpu.core_type<tc>} {
    %c0 = arith.constant 0 : index
    %c0_0 = arith.constant 0 : index
    %0 = vector.load %arg0[%c0, %c0_0] : memref<8x144xf32, #tpu.memory_space<vmem>>, vector<8x144xf32>
    %c0_1 = arith.constant 0 : index
    %c0_2 = arith.constant 0 : index
    %1 = vector.load %arg1[%c0_1, %c0_2] : memref<144x18xf32, #tpu.memory_space<vmem>>, vector<144x18xf32>
    %cst = arith.constant dense<0.000000e+00> : vector<8x18xf32>
    %2 = tpu.matmul %0, %1, %cst {dimension_numbers = #tpu.dot_dimension_numbers<[1], [0], [0], [1], [0, 0, 1, 1], [], []>} : vector<8x144xf32>, vector<144x18xf32>, vector<8x18xf32> -> vector<8x18xf32>
    %c0_3 = arith.constant 0 : index
    %c0_4 = arith.constant 0 : index
    %3 = vector.load %arg2[%c0_3, %c0_4] : memref<8x1xf32, #tpu.memory_space<vmem>>, vector<8x1xf32>
    %4 = vector.broadcast %3 : vector<8x1xf32> to vector<8x18xf32>
    %5 = arith.addf %2, %4 : vector<8x18xf32>
    %cst_5 = arith.constant 0.000000e+00 : f32
    %6 = vector.broadcast %cst_5 : f32 to vector<8x18xf32>
    %7 = arith.maximumf %5, %6 : vector<8x18xf32>
    %c0_6 = arith.constant 0 : index
    %c0_7 = arith.constant 0 : index
    %8 = vector.load %arg3[%c0_6, %c0_7] : memref<8x18xf32, #tpu.memory_space<vmem>>, vector<8x18xf32>
    tpu.vector_store %arg3[%c0_6, %c0_7], %7 {strides = array<i32>} : memref<8x18xf32, #tpu.memory_space<vmem>>, vector<8x18xf32>,
    return
  }
}

module attributes {stable_mosaic.version = 11 : i64} {
  func.func @_max_over_windows_kernel(%arg0: memref<4x64xf32, #tpu.memory_space<vmem>>, %arg1: memref<1x64xf32, #tpu.memory_space<vmem>>) attributes {dimension_semantics = [], scalar_prefetch = 0 : i64, scratch_operands = 0 : i64, tpu.core_type = #tpu.core_type<tc>} {
    %c0 = arith.constant 0 : index
    %c0_0 = arith.constant 0 : index
    %0 = vector.load %arg0[%c0, %c0_0] : memref<4x64xf32, #tpu.memory_space<vmem>>, vector<4x64xf32>
    %cst = arith.constant dense<0xFF800000> : vector<64xf32>
    %1 = vector.multi_reduction <maximumf>, %0, %cst [0] : vector<4x64xf32> to vector<64xf32>
    %2 = vector.shape_cast %1 : vector<64xf32> to vector<1x64xf32>
    %c0_1 = arith.constant 0 : index
    %c0_2 = arith.constant 0 : index
    %3 = vector.load %arg1[%c0_1, %c0_2] : memref<1x64xf32, #tpu.memory_space<vmem>>, vector<1x64xf32>
    tpu.vector_store %arg1[%c0_1, %c0_2], %2 {strides = array<i32>} : memref<1x64xf32, #tpu.memory_space<vmem>>, vector<1x64xf32>,
    return
  }
}

module attributes {stable_mosaic.version = 11 : i64} {
  func.func @_matmul_bias_act_kernel(%arg0: memref<2x72xf32, #tpu.memory_space<vmem>>, %arg1: memref<72x8xf32, #tpu.memory_space<vmem>>, %arg2: memref<2x1xf32, #tpu.memory_space<vmem>>, %arg3: memref<2x8xf32, #tpu.memory_space<vmem>>) attributes {dimension_semantics = [], scalar_prefetch = 0 : i64, scratch_operands = 0 : i64, tpu.core_type = #tpu.core_type<tc>} {
    %c0 = arith.constant 0 : index
    %c0_0 = arith.constant 0 : index
    %0 = vector.load %arg0[%c0, %c0_0] : memref<2x72xf32, #tpu.memory_space<vmem>>, vector<2x72xf32>
    %c0_1 = arith.constant 0 : index
    %c0_2 = arith.constant 0 : index
    %1 = vector.load %arg1[%c0_1, %c0_2] : memref<72x8xf32, #tpu.memory_space<vmem>>, vector<72x8xf32>
    %cst = arith.constant dense<0.000000e+00> : vector<2x8xf32>
    %2 = tpu.matmul %0, %1, %cst {dimension_numbers = #tpu.dot_dimension_numbers<[1], [0], [0], [1], [0, 0, 1, 1], [], []>} : vector<2x72xf32>, vector<72x8xf32>, vector<2x8xf32> -> vector<2x8xf32>
    %c0_3 = arith.constant 0 : index
    %c0_4 = arith.constant 0 : index
    %3 = vector.load %arg2[%c0_3, %c0_4] : memref<2x1xf32, #tpu.memory_space<vmem>>, vector<2x1xf32>
    %4 = vector.broadcast %3 : vector<2x1xf32> to vector<2x8xf32>
    %5 = arith.addf %2, %4 : vector<2x8xf32>
    %cst_5 = arith.constant 0.000000e+00 : f32
    %6 = vector.broadcast %cst_5 : f32 to vector<2x8xf32>
    %7 = arith.maximumf %5, %6 : vector<2x8xf32>
    %c0_6 = arith.constant 0 : index
    %c0_7 = arith.constant 0 : index
    %8 = vector.load %arg3[%c0_6, %c0_7] : memref<2x8xf32, #tpu.memory_space<vmem>>, vector<2x8xf32>
    tpu.vector_store %arg3[%c0_6, %c0_7], %7 {strides = array<i32>} : memref<2x8xf32, #tpu.memory_space<vmem>>, vector<2x8xf32>,
    return
  }
}

module attributes {stable_mosaic.version = 11 : i64} {
  func.func @_max_over_windows_kernel(%arg0: memref<4x4xf32, #tpu.memory_space<vmem>>, %arg1: memref<1x4xf32, #tpu.memory_space<vmem>>) attributes {dimension_semantics = [], scalar_prefetch = 0 : i64, scratch_operands = 0 : i64, tpu.core_type = #tpu.core_type<tc>} {
    %c0 = arith.constant 0 : index
    %c0_0 = arith.constant 0 : index
    %0 = vector.load %arg0[%c0, %c0_0] : memref<4x4xf32, #tpu.memory_space<vmem>>, vector<4x4xf32>
    %cst = arith.constant dense<0xFF800000> : vector<4xf32>
    %1 = vector.multi_reduction <maximumf>, %0, %cst [0] : vector<4x4xf32> to vector<4xf32>
    %2 = vector.shape_cast %1 : vector<4xf32> to vector<1x4xf32>
    %c0_1 = arith.constant 0 : index
    %c0_2 = arith.constant 0 : index
    %3 = vector.load %arg1[%c0_1, %c0_2] : memref<1x4xf32, #tpu.memory_space<vmem>>, vector<1x4xf32>
    tpu.vector_store %arg1[%c0_1, %c0_2], %2 {strides = array<i32>} : memref<1x4xf32, #tpu.memory_space<vmem>>, vector<1x4xf32>,
    return
  }
}

module attributes {stable_mosaic.version = 11 : i64} {
  func.func @_matmul_bias_act_kernel(%arg0: memref<2x9xf32, #tpu.memory_space<vmem>>, %arg1: memref<9x2xf32, #tpu.memory_space<vmem>>, %arg2: memref<2x1xf32, #tpu.memory_space<vmem>>, %arg3: memref<2x2xf32, #tpu.memory_space<vmem>>) attributes {dimension_semantics = [], scalar_prefetch = 0 : i64, scratch_operands = 0 : i64, tpu.core_type = #tpu.core_type<tc>} {
    %c0 = arith.constant 0 : index
    %c0_0 = arith.constant 0 : index
    %0 = vector.load %arg0[%c0, %c0_0] : memref<2x9xf32, #tpu.memory_space<vmem>>, vector<2x9xf32>
    %c0_1 = arith.constant 0 : index
    %c0_2 = arith.constant 0 : index
    %1 = vector.load %arg1[%c0_1, %c0_2] : memref<9x2xf32, #tpu.memory_space<vmem>>, vector<9x2xf32>
    %cst = arith.constant dense<0.000000e+00> : vector<2x2xf32>
    %2 = tpu.matmul %0, %1, %cst {dimension_numbers = #tpu.dot_dimension_numbers<[1], [0], [0], [1], [0, 0, 1, 1], [], []>} : vector<2x9xf32>, vector<9x2xf32>, vector<2x2xf32> -> vector<2x2xf32>
    %c0_3 = arith.constant 0 : index
    %c0_4 = arith.constant 0 : index
    %3 = vector.load %arg2[%c0_3, %c0_4] : memref<2x1xf32, #tpu.memory_space<vmem>>, vector<2x1xf32>
    %4 = vector.broadcast %3 : vector<2x1xf32> to vector<2x2xf32>
    %5 = arith.addf %2, %4 : vector<2x2xf32>
    %cst_5 = arith.constant 0.000000e+00 : f32
    %6 = vector.broadcast %cst_5 : f32 to vector<2x2xf32>
    %7 = arith.maximumf %5, %6 : vector<2x2xf32>
    %c0_6 = arith.constant 0 : index
    %c0_7 = arith.constant 0 : index
    %8 = vector.load %arg3[%c0_6, %c0_7] : memref<2x2xf32, #tpu.memory_space<vmem>>, vector<2x2xf32>
    tpu.vector_store %arg3[%c0_6, %c0_7], %7 {strides = array<i32>} : memref<2x2xf32, #tpu.memory_space<vmem>>, vector<2x2xf32>,
    return
  }
}

module attributes {stable_mosaic.version = 11 : i64} {
  func.func @_matmul_bias_act_kernel(%arg0: memref<1x18xf32, #tpu.memory_space<vmem>>, %arg1: memref<18x2xf32, #tpu.memory_space<vmem>>, %arg2: memref<1x1xf32, #tpu.memory_space<vmem>>, %arg3: memref<1x2xf32, #tpu.memory_space<vmem>>) attributes {dimension_semantics = [], scalar_prefetch = 0 : i64, scratch_operands = 0 : i64, tpu.core_type = #tpu.core_type<tc>} {
    %c0 = arith.constant 0 : index
    %c0_0 = arith.constant 0 : index
    %0 = vector.load %arg0[%c0, %c0_0] : memref<1x18xf32, #tpu.memory_space<vmem>>, vector<1x18xf32>
    %c0_1 = arith.constant 0 : index
    %c0_2 = arith.constant 0 : index
    %1 = vector.load %arg1[%c0_1, %c0_2] : memref<18x2xf32, #tpu.memory_space<vmem>>, vector<18x2xf32>
    %cst = arith.constant dense<0.000000e+00> : vector<1x2xf32>
    %2 = tpu.matmul %0, %1, %cst {dimension_numbers = #tpu.dot_dimension_numbers<[1], [0], [0], [1], [0, 0, 1, 1], [], []>} : vector<1x18xf32>, vector<18x2xf32>, vector<1x2xf32> -> vector<1x2xf32>
    %c0_3 = arith.constant 0 : index
    %c0_4 = arith.constant 0 : index
    %3 = vector.load %arg2[%c0_3, %c0_4] : memref<1x1xf32, #tpu.memory_space<vmem>>, vector<1x1xf32>
    %4 = vector.broadcast %3 : vector<1x1xf32> to vector<1x2xf32>
    %5 = arith.addf %2, %4 : vector<1x2xf32>
    %cst_5 = arith.constant 0.000000e+00 : f32
    %6 = vector.broadcast %cst_5 : f32 to vector<1x2xf32>
    %7 = arith.maximumf %5, %6 : vector<1x2xf32>
    %c0_6 = arith.constant 0 : index
    %c0_7 = arith.constant 0 : index
    %8 = vector.load %arg3[%c0_6, %c0_7] : memref<1x2xf32, #tpu.memory_space<vmem>>, vector<1x2xf32>
    tpu.vector_store %arg3[%c0_6, %c0_7], %7 {strides = array<i32>} : memref<1x2xf32, #tpu.memory_space<vmem>>, vector<1x2xf32>,
    return
  }
}

module attributes {stable_mosaic.version = 11 : i64} {
  func.func @_matmul_bias_act_kernel(%arg0: memref<8x18xf32, #tpu.memory_space<vmem>>, %arg1: memref<18x18xf32, #tpu.memory_space<vmem>>, %arg2: memref<8x1xf32, #tpu.memory_space<vmem>>, %arg3: memref<8x18xf32, #tpu.memory_space<vmem>>) attributes {dimension_semantics = [], scalar_prefetch = 0 : i64, scratch_operands = 0 : i64, tpu.core_type = #tpu.core_type<tc>} {
    %c0 = arith.constant 0 : index
    %c0_0 = arith.constant 0 : index
    %0 = vector.load %arg0[%c0, %c0_0] : memref<8x18xf32, #tpu.memory_space<vmem>>, vector<8x18xf32>
    %c0_1 = arith.constant 0 : index
    %c0_2 = arith.constant 0 : index
    %1 = vector.load %arg1[%c0_1, %c0_2] : memref<18x18xf32, #tpu.memory_space<vmem>>, vector<18x18xf32>
    %cst = arith.constant dense<0.000000e+00> : vector<8x18xf32>
    %2 = tpu.matmul %0, %1, %cst {dimension_numbers = #tpu.dot_dimension_numbers<[1], [0], [0], [1], [0, 0, 1, 1], [], []>} : vector<8x18xf32>, vector<18x18xf32>, vector<8x18xf32> -> vector<8x18xf32>
    %c0_3 = arith.constant 0 : index
    %c0_4 = arith.constant 0 : index
    %3 = vector.load %arg2[%c0_3, %c0_4] : memref<8x1xf32, #tpu.memory_space<vmem>>, vector<8x1xf32>
    %4 = vector.broadcast %3 : vector<8x1xf32> to vector<8x18xf32>
    %5 = arith.addf %2, %4 : vector<8x18xf32>
    %cst_5 = arith.constant 0.000000e+00 : f32
    %6 = vector.broadcast %cst_5 : f32 to vector<8x18xf32>
    %7 = arith.maximumf %5, %6 : vector<8x18xf32>
    %c0_6 = arith.constant 0 : index
    %c0_7 = arith.constant 0 : index
    %8 = vector.load %arg3[%c0_6, %c0_7] : memref<8x18xf32, #tpu.memory_space<vmem>>, vector<8x18xf32>
    tpu.vector_store %arg3[%c0_6, %c0_7], %7 {strides = array<i32>} : memref<8x18xf32, #tpu.memory_space<vmem>>, vector<8x18xf32>,
    return
  }
}

module attributes {stable_mosaic.version = 11 : i64} {
  func.func @_matmul_bias_act_kernel(%arg0: memref<16x72xf32, #tpu.memory_space<vmem>>, %arg1: memref<72x98xf32, #tpu.memory_space<vmem>>, %arg2: memref<16x1xf32, #tpu.memory_space<vmem>>, %arg3: memref<16x98xf32, #tpu.memory_space<vmem>>) attributes {dimension_semantics = [], scalar_prefetch = 0 : i64, scratch_operands = 0 : i64, tpu.core_type = #tpu.core_type<tc>} {
    %c0 = arith.constant 0 : index
    %c0_0 = arith.constant 0 : index
    %0 = vector.load %arg0[%c0, %c0_0] : memref<16x72xf32, #tpu.memory_space<vmem>>, vector<16x72xf32>
    %c0_1 = arith.constant 0 : index
    %c0_2 = arith.constant 0 : index
    %1 = vector.load %arg1[%c0_1, %c0_2] : memref<72x98xf32, #tpu.memory_space<vmem>>, vector<72x98xf32>
    %cst = arith.constant dense<0.000000e+00> : vector<16x98xf32>
    %2 = tpu.matmul %0, %1, %cst {dimension_numbers = #tpu.dot_dimension_numbers<[1], [0], [0], [1], [0, 0, 1, 1], [], []>} : vector<16x72xf32>, vector<72x98xf32>, vector<16x98xf32> -> vector<16x98xf32>
    %c0_3 = arith.constant 0 : index
    %c0_4 = arith.constant 0 : index
    %3 = vector.load %arg2[%c0_3, %c0_4] : memref<16x1xf32, #tpu.memory_space<vmem>>, vector<16x1xf32>
    %4 = vector.broadcast %3 : vector<16x1xf32> to vector<16x98xf32>
    %5 = arith.addf %2, %4 : vector<16x98xf32>
    %cst_5 = arith.constant 0.000000e+00 : f32
    %6 = vector.broadcast %cst_5 : f32 to vector<16x98xf32>
    %7 = arith.maximumf %5, %6 : vector<16x98xf32>
    %c0_6 = arith.constant 0 : index
    %c0_7 = arith.constant 0 : index
    %8 = vector.load %arg3[%c0_6, %c0_7] : memref<16x98xf32, #tpu.memory_space<vmem>>, vector<16x98xf32>
    tpu.vector_store %arg3[%c0_6, %c0_7], %7 {strides = array<i32>} : memref<16x98xf32, #tpu.memory_space<vmem>>, vector<16x98xf32>,
    return
  }
}

module attributes {stable_mosaic.version = 11 : i64} {
  func.func @_matmul_bias_act_kernel(%arg0: memref<8x144xf32, #tpu.memory_space<vmem>>, %arg1: memref<144x882xf32, #tpu.memory_space<vmem>>, %arg2: memref<8x1xf32, #tpu.memory_space<vmem>>, %arg3: memref<8x882xf32, #tpu.memory_space<vmem>>) attributes {dimension_semantics = [], scalar_prefetch = 0 : i64, scratch_operands = 0 : i64, tpu.core_type = #tpu.core_type<tc>} {
    %c0 = arith.constant 0 : index
    %c0_0 = arith.constant 0 : index
    %0 = vector.load %arg0[%c0, %c0_0] : memref<8x144xf32, #tpu.memory_space<vmem>>, vector<8x144xf32>
    %c0_1 = arith.constant 0 : index
    %c0_2 = arith.constant 0 : index
    %1 = vector.load %arg1[%c0_1, %c0_2] : memref<144x882xf32, #tpu.memory_space<vmem>>, vector<144x882xf32>
    %cst = arith.constant dense<0.000000e+00> : vector<8x882xf32>
    %2 = tpu.matmul %0, %1, %cst {dimension_numbers = #tpu.dot_dimension_numbers<[1], [0], [0], [1], [0, 0, 1, 1], [], []>} : vector<8x144xf32>, vector<144x882xf32>, vector<8x882xf32> -> vector<8x882xf32>
    %c0_3 = arith.constant 0 : index
    %c0_4 = arith.constant 0 : index
    %3 = vector.load %arg2[%c0_3, %c0_4] : memref<8x1xf32, #tpu.memory_space<vmem>>, vector<8x1xf32>
    %4 = vector.broadcast %3 : vector<8x1xf32> to vector<8x882xf32>
    %5 = arith.addf %2, %4 : vector<8x882xf32>
    %cst_5 = arith.constant 0.000000e+00 : f32
    %6 = vector.broadcast %cst_5 : f32 to vector<8x882xf32>
    %7 = arith.maximumf %5, %6 : vector<8x882xf32>
    %c0_6 = arith.constant 0 : index
    %c0_7 = arith.constant 0 : index
    %8 = vector.load %arg3[%c0_6, %c0_7] : memref<8x882xf32, #tpu.memory_space<vmem>>, vector<8x882xf32>
    tpu.vector_store %arg3[%c0_6, %c0_7], %7 {strides = array<i32>} : memref<8x882xf32, #tpu.memory_space<vmem>>, vector<8x882xf32>,
    return
  }
}

module attributes {stable_mosaic.version = 11 : i64} {
  func.func @_matmul_bias_act_kernel(%arg0: memref<1x72xf32, #tpu.memory_space<vmem>>, %arg1: memref<72x7938xf32, #tpu.memory_space<vmem>>, %arg2: memref<1x1xf32, #tpu.memory_space<vmem>>, %arg3: memref<1x7938xf32, #tpu.memory_space<vmem>>) attributes {dimension_semantics = [], scalar_prefetch = 0 : i64, scratch_operands = 0 : i64, tpu.core_type = #tpu.core_type<tc>} {
    %c0 = arith.constant 0 : index
    %c0_0 = arith.constant 0 : index
    %0 = vector.load %arg0[%c0, %c0_0] : memref<1x72xf32, #tpu.memory_space<vmem>>, vector<1x72xf32>
    %c0_1 = arith.constant 0 : index
    %c0_2 = arith.constant 0 : index
    %1 = vector.load %arg1[%c0_1, %c0_2] : memref<72x7938xf32, #tpu.memory_space<vmem>>, vector<72x7938xf32>
    %cst = arith.constant dense<0.000000e+00> : vector<1x7938xf32>
    %2 = tpu.matmul %0, %1, %cst {dimension_numbers = #tpu.dot_dimension_numbers<[1], [0], [0], [1], [0, 0, 1, 1], [], []>} : vector<1x72xf32>, vector<72x7938xf32>, vector<1x7938xf32> -> vector<1x7938xf32>
    %c0_3 = arith.constant 0 : index
    %c0_4 = arith.constant 0 : index
    %3 = vector.load %arg2[%c0_3, %c0_4] : memref<1x1xf32, #tpu.memory_space<vmem>>, vector<1x1xf32>
    %4 = vector.broadcast %3 : vector<1x1xf32> to vector<1x7938xf32>
    %5 = arith.addf %2, %4 : vector<1x7938xf32>
    %cst_5 = arith.constant 0.000000e+00 : f32
    %6 = vector.broadcast %cst_5 : f32 to vector<1x7938xf32>
    %7 = arith.subf %6, %5 : vector<1x7938xf32>
    %8 = math.exp %7 : vector<1x7938xf32>
    %cst_6 = arith.constant 1.000000e+00 : f32
    %9 = vector.broadcast %cst_6 : f32 to vector<1x7938xf32>
    %10 = arith.addf %9, %8 : vector<1x7938xf32>
    %cst_7 = arith.constant 1.000000e+00 : f32
    %11 = vector.broadcast %cst_7 : f32 to vector<1x7938xf32>
    %12 = arith.divf %11, %10 : vector<1x7938xf32>
    %c0_8 = arith.constant 0 : index
    %c0_9 = arith.constant 0 : index
    %13 = vector.load %arg3[%c0_8, %c0_9] : memref<1x7938xf32, #tpu.memory_space<vmem>>, vector<1x7938xf32>
    tpu.vector_store %arg3[%c0_8, %c0_9], %12 {strides = array<i32>} : memref<1x7938xf32, #tpu.memory_space<vmem>>, vector<1x7938xf32>,
    return
  }
}

</mosaic_0001>

<bundles_post_ra>
// kernel: autoencoder_forward.12
= control target key start
LH: loop header
LB: loop body
LE: loop exit
PB: predicated region body
PF: predicated region fallthrough
CT: control target
= control target key end

     0   :  { %vm39_vm0 = vcmask 1040384   ;;  %v147_v3 = vmov 0.0   ;;  %vm32_vm1 = vcmask 72704   ;;  %v148_v8 = vmov 0   ;;  %s205_s1 = inlined_call_operand.vmem [shape: f32[9,200], index: 1, kind: input, shape index: {}]   ;;  %s206_s0 = inlined_call_operand.vmem [shape: f32[16,9], index: 0, kind: input, shape index: {}]   ;;  %s207_s2 = inlined_call_operand.vmem [shape: f32[16,1], index: 2, kind: input, shape index: {}]   ;;  %s208_s3 = inlined_call_operand.vmem [shape: f32[16,200], index: 3, kind: output, shape index: {}]  }
   0x1   :  { %v19_v0 = vld [vmem:[%s205_s1 + $0x18] sm:$0x1]  ;;  %v18_v1 = vld [vmem:[%s205_s1 + $0x10] sm:$0x1]  ;;  %v17_v2 = vld [vmem:[%s205_s1 + $0x8] sm:$0xff]  ;;  %110 = vmatprep.mubr.f32.mxu0 %v147_v3  ;;  %116 = vmatprep.mubr.f32.mxu1 %v147_v3  ;;  %vm128_vm2 = vcmask 588800  }
   0x2   :  { %136 = vmatprep.subr.msk.mxu0 %vm39_vm0, %v19_v0  ;;  %140 = vmatprep.subr.msk.mxu1 %vm39_vm0, %v19_v0  ;;  %v16_v4 = vld [vmem:[%s205_s1] sm:$0xff]  ;;  %v15_v6 = vld [vmem:[%s206_s0 + $0x8] sm:$0xff] }
   0x3   :  { %137 = vmatpush1.msk.msra.mxu0 %vm39_vm0, %v18_v1  ;;  %142 = vmatpush1.msk.msra.mxu1 %vm39_vm0, %v18_v1  ;;  %v14_v5 = vld [vmem:[%s206_s0] sm:$0xff]  ;;  %v21_v9 = vld [vmem:[%s207_s2 + $0x8] sm:$0xff] }
   0x4   :  { %76 = vmatprep.subr.mxu0 %v17_v2  ;;  %141 = vmatprep.subr.mxu1 %v17_v2  ;;  %v20_v7 = vld [vmem:[%s207_s2] sm:$0xff] }
   0x5   :  { %77 = vmatpush1.msra.mxu0 %v16_v4  ;;  %143 = vmatpush1.msra.mxu1 %v16_v4 }
   0x6   :  { %138 = vmatmul.mubr.msk.f32.vlgmr.msra.gmra.mxu0 %vm32_vm1, %v14_v5  ;;  %139 = vmatmul.mubr.msk.f32.vlgmr.msra.gmra.mxu1 %vm32_vm1, %v15_v6 }
   0x7   :  { %146 = vset.pattern.permute.xlu0 %v148_v8 }
   0x8   :  { %24 = vperm.xlu0 %146, %v20_v7  }
   0xc   :  { %29 = vperm.xlu0 %146, %v21_v9  }
  0x83   :  { %v25_v10 = vpop.permute.xlu0 %24 }
  0x87   :  { %v30_v11 = vpop.permute.xlu0 %29 }
  0xc6   :  { %v112_v12 = vpop.f32.mrf.mxu0  ;;  %v118_v13 = vpop.f32.mrf.mxu1 }
  0xc7   :  { %v113_v14 = vadd.f32 %v112_v12, %v25_v10  ;;  %v119_v15 = vadd.f32 %v118_v13, %v30_v11 }
  0xc8   :  { %v114_v16 = vpop.f32.mrf.mxu0  ;;  %v120_v17 = vpop.f32.mrf.mxu1 }
  0xc9   :  { %v123_v18 = vmax.f32 %v113_v14, 0.0  ;;  %v125_v19 = vmax.f32 %v119_v15, 0.0  ;;  %v115_v20 = vadd.f32 %v114_v16, %v25_v10  ;;  %v121_v21 = vadd.f32 %v120_v17, %v30_v11 }
  0xcb   :  { %127 = vst [vmem:[%s208_s3] sm:$0xff] %v123_v18  ;;  %130 = vst [vmem:[%s208_s3 + $0x10] sm:$0xff] %v125_v19  ;;  %v124_v22 = vmax.f32 %v115_v20, 0.0  ;;  %v126_v23 = vmax.f32 %v121_v21, 0.0 }
  0xcd   :  { %129 = vst.msk [vmem:[%s208_s3 + $0x8] sm:$0xff] %vm128_vm2, %v124_v22  ;;  %131 = vst.msk [vmem:[%s208_s3 + $0x18] sm:$0xff] %vm128_vm2, %v126_v23 }

// kernel: autoencoder_forward.13
= control target key start
LH: loop header
LB: loop body
LE: loop exit
PB: predicated region body
PF: predicated region fallthrough
CT: control target
= control target key end

     0   :  { %vm21_vm0 = vcmask 1043456   ;;  %vm64_vm1 = vcmask 257024   ;;  %v141_v3 = vmov 1966171168   ;;  %v85_v5 = vlaneseq  ;;  %s175_s0 = inlined_call_operand.vmem [shape: f32[4,800], index: 0, kind: input, shape index: {}]   ;;  %s176_s1 = inlined_call_operand.vmem [shape: f32[1,800], index: 1, kind: output, shape index: {}]  }
   0x1   :  { %v8_v0 = vld [vmem:[%s175_s0] sm:$0xff]  ;;  %v9_v1 = vld [vmem:[%s175_s0 + $0x8] sm:$0xff]  ;;  %v10_v2 = vld [vmem:[%s175_s0 + $0x10] sm:$0xff]  ;;  %v83_v4 = vunpack.c.l.s4 %v141_v3 }
   0x2   :  { %v11_v6 = vld [vmem:[%s175_s0 + $0x18] sm:$0xf]  ;;  %v15_v7 = vcombine.high %v8_v0, %v8_v0  ;;  %v16_v8 = vcombine.high %v9_v1, %v9_v1  ;;  %v17_v9 = vcombine.high %v10_v2, %v10_v2  ;;  %v22_v10 = vsel %vm21_vm0, %v8_v0, -inf }
   0x3   :  { %v23_v11 = vrot.slane %v22_v10, 4  ;;  %v36_v12 = vsel %vm21_vm0, %v9_v1, -inf  ;;  %v50_v13 = vsel %vm21_vm0, %v10_v2, -inf  ;;  %v65_v14 = vsel %vm64_vm1, %v11_v6, -inf }
   0x4   :  { %v29_v15 = vsel %vm21_vm0, %v15_v7, -inf  ;;  %v37_v16 = vrot.slane %v36_v12, 4  ;;  %v43_v17 = vsel %vm21_vm0, %v16_v8, -inf  ;;  %v51_v18 = vrot.slane %v50_v13, 4 }
   0x5   :  { %v24_v19 = vmax.f32 %v22_v10, %v23_v11  ;;  %v30_v20 = vrot.slane %v29_v15, 4  ;;  %v44_v21 = vrot.slane %v43_v17, 4  ;;  %v57_v22 = vsel %vm21_vm0, %v17_v9, -inf }
   0x6   :  { %v38_v23 = vmax.f32 %v36_v12, %v37_v16  ;;  %v52_v24 = vmax.f32 %v50_v13, %v51_v18  ;;  %v58_v25 = vrot.slane %v57_v22, 4  ;;  %v66_v26 = vrot.slane %v65_v14, 4 }
   0x7   :  { %v25_v27 = vrot.slane %v24_v19, 2  ;;  %v31_v28 = vmax.f32 %v29_v15, %v30_v20  ;;  %v45_v29 = vmax.f32 %v43_v17, %v44_v21  ;;  %v84_v30 = vunpack.c.0.s8 %v83_v4 }
   0x8   :  { %v39_v31 = vrot.slane %v38_v23, 2  ;;  %v53_v32 = vrot.slane %v52_v24, 2  ;;  %v59_v33 = vmax.f32 %v57_v22, %v58_v25  ;;  %v67_v34 = vmax.f32 %v65_v14, %v66_v26 }
   0x9   :  { %v26_v35 = vmax.f32 %v24_v19, %v25_v27  ;;  %v32_v36 = vrot.slane %v31_v28, 2  ;;  %v46_v37 = vrot.slane %v45_v29, 2  ;;  %v86_v38 = vshrl.u32 %v85_v5, 7 }
   0xa   :  { %v40_v39 = vmax.f32 %v38_v23, %v39_v31  ;;  %v54_v40 = vmax.f32 %v52_v24, %v53_v32  ;;  %v60_v41 = vrot.slane %v59_v33, 2  ;;  %v68_v42 = vrot.slane %v67_v34, 2 }
   0xb   :  { %v27_v43 = vrot.slane %v26_v35, 1  ;;  %v33_v44 = vmax.f32 %v31_v28, %v32_v36  ;;  %v47_v45 = vmax.f32 %v45_v29, %v46_v37  ;;  %v87_v53 = vsub.s32 %v84_v30, %v86_v38 }
   0xc   :  { %v41_v46 = vrot.slane %v40_v39, 1  ;;  %v55_v47 = vrot.slane %v54_v40, 1  ;;  %v61_v48 = vmax.f32 %v59_v33, %v60_v41  ;;  %v69_v49 = vmax.f32 %v67_v34, %v68_v42 }
   0xd   :  { %v28_v50 = vmax.f32 %v26_v35, %v27_v43  ;;  %v34_v51 = vrot.slane %v33_v44, 1  ;;  %v48_v52 = vrot.slane %v47_v45, 1  ;;  %vm130_vm2 = vcmp.lt.s32.totalorder %v85_v5, 800 }
   0xe   :  { %v42_v54 = vmax.f32 %v40_v39, %v41_v46  ;;  %v56_v55 = vmax.f32 %v54_v40, %v55_v47  ;;  %v62_v56 = vrot.slane %v61_v48, 1  ;;  %v70_v57 = vrot.slane %v69_v49, 1 }
   0xf   :  { %v35_v58 = vmax.f32 %v33_v44, %v34_v51  ;;  %v49_v59 = vmax.f32 %v47_v45, %v48_v52 }
  0x10   :  { %v63_v60 = vmax.f32 %v61_v48, %v62_v56  ;;  %v71_v61 = vmax.f32 %v69_v49, %v70_v57 }
  0x11   :  { %v79_v62 = vcombine.low %v28_v50, %v35_v58  ;;  %v80_v63 = vcombine.low %v42_v54, %v49_v59 }
  0x12   :  { %v81_v0 = vcombine.low %v56_v55, %v63_v60  ;;  %v109_v1 = vrot.slane %v71_v61, %v87_v53 }
  0x13   :  { %v88_v2 = vrot.slane %v79_v62, %v87_v53  ;;  %v95_v3 = vrot.slane %v80_v63, %v87_v53 }
  0x14   :  { %v102_v4 = vrot.slane %v81_v0, %v87_v53 }
  0x15   :  { %v110_v6 = vcombine.low %v88_v2, %v95_v3 }
  0x16   :  { %v111_v7 = vcombine.low %v102_v4, %v109_v1 }
  0x17   :  { %v118_v8 = vrot.slane %v110_v6, %v87_v53 }
  0x18   :  { %v125_v9 = vrot.slane %v111_v7, %v87_v53 }
  0x1a   :  { %v126_v10 = vcombine.low %v118_v8, %v125_v9 }
  0x1c   :  { %132 = vst.msk [vmem:[%s176_s1] sm:$0x7f] %vm130_vm2, %v126_v10 }

// kernel: autoencoder_forward.14
= control target key start
LH: loop header
LB: loop body
LE: loop exit
PB: predicated region body
PF: predicated region fallthrough
CT: control target
= control target key end

     0   :  { %v125_v0 = vmov 0.0   ;;  %v126_v3 = vmov 0   ;;  %vm40_vm0 = vcmask 130048   ;;  %vm115_vm1 = vcmask 146432   ;;  %s213_s1 = inlined_call_operand.vmem [shape: f32[144,18], index: 1, kind: input, shape index: {}]   ;;  %s214_s0 = inlined_call_operand.vmem [shape: f32[8,144], index: 0, kind: input, shape index: {}]   ;;  %s215_s2 = inlined_call_operand.vmem [shape: f32[8,1], index: 2, kind: input, shape index: {}]   ;;  %s216_s3 = inlined_call_operand.vmem [shape: f32[8,18], index: 3, kind: output, shape index: {}]  }
   0x1   :  { %44 = vmatprep.subr.mxu0 %v125_v0  ;;  %v31_v1 = vld [vmem:[%s213_s1 + $0x78] sm:$0xff]  ;;  %v30_v2 = vld [vmem:[%s213_s1 + $0x70] sm:$0xff]  ;;  %124 = vset.pattern.permute.xlu0 %v126_v3  ;;  %v29_v4 = vld [vmem:[%s213_s1 + $0x68] sm:$0xff] }
   0x2   :  { %45 = vmatpush1.msra.mxu0 %v31_v1  ;;  %v28_v5 = vld [vmem:[%s213_s1 + $0x60] sm:$0xff]  ;;  %v27_v6 = vld [vmem:[%s213_s1 + $0x58] sm:$0xff]  ;;  %v15_v7 = vld [vmem:[%s214_s0 + $0x8] sm:$0xff] }
   0x3   :  { %46 = vmatprep.subr.mxu0 %v125_v0  ;;  %v34_v8 = vld [vmem:[%s215_s2] sm:$0xff]  ;;  %121 = vmatprep.mubr.msk.f32.mxu0 %vm40_vm0, %v15_v7  ;;  %v26_v9 = vld [vmem:[%s213_s1 + $0x50] sm:$0xff]  ;;  %v25_v10 = vld [vmem:[%s213_s1 + $0x48] sm:$0xff] }
   0x4   :  { %47 = vmatpush1.msra.mxu0 %v30_v2  ;;  %37 = vperm.xlu0 %124, %v34_v8   ;;  %v24_v11 = vld [vmem:[%s213_s1 + $0x40] sm:$0xff]  ;;  %v23_v12 = vld [vmem:[%s213_s1 + $0x38] sm:$0xff]  ;;  %v22_v13 = vld [vmem:[%s213_s1 + $0x30] sm:$0xff] }
   0x5   :  { %48 = vmatprep.subr.mxu0 %v125_v0  ;;  %v21_v14 = vld [vmem:[%s213_s1 + $0x28] sm:$0xff]  ;;  %v20_v15 = vld [vmem:[%s213_s1 + $0x20] sm:$0xff]  ;;  %v19_v16 = vld [vmem:[%s213_s1 + $0x18] sm:$0xff] }
   0x6   :  { %49 = vmatpush1.msra.mxu0 %v29_v4  ;;  %v18_v17 = vld [vmem:[%s213_s1 + $0x10] sm:$0xff]  ;;  %v17_v18 = vld [vmem:[%s213_s1 + $0x8] sm:$0xff]  ;;  %v16_v19 = vld [vmem:[%s213_s1] sm:$0xff] }
   0x7   :  { %50 = vmatprep.subr.mxu0 %v125_v0  ;;  %v33_v20 = vld [vmem:[%s213_s1 + $0x88] sm:$0xff]  ;;  %v32_v21 = vld [vmem:[%s213_s1 + $0x80] sm:$0xff] }
   0x8   :  { %51 = vmatpush1.msra.mxu0 %v28_v5  ;;  %v14_v22 = vld [vmem:[%s214_s0] sm:$0xff] }
   0x9   :  { %52 = vmatprep.subr.mxu0 %v125_v0 }
   0xa   :  { %53 = vmatpush1.msra.mxu0 %v27_v6 }
   0xb   :  { %54 = vmatprep.subr.mxu0 %v125_v0 }
   0xc   :  { %55 = vmatpush1.msra.mxu0 %v26_v9 }
   0xd   :  { %56 = vmatprep.subr.mxu0 %v125_v0 }
   0xe   :  { %57 = vmatpush1.msra.mxu0 %v25_v10 }
   0xf   :  { %58 = vmatprep.subr.mxu0 %v125_v0 }
  0x10   :  { %59 = vmatpush1.msra.mxu0 %v24_v11 }
  0x11   :  { %60 = vmatprep.subr.mxu0 %v125_v0 }
  0x12   :  { %61 = vmatpush1.msra.mxu0 %v23_v12 }
  0x13   :  { %62 = vmatprep.subr.mxu0 %v125_v0 }
  0x14   :  { %63 = vmatpush1.msra.mxu0 %v22_v13 }
  0x15   :  { %64 = vmatprep.subr.mxu0 %v125_v0 }
  0x16   :  { %65 = vmatpush1.msra.mxu0 %v21_v14 }
  0x17   :  { %66 = vmatprep.subr.mxu0 %v125_v0 }
  0x18   :  { %67 = vmatpush1.msra.mxu0 %v20_v15 }
  0x19   :  { %68 = vmatprep.subr.mxu0 %v125_v0 }
  0x1a   :  { %69 = vmatpush1.msra.mxu0 %v19_v16 }
  0x1b   :  { %70 = vmatprep.subr.mxu0 %v125_v0 }
  0x1c   :  { %71 = vmatpush1.msra.mxu0 %v18_v17 }
  0x1d   :  { %72 = vmatprep.subr.mxu0 %v125_v0 }
  0x1e   :  { %73 = vmatpush1.msra.mxu0 %v17_v18 }
  0x1f   :  { %74 = vmatprep.subr.mxu0 %v125_v0 }
  0x20   :  { %75 = vmatpush1.msra.mxu0 %v16_v19 }
  0x21   :  { %104 = vmatprep.subr.mxu0 %v125_v0 }
  0x22   :  { %105 = vmatpush2.msra.mxu0 %v33_v20 }
  0x23   :  { %106 = vmatprep.subr.mxu0 %v125_v0 }
  0x24   :  { %107 = vmatpush2.msra.mxu0 %v32_v21 }
  0x25   :  { %109 = vmatmul.mubr.f32.vlgmr.msra.gmra.mxu0 %v14_v22 }
  0x7f   :  { %v38_v23 = vpop.permute.xlu0 %37 }
  0xe5   :  { %v110_v24 = vpop.f32.mrf.mxu0 }
  0xe6   :  { %v111_v25 = vadd.f32 %v110_v24, %v38_v23 }
  0xe7   :  { %v112_v26 = vpop.f32.mrf.mxu0 }
  0xe8   :  { %v114_v27 = vmax.f32 %v111_v25, 0.0 }
  0xea   :  { %116 = vst.msk [vmem:[%s216_s3] sm:$0xff] %vm115_vm1, %v114_v27 }

// kernel: autoencoder_forward.15
= control target key start
LH: loop header
LB: loop body
LE: loop exit
PB: predicated region body
PF: predicated region fallthrough
CT: control target
= control target key end

     0   :  { %vm9_vm0 = vcmask 519168   ;;  %vm17_vm1 = vcmask 516096   ;;  %s39_s0 = inlined_call_operand.vmem [shape: f32[4,64], index: 0, kind: input, shape index: {}]   ;;  %s40_s1 = inlined_call_operand.vmem [shape: f32[1,64], index: 1, kind: output, shape index: {}]  }
   0x1   :  { %v8_v0 = vld [vmem:[%s39_s0] sm:$0xf] }
   0x2   :  { %v10_v1 = vsel %vm9_vm0, %v8_v0, -inf }
   0x3   :  { %v11_v2 = vrot.slane %v10_v1, 4 }
   0x5   :  { %v12_v3 = vmax.f32 %v10_v1, %v11_v2 }
   0x7   :  { %v13_v4 = vrot.slane %v12_v3, 2 }
   0x9   :  { %v14_v5 = vmax.f32 %v12_v3, %v13_v4 }
   0xb   :  { %v15_v6 = vrot.slane %v14_v5, 1 }
   0xd   :  { %v16_v7 = vmax.f32 %v14_v5, %v15_v6 }
   0xf   :  { %18 = vst.msk [vmem:[%s40_s1] sm:$0x1] %vm17_vm1, %v16_v7 }

// kernel: autoencoder_forward.16
= control target key start
LH: loop header
LB: loop body
LE: loop exit
PB: predicated region body
PF: predicated region fallthrough
CT: control target
= control target key end

     0   :  { %v147_v0 = vmov 0.0   ;;  %vm148_vm0 = vmmov 0   ;;  %v149_v3 = vmov 0   ;;  %vm30_vm1 = vcmask 588800   ;;  %s206_s1 = inlined_call_operand.vmem [shape: f32[72,8], index: 1, kind: input, shape index: {}]   ;;  %s207_s2 = inlined_call_operand.vmem [shape: f32[2,1], index: 2, kind: input, shape index: {}]   ;;  %s208_s0 = inlined_call_operand.vmem [shape: f32[2,72], index: 0, kind: input, shape index: {}]   ;;  %s209_s3 = inlined_call_operand.vmem [shape: f32[2,8], index: 3, kind: output, shape index: {}]  }
   0x1   :  { %122 = vmatprep.subr.mxu0 %v147_v0  ;;  %v23_v1 = vld [vmem:[%s206_s1 + $0x40] sm:$0xff]  ;;  %v22_v2 = vld [vmem:[%s206_s1 + $0x38] sm:$0xff]  ;;  %140 = vmatprep.mubr.msk.f32.mxu0 %vm148_vm0, %v147_v0  ;;  %v21_v4 = vld [vmem:[%s206_s1 + $0x30] sm:$0xff]  ;;  %vm105_vm2 = vcmask 58368  }
   0x2   :  { %123 = vmatpush3.msra.mxu0 %v23_v1  ;;  %146 = vset.pattern.permute.xlu0 %v149_v3  ;;  %v24_v5 = vld [vmem:[%s207_s2] sm:$0x3]  ;;  %v20_v6 = vld [vmem:[%s206_s1 + $0x28] sm:$0xff]  ;;  %v18_v8 = vld [vmem:[%s206_s1 + $0x18] sm:$0xff] }
   0x3   :  { %124 = vmatprep.subr.mxu0 %v147_v0  ;;  %27 = vperm.xlu0 %146, %v24_v5   ;;  %v19_v7 = vld [vmem:[%s206_s1 + $0x20] sm:$0xff]  ;;  %v17_v9 = vld [vmem:[%s206_s1 + $0x10] sm:$0xff]  ;;  %v16_v10 = vld [vmem:[%s206_s1 + $0x8] sm:$0xff] }
   0x4   :  { %125 = vmatpush3.msra.mxu0 %v22_v2  ;;  %v15_v11 = vld [vmem:[%s206_s1] sm:$0xff] }
   0x5   :  { %126 = vmatprep.subr.mxu0 %v147_v0  ;;  %v14_v12 = vld [vmem:[%s208_s0] sm:$0x3] }
   0x6   :  { %127 = vmatpush3.msra.mxu0 %v21_v4 }
   0x7   :  { %128 = vmatprep.subr.mxu0 %v147_v0 }
   0x8   :  { %129 = vmatpush3.msra.mxu0 %v20_v6 }
   0x9   :  { %130 = vmatprep.subr.mxu0 %v147_v0 }
   0xa   :  { %131 = vmatpush3.msra.mxu0 %v19_v7 }
   0xb   :  { %132 = vmatprep.subr.mxu0 %v147_v0 }
   0xc   :  { %133 = vmatpush3.msra.mxu0 %v18_v8 }
   0xd   :  { %134 = vmatprep.subr.mxu0 %v147_v0 }
   0xe   :  { %135 = vmatpush3.msra.mxu0 %v17_v9 }
   0xf   :  { %136 = vmatprep.subr.mxu0 %v147_v0 }
  0x10   :  { %137 = vmatpush3.msra.mxu0 %v16_v10 }
  0x11   :  { %138 = vmatprep.subr.mxu0 %v147_v0 }
  0x12   :  { %139 = vmatpush3.msra.mxu0 %v15_v11 }
  0x13   :  { %141 = vmatmul.mubr.msk.f32.vlgmr.msra.gmra.mxu0 %vm30_vm1, %v14_v12 }
  0x7e   :  { %v28_v13 = vpop.permute.xlu0 %27 }
  0xd3   :  { %v100_v14 = vpop.f32.mrf.mxu0 }
  0xd4   :  { %v101_v15 = vadd.f32 %v100_v14, %v28_v13 }
  0xd5   :  { %v142_v16 = vpop.f32.mrf.mxu0 }
  0xd6   :  { %v104_v17 = vmax.f32 %v101_v15, 0.0 }
  0xd8   :  { %106 = vst.msk [vmem:[%s209_s3] sm:$0x3] %vm105_vm2, %v104_v17 }

// kernel: autoencoder_forward.17
= control target key start
LH: loop header
LB: loop body
LE: loop exit
PB: predicated region body
PF: predicated region fallthrough
CT: control target
= control target key end

     0   :  { %vm9_vm0 = vcmask 27648   ;;  %vm17_vm1 = vcmask 24576   ;;  %s39_s0 = inlined_call_operand.vmem [shape: f32[4,4], index: 0, kind: input, shape index: {}]   ;;  %s40_s1 = inlined_call_operand.vmem [shape: f32[1,4], index: 1, kind: output, shape index: {}]  }
   0x1   :  { %v8_v0 = vld [vmem:[%s39_s0] sm:$0xf] }
   0x2   :  { %v10_v1 = vsel %vm9_vm0, %v8_v0, -inf }
   0x3   :  { %v11_v2 = vrot.slane %v10_v1, 4 }
   0x5   :  { %v12_v3 = vmax.f32 %v10_v1, %v11_v2 }
   0x7   :  { %v13_v4 = vrot.slane %v12_v3, 2 }
   0x9   :  { %v14_v5 = vmax.f32 %v12_v3, %v13_v4 }
   0xb   :  { %v15_v6 = vrot.slane %v14_v5, 1 }
   0xd   :  { %v16_v7 = vmax.f32 %v14_v5, %v15_v6 }
   0xf   :  { %18 = vst.msk [vmem:[%s40_s1] sm:$0x1] %vm17_vm1, %v16_v7 }

// kernel: autoencoder_forward.19
= control target key start
LH: loop header
LB: loop body
LE: loop exit
PB: predicated region body
PF: predicated region fallthrough
CT: control target
= control target key end

     0   :  { %vm27_vm0 = vcmask 1040384   ;;  %v124_v0 = vmov 0.0   ;;  %vm125_vm1 = vmmov 0   ;;  %vm23_vm2 = vcmask 72704   ;;  %s162_s1 = inlined_call_operand.vmem [shape: f32[9,2], index: 1, kind: input, shape index: {}]   ;;  %s163_s0 = inlined_call_operand.vmem [shape: f32[2,9], index: 0, kind: input, shape index: {}]   ;;  %s164_s2 = inlined_call_operand.vmem [shape: f32[2,1], index: 2, kind: input, shape index: {}]   ;;  %s165_s3 = inlined_call_operand.vmem [shape: f32[2,2], index: 3, kind: output, shape index: {}]  }
   0x1   :  { %113 = vmatprep.subr.mxu0 %v124_v0  ;;  %v16_v1 = vld [vmem:[%s162_s1 + $0x8] sm:$0x1]  ;;  %v15_v2 = vld [vmem:[%s162_s1] sm:$0xff]  ;;  %117 = vmatprep.mubr.msk.f32.mxu0 %vm125_vm1, %v124_v0  ;;  %v126_v4 = vmov 0   ;;  %vm102_vm3 = vcmask 9216  }
   0x2   :  { %114 = vmatpush3.msk.msra.mxu0 %vm27_vm0, %v16_v1  ;;  %v14_v3 = vld [vmem:[%s163_s0] sm:$0x3]  ;;  %123 = vset.pattern.permute.xlu0 %v126_v4 }
   0x3   :  { %v17_v5 = vld [vmem:[%s164_s2] sm:$0x3]  ;;  %115 = vmatprep.subr.mxu0 %v124_v0 }
   0x4   :  { %20 = vperm.xlu0 %123, %v17_v5   ;;  %116 = vmatpush3.msra.mxu0 %v15_v2 }
   0x5   :  { %118 = vmatmul.mubr.msk.f32.vlgmr.msra.gmra.mxu0 %vm23_vm2, %v14_v3 }
  0x7f   :  { %v21_v6 = vpop.permute.xlu0 %20 }
  0xc5   :  { %v97_v7 = vpop.f32.mrf.mxu0 }
  0xc6   :  { %v98_v8 = vadd.f32 %v97_v7, %v21_v6 }
  0xc7   :  { %v119_v9 = vpop.f32.mrf.mxu0 }
  0xc8   :  { %v101_v10 = vmax.f32 %v98_v8, 0.0 }
  0xca   :  { %103 = vst.msk [vmem:[%s165_s3] sm:$0x3] %vm102_vm3, %v101_v10 }

// kernel: autoencoder_forward.18
= control target key start
LH: loop header
LB: loop body
LE: loop exit
PB: predicated region body
PF: predicated region fallthrough
CT: control target
= control target key end

     0   :  { %vm34_vm0 = vcmask 1041408   ;;  %v134_v0 = vmov 0.0   ;;  %vm135_vm1 = vmmov 0   ;;  %v136_v4 = vmov 0   ;;  %s175_s1 = inlined_call_operand.vmem [shape: f32[18,2], index: 1, kind: input, shape index: {}]   ;;  %s176_s2 = inlined_call_operand.<no memory space> [shape: f32[1,1], index: 2, kind: input, shape index: {}]   ;;  %s177_s0 = inlined_call_operand.vmem [shape: f32[1,18], index: 0, kind: input, shape index: {}]   ;;  %s178_s3 = inlined_call_operand.vmem [shape: f32[1,2], index: 3, kind: output, shape index: {}]  }
   0x1   :  { %121 = vmatprep.subr.mxu0 %v134_v0  ;;  %v19_v1 = vld [vmem:[%s175_s1 + $0x10] sm:$0x3]  ;;  %v18_v2 = vld [vmem:[%s175_s1 + $0x8] sm:$0xff]  ;;  %127 = vmatprep.mubr.msk.f32.mxu0 %vm135_vm1, %v134_v0  ;;  %v8_v3 = vstv %s176_s2  ;;  %v17_v5 = vld [vmem:[%s175_s1] sm:$0xff]  ;;  %vm30_vm2 = vcmask 146432   ;;  %v26_v8 = vlaneseq  ;;  %vm109_vm3 = vcmask 8192  }
   0x2   :  { %122 = vmatpush3.msk.msra.mxu0 %vm34_vm0, %v19_v1  ;;  %133 = vset.pattern.permute.xlu0 %v136_v4  ;;  %9 = vst [vmem:[#allocation2] sm:$0x1] %v8_v3  ;;  %v16_v6 = vld [vmem:[%s177_s0] sm:$0x1] }
   0x3   :  { %123 = vmatprep.subr.mxu0 %v134_v0  ;;  %v27_v9 = vshrl.u32 %v26_v8, 7 }
   0x4   :  { %124 = vmatpush3.msra.mxu0 %v18_v2 }
   0x5   :  { %125 = vmatprep.subr.mxu0 %v134_v0  ;;  %v28_v10 = vsub.s32 0, %v27_v9 }
   0x6   :  { %126 = vmatpush3.msra.mxu0 %v17_v5 }
   0x7   :  { %128 = vmatmul.mubr.msk.f32.vlgmr.msra.gmra.mxu0 %vm30_vm2, %v16_v6 }
   0x9   :  { %v20_v7 = vld [vmem:[#allocation2] sm:$0x1] }
   0xa   :  { %23 = vperm.xlu0 %133, %v20_v7  }
  0x85   :  { %v24_v11 = vpop.permute.xlu0 %23 }
  0x86   :  { %v29_v12 = vrot.slane %v24_v11, %v28_v10 }
  0xc7   :  { %v104_v13 = vpop.f32.mrf.mxu0 }
  0xc8   :  { %v105_v14 = vadd.f32 %v104_v13, %v29_v12 }
  0xc9   :  { %v129_v15 = vpop.f32.mrf.mxu0 }
  0xca   :  { %v108_v16 = vmax.f32 %v105_v14, 0.0 }
  0xcc   :  { %110 = vst.msk [vmem:[%s178_s3] sm:$0x1] %vm109_vm3, %v108_v16 }

// kernel: autoencoder_forward.20
= control target key start
LH: loop header
LB: loop body
LE: loop exit
PB: predicated region body
PF: predicated region fallthrough
CT: control target
= control target key end

     0   :  { %vm28_vm0 = vcmask 1041408   ;;  %v127_v0 = vmov 0.0   ;;  %vm128_vm1 = vmmov 0   ;;  %v129_v3 = vmov 0   ;;  %s168_s1 = inlined_call_operand.vmem [shape: f32[18,18], index: 1, kind: input, shape index: {}]   ;;  %s169_s2 = inlined_call_operand.vmem [shape: f32[8,1], index: 2, kind: input, shape index: {}]   ;;  %s170_s0 = inlined_call_operand.vmem [shape: f32[8,18], index: 0, kind: input, shape index: {}]   ;;  %s171_s3 = inlined_call_operand.vmem [shape: f32[8,18], index: 3, kind: output, shape index: {}]  }
   0x1   :  { %114 = vmatprep.subr.mxu0 %v127_v0  ;;  %v17_v1 = vld [vmem:[%s168_s1 + $0x10] sm:$0x3]  ;;  %v16_v2 = vld [vmem:[%s168_s1 + $0x8] sm:$0xff]  ;;  %120 = vmatprep.mubr.msk.f32.mxu0 %vm128_vm1, %v127_v0  ;;  %v18_v4 = vld [vmem:[%s169_s2] sm:$0xff]  ;;  %vm24_vm2 = vcmask 146432  }
   0x2   :  { %115 = vmatpush3.msk.msra.mxu0 %vm28_vm0, %v17_v1  ;;  %126 = vset.pattern.permute.xlu0 %v129_v3  ;;  %v15_v5 = vld [vmem:[%s168_s1] sm:$0xff] }
   0x3   :  { %116 = vmatprep.subr.mxu0 %v127_v0  ;;  %21 = vperm.xlu0 %126, %v18_v4   ;;  %v14_v6 = vld [vmem:[%s170_s0] sm:$0xff] }
   0x4   :  { %117 = vmatpush3.msra.mxu0 %v16_v2 }
   0x5   :  { %118 = vmatprep.subr.mxu0 %v127_v0 }
   0x6   :  { %119 = vmatpush3.msra.mxu0 %v15_v5 }
   0x7   :  { %121 = vmatmul.mubr.msk.f32.vlgmr.msra.gmra.mxu0 %vm24_vm2, %v14_v6 }
  0x7e   :  { %v22_v7 = vpop.permute.xlu0 %21 }
  0xc7   :  { %v98_v8 = vpop.f32.mrf.mxu0 }
  0xc8   :  { %v99_v9 = vadd.f32 %v98_v8, %v22_v7 }
  0xc9   :  { %v122_v10 = vpop.f32.mrf.mxu0 }
  0xca   :  { %v102_v11 = vmax.f32 %v99_v9, 0.0 }
  0xcc   :  { %103 = vst.msk [vmem:[%s171_s3] sm:$0xff] %vm24_vm2, %v102_v11 }

// kernel: autoencoder_forward.21
= control target key start
LH: loop header
LB: loop body
LE: loop exit
PB: predicated region body
PF: predicated region fallthrough
CT: control target
= control target key end

     0   :  { %v164_v2 = vmov 0   ;;  %vm37_vm0 = vcmask 588800   ;;  %vm121_vm1 = vcmask 801792   ;;  %s232_s1 = inlined_call_operand.vmem [shape: f32[72,98], index: 1, kind: input, shape index: {}]   ;;  %s233_s0 = inlined_call_operand.vmem [shape: f32[16,72], index: 0, kind: input, shape index: {}]   ;;  %s234_s2 = inlined_call_operand.vmem [shape: f32[16,1], index: 2, kind: input, shape index: {}]   ;;  %s235_s3 = inlined_call_operand.vmem [shape: f32[16,98], index: 3, kind: output, shape index: {}]  }
   0x1   :  { %v24_v0 = vld [vmem:[%s232_s1 + $0x40] sm:$0xff]  ;;  %v23_v1 = vld [vmem:[%s232_s1 + $0x38] sm:$0xff]  ;;  %163 = vset.pattern.permute.xlu0 %v164_v2  ;;  %v22_v3 = vld [vmem:[%s232_s1 + $0x30] sm:$0xff] }
   0x2   :  { %141 = vmatprep.subr.mxu0 %v24_v0  ;;  %v14_v4 = vld [vmem:[%s233_s0] sm:$0xff]  ;;  %v21_v6 = vld [vmem:[%s232_s1 + $0x28] sm:$0xff]  ;;  %v19_v9 = vld [vmem:[%s232_s1 + $0x18] sm:$0xff] }
   0x3   :  { %142 = vmatpush3.msra.mxu0 %v24_v0  ;;  %v25_v5 = vld [vmem:[%s234_s2] sm:$0xff]  ;;  %159 = vmatprep.mubr.msk.f32.mxu0 %vm37_vm0, %v14_v4  ;;  %v26_v8 = vld [vmem:[%s234_s2 + $0x8] sm:$0xff]  ;;  %v18_v10 = vld [vmem:[%s232_s1 + $0x10] sm:$0xff] }
   0x4   :  { %143 = vmatprep.subr.mxu0 %v23_v1  ;;  %29 = vperm.xlu0 %163, %v25_v5   ;;  %v20_v7 = vld [vmem:[%s232_s1 + $0x20] sm:$0xff]  ;;  %v17_v11 = vld [vmem:[%s232_s1 + $0x8] sm:$0xff] }
   0x5   :  { %144 = vmatpush3.msra.mxu0 %v23_v1  ;;  %v16_v12 = vld [vmem:[%s232_s1] sm:$0xff]  ;;  %v15_v13 = vld [vmem:[%s233_s0 + $0x8] sm:$0xff] }
   0x6   :  { %145 = vmatprep.subr.mxu0 %v22_v3 }
   0x7   :  { %146 = vmatpush3.msra.mxu0 %v22_v3 }
   0x8   :  { %147 = vmatprep.subr.mxu0 %v21_v6  ;;  %34 = vperm.xlu0 %163, %v26_v8  }
   0x9   :  { %148 = vmatpush3.msra.mxu0 %v21_v6 }
   0xa   :  { %149 = vmatprep.subr.mxu0 %v20_v7 }
   0xb   :  { %150 = vmatpush3.msra.mxu0 %v20_v7 }
   0xc   :  { %151 = vmatprep.subr.mxu0 %v19_v9 }
   0xd   :  { %152 = vmatpush3.msra.mxu0 %v19_v9 }
   0xe   :  { %153 = vmatprep.subr.mxu0 %v18_v10 }
   0xf   :  { %154 = vmatpush3.msra.mxu0 %v18_v10 }
  0x10   :  { %155 = vmatprep.subr.mxu0 %v17_v11 }
  0x11   :  { %156 = vmatpush3.msra.mxu0 %v17_v11 }
  0x12   :  { %157 = vmatprep.subr.mxu0 %v16_v12 }
  0x13   :  { %158 = vmatpush3.msra.mxu0 %v16_v12 }
  0x14   :  { %160 = vmatmul.mubr.msk.f32.vlgmr.msra.gmra.mxu0 %vm37_vm0, %v15_v13 }
  0x7f   :  { %v30_v14 = vpop.permute.xlu0 %29 }
  0x83   :  { %v35_v15 = vpop.permute.xlu0 %34 }
  0xd4   :  { %v161_v16 = vpop.f32.mrf.mxu0 }
  0xd5   :  { %v116_v17 = vadd.f32 %v161_v16, %v35_v15 }
  0xd6   :  { %v110_v18 = vpop.f32.mrf.mxu0 }
  0xd7   :  { %v120_v19 = vmax.f32 %v116_v17, 0.0  ;;  %v111_v20 = vadd.f32 %v110_v18, %v30_v14 }
  0xd9   :  { %123 = vst.msk [vmem:[%s235_s3 + $0x8] sm:$0xff] %vm121_vm1, %v120_v19  ;;  %v119_v21 = vmax.f32 %v111_v20, 0.0 }
  0xdb   :  { %122 = vst.msk [vmem:[%s235_s3] sm:$0xff] %vm121_vm1, %v119_v21 }

// kernel: autoencoder_forward.22
= control target key start
LH: loop header
LB: loop body
LE: loop exit
PB: predicated region body
PF: predicated region fallthrough
CT: control target
= control target key end

     0   :  { %v461_v3 = vmov 0   ;;  %vm148_vm0 = vcmask 130048   ;;  %vm448_vm1 = vcmask 932864   ;;  %s925_s1 = inlined_call_operand.vmem [shape: f32[144,882], index: 1, kind: input, shape index: {}]   ;;  %s926_s0 = inlined_call_operand.vmem [shape: f32[8,144], index: 0, kind: input, shape index: {}]   ;;  %s927_s2 = inlined_call_operand.vmem [shape: f32[8,1], index: 2, kind: input, shape index: {}]   ;;  %s928_s3 = inlined_call_operand.vmem [shape: f32[8,882], index: 3, kind: output, shape index: {}]  }
   0x1   :  { %v122_v0 = vld [vmem:[%s925_s1 + $0x350] sm:$0xff]  ;;  %v124_v1 = vld [vmem:[%s925_s1 + $0x360] sm:$0xff]  ;;  %v121_v2 = vld [vmem:[%s925_s1 + $0x348] sm:$0xff]  ;;  %460 = vset.pattern.permute.xlu0 %v461_v3 }
   0x2   :  { %152 = vmatprep.subr.mxu0 %v122_v0  ;;  %223 = vmatprep.subr.mxu1 %v124_v1  ;;  %v123_v4 = vld [vmem:[%s925_s1 + $0x358] sm:$0xff]  ;;  %v117_v6 = vld [vmem:[%s925_s1 + $0x328] sm:$0xff]  ;;  %v114_v7 = vld [vmem:[%s925_s1 + $0x310] sm:$0xff] }
   0x3   :  { %v115_v5 = vld [vmem:[%s925_s1 + $0x318] sm:$0xff]  ;;  %153 = vmatpush1.msra.mxu0 %v121_v2  ;;  %224 = vmatpush1.msra.mxu1 %v123_v4  ;;  %v116_v8 = vld [vmem:[%s925_s1 + $0x320] sm:$0xff]  ;;  %v110_v10 = vld [vmem:[%s925_s1 + $0x2f0] sm:$0xff] }
   0x4   :  { %v108_v9 = vld [vmem:[%s925_s1 + $0x2e0] sm:$0xff]  ;;  %154 = vmatprep.subr.mxu0 %v115_v5  ;;  %225 = vmatprep.subr.mxu1 %v117_v6  ;;  %v107_v11 = vld [vmem:[%s925_s1 + $0x2d8] sm:$0xff]  ;;  %v109_v12 = vld [vmem:[%s925_s1 + $0x2e8] sm:$0xff] }
   0x5   :  { %155 = vmatpush1.msra.mxu0 %v114_v7  ;;  %226 = vmatpush1.msra.mxu1 %v116_v8  ;;  %v101_v13 = vld [vmem:[%s925_s1 + $0x2a8] sm:$0xff]  ;;  %v103_v14 = vld [vmem:[%s925_s1 + $0x2b8] sm:$0xff]  ;;  %v100_v15 = vld [vmem:[%s925_s1 + $0x2a0] sm:$0xff] }
   0x6   :  { %156 = vmatprep.subr.mxu0 %v108_v9  ;;  %227 = vmatprep.subr.mxu1 %v110_v10  ;;  %v102_v16 = vld [vmem:[%s925_s1 + $0x2b0] sm:$0xff]  ;;  %v96_v18 = vld [vmem:[%s925_s1 + $0x280] sm:$0xff]  ;;  %v93_v19 = vld [vmem:[%s925_s1 + $0x268] sm:$0xff] }
   0x7   :  { %157 = vmatpush1.msra.mxu0 %v107_v11  ;;  %228 = vmatpush1.msra.mxu1 %v109_v12  ;;  %v94_v17 = vld [vmem:[%s925_s1 + $0x270] sm:$0xff]  ;;  %v95_v20 = vld [vmem:[%s925_s1 + $0x278] sm:$0xff]  ;;  %v89_v22 = vld [vmem:[%s925_s1 + $0x248] sm:$0xff] }
   0x8   :  { %158 = vmatprep.subr.mxu0 %v101_v13  ;;  %229 = vmatprep.subr.mxu1 %v103_v14  ;;  %v87_v21 = vld [vmem:[%s925_s1 + $0x238] sm:$0xff]  ;;  %v86_v23 = vld [vmem:[%s925_s1 + $0x230] sm:$0xff]  ;;  %v88_v24 = vld [vmem:[%s925_s1 + $0x240] sm:$0xff] }
   0x9   :  { %159 = vmatpush1.msra.mxu0 %v100_v15  ;;  %230 = vmatpush1.msra.mxu1 %v102_v16  ;;  %v80_v25 = vld [vmem:[%s925_s1 + $0x200] sm:$0xff]  ;;  %v82_v26 = vld [vmem:[%s925_s1 + $0x210] sm:$0xff]  ;;  %v79_v27 = vld [vmem:[%s925_s1 + $0x1f8] sm:$0xff]  ;;  %v462_v15 = vmov 0.0  }
   0xa   :  { %160 = vmatprep.subr.mxu0 %v94_v17  ;;  %231 = vmatprep.subr.mxu1 %v96_v18  ;;  %v81_v28 = vld [vmem:[%s925_s1 + $0x208] sm:$0xff]  ;;  %v75_v30 = vld [vmem:[%s925_s1 + $0x1d8] sm:$0xff]  ;;  %v72_v31 = vld [vmem:[%s925_s1 + $0x1c0] sm:$0xff] }
   0xb   :  { %161 = vmatpush1.msra.mxu0 %v93_v19  ;;  %232 = vmatpush1.msra.mxu1 %v95_v20  ;;  %v73_v29 = vld [vmem:[%s925_s1 + $0x1c8] sm:$0xff]  ;;  %v74_v32 = vld [vmem:[%s925_s1 + $0x1d0] sm:$0xff]  ;;  %v68_v34 = vld [vmem:[%s925_s1 + $0x1a0] sm:$0xff] }
   0xc   :  { %162 = vmatprep.subr.mxu0 %v87_v21  ;;  %233 = vmatprep.subr.mxu1 %v89_v22  ;;  %v66_v33 = vld [vmem:[%s925_s1 + $0x190] sm:$0xff]  ;;  %v65_v35 = vld [vmem:[%s925_s1 + $0x188] sm:$0xff]  ;;  %v67_v36 = vld [vmem:[%s925_s1 + $0x198] sm:$0xff] }
   0xd   :  { %163 = vmatpush1.msra.mxu0 %v86_v23  ;;  %234 = vmatpush1.msra.mxu1 %v88_v24  ;;  %v59_v37 = vld [vmem:[%s925_s1 + $0x158] sm:$0xff]  ;;  %v61_v38 = vld [vmem:[%s925_s1 + $0x168] sm:$0xff]  ;;  %v58_v39 = vld [vmem:[%s925_s1 + $0x150] sm:$0xff] }
   0xe   :  { %164 = vmatprep.subr.mxu0 %v80_v25  ;;  %235 = vmatprep.subr.mxu1 %v82_v26  ;;  %v60_v40 = vld [vmem:[%s925_s1 + $0x160] sm:$0xff]  ;;  %v54_v42 = vld [vmem:[%s925_s1 + $0x130] sm:$0xff]  ;;  %v51_v43 = vld [vmem:[%s925_s1 + $0x118] sm:$0xff] }
   0xf   :  { %165 = vmatpush1.msra.mxu0 %v79_v27  ;;  %236 = vmatpush1.msra.mxu1 %v81_v28  ;;  %v52_v41 = vld [vmem:[%s925_s1 + $0x120] sm:$0xff]  ;;  %v53_v44 = vld [vmem:[%s925_s1 + $0x128] sm:$0xff]  ;;  %v47_v46 = vld [vmem:[%s925_s1 + $0xf8] sm:$0xff] }
  0x10   :  { %166 = vmatprep.subr.mxu0 %v73_v29  ;;  %237 = vmatprep.subr.mxu1 %v75_v30  ;;  %v45_v45 = vld [vmem:[%s925_s1 + $0xe8] sm:$0xff]  ;;  %v44_v47 = vld [vmem:[%s925_s1 + $0xe0] sm:$0xff]  ;;  %v46_v48 = vld [vmem:[%s925_s1 + $0xf0] sm:$0xff] }
  0x11   :  { %167 = vmatpush1.msra.mxu0 %v72_v31  ;;  %238 = vmatpush1.msra.mxu1 %v74_v32  ;;  %v38_v49 = vld [vmem:[%s925_s1 + $0xb0] sm:$0xff]  ;;  %v40_v50 = vld [vmem:[%s925_s1 + $0xc0] sm:$0xff]  ;;  %v37_v51 = vld [vmem:[%s925_s1 + $0xa8] sm:$0xff] }
  0x12   :  { %168 = vmatprep.subr.mxu0 %v66_v33  ;;  %239 = vmatprep.subr.mxu1 %v68_v34  ;;  %v39_v52 = vld [vmem:[%s925_s1 + $0xb8] sm:$0xff]  ;;  %v33_v54 = vld [vmem:[%s925_s1 + $0x88] sm:$0xff]  ;;  %v30_v55 = vld [vmem:[%s925_s1 + $0x70] sm:$0xff] }
  0x13   :  { %169 = vmatpush1.msra.mxu0 %v65_v35  ;;  %240 = vmatpush1.msra.mxu1 %v67_v36  ;;  %v31_v53 = vld [vmem:[%s925_s1 + $0x78] sm:$0xff]  ;;  %v32_v56 = vld [vmem:[%s925_s1 + $0x80] sm:$0xff]  ;;  %v26_v58 = vld [vmem:[%s925_s1 + $0x50] sm:$0xff] }
  0x14   :  { %170 = vmatprep.subr.mxu0 %v59_v37  ;;  %241 = vmatprep.subr.mxu1 %v61_v38  ;;  %v24_v57 = vld [vmem:[%s925_s1 + $0x40] sm:$0xff]  ;;  %v23_v59 = vld [vmem:[%s925_s1 + $0x38] sm:$0xff]  ;;  %v25_v60 = vld [vmem:[%s925_s1 + $0x48] sm:$0xff] }
  0x15   :  { %171 = vmatpush1.msra.mxu0 %v58_v39  ;;  %242 = vmatpush1.msra.mxu1 %v60_v40  ;;  %v17_v61 = vld [vmem:[%s925_s1 + $0x8] sm:$0xff]  ;;  %v19_v62 = vld [vmem:[%s925_s1 + $0x18] sm:$0xff]  ;;  %v16_v63 = vld [vmem:[%s925_s1] sm:$0xff] }
  0x16   :  { %172 = vmatprep.subr.mxu0 %v52_v41  ;;  %243 = vmatprep.subr.mxu1 %v54_v42  ;;  %v18_v0 = vld [vmem:[%s925_s1 + $0x10] sm:$0xff]  ;;  %v136_v1 = vld [vmem:[%s925_s1 + $0x3c0] sm:$0xff]  ;;  %v135_v3 = vld [vmem:[%s925_s1 + $0x3b8] sm:$0xff] }
  0x17   :  { %173 = vmatpush1.msra.mxu0 %v51_v43  ;;  %244 = vmatpush1.msra.mxu1 %v53_v44  ;;  %v138_v2 = vld [vmem:[%s925_s1 + $0x3d0] sm:$0xff]  ;;  %v137_v4 = vld [vmem:[%s925_s1 + $0x3c8] sm:$0xff]  ;;  %v131_v6 = vld [vmem:[%s925_s1 + $0x398] sm:$0xff] }
  0x18   :  { %174 = vmatprep.subr.mxu0 %v45_v45  ;;  %245 = vmatprep.subr.mxu1 %v47_v46  ;;  %v129_v5 = vld [vmem:[%s925_s1 + $0x388] sm:$0xff]  ;;  %v128_v7 = vld [vmem:[%s925_s1 + $0x380] sm:$0xff]  ;;  %v130_v9 = vld [vmem:[%s925_s1 + $0x390] sm:$0xff] }
  0x19   :  { %175 = vmatpush1.msra.mxu0 %v44_v47  ;;  %246 = vmatpush1.msra.mxu1 %v46_v48  ;;  %v699_v8 = vld [vmem:[%s926_s0 + $0x8] sm:$0xff]  ;;  %v707_v10 = vld [vmem:[%s926_s0] sm:$0xff]  ;;  %v126_v11 = vld [vmem:[%s925_s1 + $0x370] sm:$0xff] }
  0x1a   :  { %176 = vmatprep.subr.mxu0 %v38_v49  ;;  %247 = vmatprep.subr.mxu1 %v40_v50  ;;  %v125_v12 = vld [vmem:[%s925_s1 + $0x368] sm:$0xff]  ;;  %v127_v13 = vld [vmem:[%s925_s1 + $0x378] sm:$0xff]  ;;  %v118_v16 = vld [vmem:[%s925_s1 + $0x330] sm:$0xff] }
  0x1b   :  { %177 = vmatpush1.msra.mxu0 %v37_v51  ;;  %248 = vmatpush1.msra.mxu1 %v39_v52  ;;  %v119_v14 = vld [vmem:[%s925_s1 + $0x338] sm:$0xff]  ;;  %v120_v17 = vld [vmem:[%s925_s1 + $0x340] sm:$0xff]  ;;  %v113_v20 = vld [vmem:[%s925_s1 + $0x308] sm:$0xff] }
  0x1c   :  { %178 = vmatprep.subr.mxu0 %v31_v53  ;;  %249 = vmatprep.subr.mxu1 %v33_v54  ;;  %v112_v18 = vld [vmem:[%s925_s1 + $0x300] sm:$0xff]  ;;  %v111_v19 = vld [vmem:[%s925_s1 + $0x2f8] sm:$0xff]  ;;  %v105_v21 = vld [vmem:[%s925_s1 + $0x2c8] sm:$0xff] }
  0x1d   :  { %179 = vmatpush1.msra.mxu0 %v30_v55  ;;  %250 = vmatpush1.msra.mxu1 %v32_v56  ;;  %v104_v22 = vld [vmem:[%s925_s1 + $0x2c0] sm:$0xff]  ;;  %v106_v23 = vld [vmem:[%s925_s1 + $0x2d0] sm:$0xff]  ;;  %v97_v25 = vld [vmem:[%s925_s1 + $0x288] sm:$0xff] }
  0x1e   :  { %180 = vmatprep.subr.mxu0 %v24_v57  ;;  %251 = vmatprep.subr.mxu1 %v26_v58  ;;  %v98_v24 = vld [vmem:[%s925_s1 + $0x290] sm:$0xff]  ;;  %v99_v26 = vld [vmem:[%s925_s1 + $0x298] sm:$0xff]  ;;  %v92_v29 = vld [vmem:[%s925_s1 + $0x260] sm:$0xff] }
  0x1f   :  { %181 = vmatpush1.msra.mxu0 %v23_v59  ;;  %252 = vmatpush1.msra.mxu1 %v25_v60  ;;  %v91_v27 = vld [vmem:[%s925_s1 + $0x258] sm:$0xff]  ;;  %v90_v28 = vld [vmem:[%s925_s1 + $0x250] sm:$0xff]  ;;  %v84_v30 = vld [vmem:[%s925_s1 + $0x220] sm:$0xff] }
  0x20   :  { %182 = vmatprep.subr.mxu0 %v17_v61  ;;  %253 = vmatprep.subr.mxu1 %v19_v62  ;;  %v83_v31 = vld [vmem:[%s925_s1 + $0x218] sm:$0xff]  ;;  %v85_v32 = vld [vmem:[%s925_s1 + $0x228] sm:$0xff]  ;;  %v76_v34 = vld [vmem:[%s925_s1 + $0x1e0] sm:$0xff] }
  0x21   :  { %183 = vmatpush1.msra.mxu0 %v16_v63  ;;  %254 = vmatpush1.msra.mxu1 %v18_v0  ;;  %v77_v33 = vld [vmem:[%s925_s1 + $0x1e8] sm:$0xff]  ;;  %v78_v35 = vld [vmem:[%s925_s1 + $0x1f0] sm:$0xff]  ;;  %v71_v38 = vld [vmem:[%s925_s1 + $0x1b8] sm:$0xff] }
  0x22   :  { %212 = vmatprep.subr.mxu0 %v136_v1  ;;  %283 = vmatprep.subr.mxu1 %v138_v2  ;;  %v70_v36 = vld [vmem:[%s925_s1 + $0x1b0] sm:$0xff]  ;;  %v69_v37 = vld [vmem:[%s925_s1 + $0x1a8] sm:$0xff]  ;;  %v63_v39 = vld [vmem:[%s925_s1 + $0x178] sm:$0xff] }
  0x23   :  { %213 = vmatpush2.msra.mxu0 %v135_v3  ;;  %284 = vmatpush2.msra.mxu1 %v137_v4  ;;  %v62_v40 = vld [vmem:[%s925_s1 + $0x170] sm:$0xff]  ;;  %v64_v41 = vld [vmem:[%s925_s1 + $0x180] sm:$0xff]  ;;  %v55_v43 = vld [vmem:[%s925_s1 + $0x138] sm:$0xff] }
  0x24   :  { %214 = vmatprep.subr.mxu0 %v129_v5  ;;  %285 = vmatprep.subr.mxu1 %v131_v6  ;;  %v56_v42 = vld [vmem:[%s925_s1 + $0x140] sm:$0xff]  ;;  %v57_v44 = vld [vmem:[%s925_s1 + $0x148] sm:$0xff]  ;;  %v50_v47 = vld [vmem:[%s925_s1 + $0x110] sm:$0xff] }
  0x25   :  { %215 = vmatpush2.msra.mxu0 %v128_v7  ;;  %454 = vmatprep.mubr.msk.f32.mxu0 %vm148_vm0, %v699_v8  ;;  %v49_v45 = vld [vmem:[%s925_s1 + $0x108] sm:$0xff]  ;;  %v48_v46 = vld [vmem:[%s925_s1 + $0x100] sm:$0xff]  ;;  %v42_v48 = vld [vmem:[%s925_s1 + $0xd0] sm:$0xff] }
  0x26   :  { %286 = vmatpush2.msra.mxu1 %v130_v9  ;;  %217 = vmatmul.mubr.f32.vlgmr.msra.gmra.mxu0 %v707_v10  ;;  %v41_v49 = vld [vmem:[%s925_s1 + $0xc8] sm:$0xff]  ;;  %v43_v50 = vld [vmem:[%s925_s1 + $0xd8] sm:$0xff]  ;;  %v34_v52 = vld [vmem:[%s925_s1 + $0x90] sm:$0xff] }
  0x27   :  { %455 = vmatprep.mubr.msk.f32.mxu1 %vm148_vm0, %v699_v8  ;;  %294 = vmatprep.subr.mxu0 %v126_v11  ;;  %v35_v51 = vld [vmem:[%s925_s1 + $0x98] sm:$0xff]  ;;  %v36_v53 = vld [vmem:[%s925_s1 + $0xa0] sm:$0xff]  ;;  %v29_v56 = vld [vmem:[%s925_s1 + $0x68] sm:$0xff] }
  0x28   :  { %365 = vmatprep.subr.mxu1 %v462_v15  ;;  %288 = vmatmul.mubr.f32.vlgmr.msra.gmra.mxu1 %v707_v10  ;;  %v28_v54 = vld [vmem:[%s925_s1 + $0x60] sm:$0xff]  ;;  %v27_v55 = vld [vmem:[%s925_s1 + $0x58] sm:$0xff]  ;;  %v21_v57 = vld [vmem:[%s925_s1 + $0x28] sm:$0xff] }
  0x29   :  { %295 = vmatpush1.msra.mxu0 %v125_v12  ;;  %366 = vmatpush1.msra.mxu1 %v127_v13  ;;  %v20_v58 = vld [vmem:[%s925_s1 + $0x20] sm:$0xff]  ;;  %v22_v59 = vld [vmem:[%s925_s1 + $0x30] sm:$0xff]  ;;  %v139_v61 = vld [vmem:[%s925_s1 + $0x3d8] sm:$0xff] }
  0x2a   :  { %296 = vmatprep.subr.mxu0 %v119_v14  ;;  %367 = vmatprep.subr.mxu1 %v462_v15  ;;  %v140_v60 = vld [vmem:[%s925_s1 + $0x3e0] sm:$0xff]  ;;  %v141_v62 = vld [vmem:[%s925_s1 + $0x3e8] sm:$0xff]  ;;  %v134_v1 = vld [vmem:[%s925_s1 + $0x3b0] sm:$0xff] }
  0x2b   :  { %297 = vmatpush1.msra.mxu0 %v118_v16  ;;  %368 = vmatpush1.msra.mxu1 %v120_v17  ;;  %v133_v63 = vld [vmem:[%s925_s1 + $0x3a8] sm:$0xff]  ;;  %v132_v0 = vld [vmem:[%s925_s1 + $0x3a0] sm:$0xff] }
  0x2c   :  { %298 = vmatprep.subr.mxu0 %v112_v18  ;;  %369 = vmatprep.subr.mxu1 %v462_v15  ;;  %v142_v2 = vld [vmem:[%s927_s2] sm:$0xff] }
  0x2d   :  { %299 = vmatpush1.msra.mxu0 %v111_v19  ;;  %370 = vmatpush1.msra.mxu1 %v113_v20 }
  0x2e   :  { %300 = vmatprep.subr.mxu0 %v105_v21  ;;  %371 = vmatprep.subr.mxu1 %v462_v15 }
  0x2f   :  { %301 = vmatpush1.msra.mxu0 %v104_v22  ;;  %372 = vmatpush1.msra.mxu1 %v106_v23 }
  0x30   :  { %302 = vmatprep.subr.mxu0 %v98_v24  ;;  %373 = vmatprep.subr.mxu1 %v462_v15 }
  0x31   :  { %303 = vmatpush1.msra.mxu0 %v97_v25  ;;  %374 = vmatpush1.msra.mxu1 %v99_v26 }
  0x32   :  { %304 = vmatprep.subr.mxu0 %v91_v27  ;;  %375 = vmatprep.subr.mxu1 %v462_v15 }
  0x33   :  { %305 = vmatpush1.msra.mxu0 %v90_v28  ;;  %376 = vmatpush1.msra.mxu1 %v92_v29 }
  0x34   :  { %306 = vmatprep.subr.mxu0 %v84_v30  ;;  %377 = vmatprep.subr.mxu1 %v462_v15 }
  0x35   :  { %307 = vmatpush1.msra.mxu0 %v83_v31  ;;  %378 = vmatpush1.msra.mxu1 %v85_v32 }
  0x36   :  { %308 = vmatprep.subr.mxu0 %v77_v33  ;;  %379 = vmatprep.subr.mxu1 %v462_v15 }
  0x37   :  { %309 = vmatpush1.msra.mxu0 %v76_v34  ;;  %380 = vmatpush1.msra.mxu1 %v78_v35 }
  0x38   :  { %310 = vmatprep.subr.mxu0 %v70_v36  ;;  %381 = vmatprep.subr.mxu1 %v462_v15 }
  0x39   :  { %311 = vmatpush1.msra.mxu0 %v69_v37  ;;  %382 = vmatpush1.msra.mxu1 %v71_v38 }
  0x3a   :  { %312 = vmatprep.subr.mxu0 %v63_v39  ;;  %383 = vmatprep.subr.mxu1 %v462_v15 }
  0x3b   :  { %313 = vmatpush1.msra.mxu0 %v62_v40  ;;  %384 = vmatpush1.msra.mxu1 %v64_v41 }
  0x3c   :  { %314 = vmatprep.subr.mxu0 %v56_v42  ;;  %385 = vmatprep.subr.mxu1 %v462_v15 }
  0x3d   :  { %315 = vmatpush1.msra.mxu0 %v55_v43  ;;  %386 = vmatpush1.msra.mxu1 %v57_v44 }
  0x3e   :  { %316 = vmatprep.subr.mxu0 %v49_v45  ;;  %387 = vmatprep.subr.mxu1 %v462_v15 }
  0x3f   :  { %317 = vmatpush1.msra.mxu0 %v48_v46  ;;  %388 = vmatpush1.msra.mxu1 %v50_v47 }
  0x40   :  { %318 = vmatprep.subr.mxu0 %v42_v48  ;;  %389 = vmatprep.subr.mxu1 %v462_v15 }
  0x41   :  { %319 = vmatpush1.msra.mxu0 %v41_v49  ;;  %390 = vmatpush1.msra.mxu1 %v43_v50 }
  0x42   :  { %320 = vmatprep.subr.mxu0 %v35_v51  ;;  %391 = vmatprep.subr.mxu1 %v462_v15 }
  0x43   :  { %321 = vmatpush1.msra.mxu0 %v34_v52  ;;  %392 = vmatpush1.msra.mxu1 %v36_v53 }
  0x44   :  { %322 = vmatprep.subr.mxu0 %v28_v54  ;;  %393 = vmatprep.subr.mxu1 %v462_v15 }
  0x45   :  { %323 = vmatpush1.msra.mxu0 %v27_v55  ;;  %394 = vmatpush1.msra.mxu1 %v29_v56 }
  0x46   :  { %324 = vmatprep.subr.mxu0 %v21_v57  ;;  %395 = vmatprep.subr.mxu1 %v462_v15 }
  0x47   :  { %325 = vmatpush1.msra.mxu0 %v20_v58  ;;  %396 = vmatpush1.msra.mxu1 %v22_v59 }
  0x48   :  { %354 = vmatprep.subr.mxu0 %v140_v60  ;;  %425 = vmatprep.subr.mxu1 %v462_v15 }
  0x49   :  { %355 = vmatpush2.msra.mxu0 %v139_v61  ;;  %426 = vmatpush2.msra.mxu1 %v141_v62 }
  0x4a   :  { %356 = vmatprep.subr.mxu0 %v133_v63  ;;  %427 = vmatprep.subr.mxu1 %v462_v15 }
  0x4b   :  { %357 = vmatpush2.msra.mxu0 %v132_v0  ;;  %456 = vmatprep.mubr.msk.f32.mxu0 %vm148_vm0, %v699_v8 }
  0x4c   :  { %428 = vmatpush2.msra.mxu1 %v134_v1  ;;  %457 = vmatprep.mubr.msk.f32.mxu1 %vm148_vm0, %v699_v8 }
  0x4d   :  { %359 = vmatmul.mubr.f32.vlgmr.msra.gmra.mxu0 %v707_v10  ;;  %430 = vmatmul.mubr.f32.vlgmr.msra.gmra.mxu1 %v707_v10 }
  0x4e   :  { %145 = vperm.xlu0 %460, %v142_v2  }
  0xc9   :  { %v146_v3 = vpop.permute.xlu0 %145 }
  0xe6   :  { %v218_v4 = vpop.f32.mrf.mxu0 }
  0xe7   :  { %v219_v5 = vadd.f32 %v218_v4, %v146_v3 }
  0xe8   :  { %v289_v6 = vpop.f32.mrf.mxu1  ;;  %v220_v7 = vpop.f32.mrf.mxu0 }
  0xe9   :  { %v435_v9 = vmax.f32 %v219_v5, 0.0  ;;  %v290_v11 = vadd.f32 %v289_v6, %v146_v3  ;;  %v221_v12 = vadd.f32 %v220_v7, %v146_v3 }
  0xea   :  { %v291_v13 = vpop.f32.mrf.mxu1 }
  0xeb   :  { %442 = vst [vmem:[%s928_s3] sm:$0xff] %v435_v9  ;;  %v437_v14 = vmax.f32 %v290_v11, 0.0  ;;  %v436_v8 = vmax.f32 %v221_v12, 0.0  ;;  %v292_v15 = vadd.f32 %v291_v13, %v146_v3 }
  0xed   :  { %444 = vst [vmem:[%s928_s3 + $0x10] sm:$0xff] %v437_v14  ;;  %443 = vst [vmem:[%s928_s3 + $0x8] sm:$0xff] %v436_v8  ;;  %v438_v10 = vmax.f32 %v292_v15, 0.0 }
  0xef   :  { %445 = vst [vmem:[%s928_s3 + $0x18] sm:$0xff] %v438_v10 }
 0x10d   :  { %v360_v16 = vpop.f32.mrf.mxu0  ;;  %v431_v17 = vpop.f32.mrf.mxu1 }
 0x10e   :  { %v361_v18 = vadd.f32 %v360_v16, %v146_v3  ;;  %v432_v19 = vadd.f32 %v431_v17, %v146_v3 }
 0x10f   :  { %v362_v20 = vpop.f32.mrf.mxu0  ;;  %v433_v21 = vpop.f32.mrf.mxu1 }
 0x110   :  { %v439_v22 = vmax.f32 %v361_v18, 0.0  ;;  %v441_v23 = vmax.f32 %v432_v19, 0.0  ;;  %v363_v24 = vadd.f32 %v362_v20, %v146_v3 }
 0x112   :  { %446 = vst [vmem:[%s928_s3 + $0x20] sm:$0xff] %v439_v22  ;;  %449 = vst.msk [vmem:[%s928_s3 + $0x30] sm:$0xff] %vm448_vm1, %v441_v23  ;;  %v440_v25 = vmax.f32 %v363_v24, 0.0 }
 0x114   :  { %447 = vst [vmem:[%s928_s3 + $0x28] sm:$0xff] %v440_v25 }

// kernel: autoencoder_forward.23
= control target key start
LH: loop header
LB: loop body
LE: loop exit
PB: predicated region body
PF: predicated region fallthrough
CT: control target
= control target key end

     0   :  { %v4047_v3 = vmov 0.0   ;;  %vm594_vm0 = vcmask 588800   ;;  %vm4050_vm1 = vmmov 0   ;;  %s6040_s1 = inlined_call_operand.vmem [shape: f32[72,7938], index: 1, kind: input, shape index: {}]   ;;  %s6041_s2 = inlined_call_operand.<no memory space> [shape: f32[1,1], index: 2, kind: input, shape index: {}]   ;;  %s6042_s0 = inlined_call_operand.vmem [shape: f32[1,72], index: 0, kind: input, shape index: {}]   ;;  %s6043_s3 = inlined_call_operand.vmem [shape: f32[1,7938], index: 3, kind: output, shape index: {}]  }
   0x1   :  { %v522_v0 = vld [vmem:[%s6040_s1 + $0xfc8] sm:$0xff]  ;;  %v524_v1 = vld [vmem:[%s6040_s1 + $0xfd8] sm:$0xff]  ;;  %v521_v2 = vld [vmem:[%s6040_s1 + $0xfc0] sm:$0xff]  ;;  %662 = vmatprep.mubr.f32.mxu0 %v4047_v3  ;;  %733 = vmatprep.mubr.f32.mxu1 %v4047_v3  ;;  %v8_v4 = vstv %s6041_s2 }
   0x2   :  { %612 = vmatprep.subr.mxu0 %v522_v0  ;;  %683 = vmatprep.subr.mxu1 %v524_v1  ;;  %v523_v5 = vld [vmem:[%s6040_s1 + $0xfd0] sm:$0xff]  ;;  %v461_v7 = vld [vmem:[%s6040_s1 + $0xde0] sm:$0xff]  ;;  %9 = vst [vmem:[#allocation2] sm:$0x1] %v8_v4  ;;  %v458_v8 = vld [vmem:[%s6040_s1 + $0xdc8] sm:$0xff] }
   0x3   :  { %v459_v6 = vld [vmem:[%s6040_s1 + $0xdd0] sm:$0xff]  ;;  %613 = vmatpush1.msra.mxu0 %v521_v2  ;;  %684 = vmatpush1.msra.mxu1 %v523_v5  ;;  %v460_v9 = vld [vmem:[%s6040_s1 + $0xdd8] sm:$0xff]  ;;  %v398_v11 = vld [vmem:[%s6040_s1 + $0xbe8] sm:$0xff] }
   0x4   :  { %v396_v10 = vld [vmem:[%s6040_s1 + $0xbd8] sm:$0xff]  ;;  %614 = vmatprep.subr.mxu0 %v459_v6  ;;  %685 = vmatprep.subr.mxu1 %v461_v7  ;;  %v395_v12 = vld [vmem:[%s6040_s1 + $0xbd0] sm:$0xff]  ;;  %v397_v13 = vld [vmem:[%s6040_s1 + $0xbe0] sm:$0xff] }
   0x5   :  { %615 = vmatpush1.msra.mxu0 %v458_v8  ;;  %686 = vmatpush1.msra.mxu1 %v460_v9  ;;  %v333_v14 = vld [vmem:[%s6040_s1 + $0x9e0] sm:$0xff]  ;;  %v335_v15 = vld [vmem:[%s6040_s1 + $0x9f0] sm:$0xff]  ;;  %v332_v16 = vld [vmem:[%s6040_s1 + $0x9d8] sm:$0xff] }
   0x6   :  { %616 = vmatprep.subr.mxu0 %v396_v10  ;;  %687 = vmatprep.subr.mxu1 %v398_v11  ;;  %v334_v17 = vld [vmem:[%s6040_s1 + $0x9e8] sm:$0xff]  ;;  %v272_v19 = vld [vmem:[%s6040_s1 + $0x7f8] sm:$0xff]  ;;  %v269_v20 = vld [vmem:[%s6040_s1 + $0x7e0] sm:$0xff] }
   0x7   :  { %617 = vmatpush1.msra.mxu0 %v395_v12  ;;  %688 = vmatpush1.msra.mxu1 %v397_v13  ;;  %v270_v18 = vld [vmem:[%s6040_s1 + $0x7e8] sm:$0xff]  ;;  %v271_v21 = vld [vmem:[%s6040_s1 + $0x7f0] sm:$0xff]  ;;  %v209_v23 = vld [vmem:[%s6040_s1 + $0x600] sm:$0xff] }
   0x8   :  { %618 = vmatprep.subr.mxu0 %v333_v14  ;;  %689 = vmatprep.subr.mxu1 %v335_v15  ;;  %v207_v22 = vld [vmem:[%s6040_s1 + $0x5f0] sm:$0xff]  ;;  %v206_v24 = vld [vmem:[%s6040_s1 + $0x5e8] sm:$0xff]  ;;  %v208_v25 = vld [vmem:[%s6040_s1 + $0x5f8] sm:$0xff] }
   0x9   :  { %619 = vmatpush1.msra.mxu0 %v332_v16  ;;  %690 = vmatpush1.msra.mxu1 %v334_v17  ;;  %v144_v26 = vld [vmem:[%s6040_s1 + $0x3f8] sm:$0xff]  ;;  %v146_v27 = vld [vmem:[%s6040_s1 + $0x408] sm:$0xff]  ;;  %v143_v28 = vld [vmem:[%s6040_s1 + $0x3f0] sm:$0xff] }
   0xa   :  { %620 = vmatprep.subr.mxu0 %v270_v18  ;;  %691 = vmatprep.subr.mxu1 %v272_v19  ;;  %v145_v29 = vld [vmem:[%s6040_s1 + $0x400] sm:$0xff]  ;;  %v83_v31 = vld [vmem:[%s6040_s1 + $0x210] sm:$0xff]  ;;  %v80_v32 = vld [vmem:[%s6040_s1 + $0x1f8] sm:$0xff] }
   0xb   :  { %621 = vmatpush1.msra.mxu0 %v269_v20  ;;  %692 = vmatpush1.msra.mxu1 %v271_v21  ;;  %v81_v30 = vld [vmem:[%s6040_s1 + $0x200] sm:$0xff]  ;;  %v82_v33 = vld [vmem:[%s6040_s1 + $0x208] sm:$0xff]  ;;  %v20_v35 = vld [vmem:[%s6040_s1 + $0x18] sm:$0xff] }
   0xc   :  { %622 = vmatprep.subr.mxu0 %v207_v22  ;;  %693 = vmatprep.subr.mxu1 %v209_v23  ;;  %v18_v34 = vld [vmem:[%s6040_s1 + $0x8] sm:$0xff]  ;;  %v17_v36 = vld [vmem:[%s6040_s1] sm:$0xff]  ;;  %v19_v37 = vld [vmem:[%s6040_s1 + $0x10] sm:$0xff] }
   0xd   :  { %623 = vmatpush1.msra.mxu0 %v206_v24  ;;  %694 = vmatpush1.msra.mxu1 %v208_v25  ;;  %v4187_v38 = vld [vmem:[%s6042_s0] sm:$0x1]  ;;  %v526_v39 = vld [vmem:[%s6040_s1 + $0xfe8] sm:$0xff]  ;;  %v528_v40 = vld [vmem:[%s6040_s1 + $0xff8] sm:$0xff] }
   0xe   :  { %624 = vmatprep.subr.mxu0 %v144_v26  ;;  %695 = vmatprep.subr.mxu1 %v146_v27  ;;  %v525_v41 = vld [vmem:[%s6040_s1 + $0xfe0] sm:$0xff]  ;;  %v527_v42 = vld [vmem:[%s6040_s1 + $0xff0] sm:$0xff]  ;;  %v462_v45 = vld [vmem:[%s6040_s1 + $0xde8] sm:$0xff] }
   0xf   :  { %625 = vmatpush1.msra.mxu0 %v143_v28  ;;  %696 = vmatpush1.msra.mxu1 %v145_v29  ;;  %v463_v43 = vld [vmem:[%s6040_s1 + $0xdf0] sm:$0xff]  ;;  %v465_v44 = vld [vmem:[%s6040_s1 + $0xe00] sm:$0xff]  ;;  %v464_v46 = vld [vmem:[%s6040_s1 + $0xdf8] sm:$0xff] }
  0x10   :  { %626 = vmatprep.subr.mxu0 %v81_v30  ;;  %697 = vmatprep.subr.mxu1 %v83_v31  ;;  %v400_v47 = vld [vmem:[%s6040_s1 + $0xbf8] sm:$0xff]  ;;  %v402_v48 = vld [vmem:[%s6040_s1 + $0xc08] sm:$0xff]  ;;  %v399_v49 = vld [vmem:[%s6040_s1 + $0xbf0] sm:$0xff] }
  0x11   :  { %627 = vmatpush1.msra.mxu0 %v80_v32  ;;  %698 = vmatpush1.msra.mxu1 %v82_v33  ;;  %v401_v50 = vld [vmem:[%s6040_s1 + $0xc00] sm:$0xff]  ;;  %v339_v52 = vld [vmem:[%s6040_s1 + $0xa10] sm:$0xff]  ;;  %v336_v53 = vld [vmem:[%s6040_s1 + $0x9f8] sm:$0xff] }
  0x12   :  { %628 = vmatprep.subr.mxu0 %v18_v34  ;;  %699 = vmatprep.subr.mxu1 %v20_v35  ;;  %v337_v51 = vld [vmem:[%s6040_s1 + $0xa00] sm:$0xff]  ;;  %v338_v54 = vld [vmem:[%s6040_s1 + $0xa08] sm:$0xff]  ;;  %v276_v56 = vld [vmem:[%s6040_s1 + $0x818] sm:$0xff] }
  0x13   :  { %629 = vmatpush1.msra.mxu0 %v17_v36  ;;  %700 = vmatpush1.msra.mxu1 %v19_v37  ;;  %v274_v55 = vld [vmem:[%s6040_s1 + $0x808] sm:$0xff]  ;;  %v273_v57 = vld [vmem:[%s6040_s1 + $0x800] sm:$0xff]  ;;  %v275_v58 = vld [vmem:[%s6040_s1 + $0x810] sm:$0xff] }
  0x14   :  { %3725 = vmatmul.mubr.msk.f32.vlgmr.msra.gmra.mxu0 %vm594_vm0, %v4187_v38  ;;  %3726 = vmatmul.mubr.msk.f32.vlgmr.msra.gmra.mxu1 %vm594_vm0, %v4187_v38  ;;  %v211_v59 = vld [vmem:[%s6040_s1 + $0x610] sm:$0xff]  ;;  %v213_v60 = vld [vmem:[%s6040_s1 + $0x620] sm:$0xff]  ;;  %v210_v61 = vld [vmem:[%s6040_s1 + $0x608] sm:$0xff] }
  0x15   :  { %754 = vmatprep.subr.mxu0 %v526_v39  ;;  %825 = vmatprep.subr.mxu1 %v528_v40  ;;  %v212_v62 = vld [vmem:[%s6040_s1 + $0x618] sm:$0xff]  ;;  %v150_v0 = vld [vmem:[%s6040_s1 + $0x428] sm:$0xff]  ;;  %v147_v1 = vld [vmem:[%s6040_s1 + $0x410] sm:$0xff] }
  0x16   :  { %755 = vmatpush1.msra.mxu0 %v525_v41  ;;  %826 = vmatpush1.msra.mxu1 %v527_v42  ;;  %v148_v63 = vld [vmem:[%s6040_s1 + $0x418] sm:$0xff]  ;;  %v149_v2 = vld [vmem:[%s6040_s1 + $0x420] sm:$0xff]  ;;  %v87_v5 = vld [vmem:[%s6040_s1 + $0x230] sm:$0xff] }
  0x17   :  { %756 = vmatprep.subr.mxu0 %v463_v43  ;;  %827 = vmatprep.subr.mxu1 %v465_v44  ;;  %v85_v4 = vld [vmem:[%s6040_s1 + $0x220] sm:$0xff]  ;;  %v84_v6 = vld [vmem:[%s6040_s1 + $0x218] sm:$0xff]  ;;  %v86_v7 = vld [vmem:[%s6040_s1 + $0x228] sm:$0xff] }
  0x18   :  { %757 = vmatpush1.msra.mxu0 %v462_v45  ;;  %828 = vmatpush1.msra.mxu1 %v464_v46  ;;  %v22_v8 = vld [vmem:[%s6040_s1 + $0x28] sm:$0xff]  ;;  %v24_v9 = vld [vmem:[%s6040_s1 + $0x38] sm:$0xff]  ;;  %v21_v10 = vld [vmem:[%s6040_s1 + $0x20] sm:$0xff] }
  0x19   :  { %758 = vmatprep.subr.mxu0 %v400_v47  ;;  %829 = vmatprep.subr.mxu1 %v402_v48  ;;  %v23_v11 = vld [vmem:[%s6040_s1 + $0x30] sm:$0xff]  ;;  %v530_v12 = vld [vmem:[%s6040_s1 + $0x1008] sm:$0xff]  ;;  %v532_v13 = vld [vmem:[%s6040_s1 + $0x1018] sm:$0xff] }
  0x1a   :  { %759 = vmatpush1.msra.mxu0 %v399_v49  ;;  %830 = vmatpush1.msra.mxu1 %v401_v50  ;;  %v529_v14 = vld [vmem:[%s6040_s1 + $0x1000] sm:$0xff]  ;;  %v531_v15 = vld [vmem:[%s6040_s1 + $0x1010] sm:$0xff]  ;;  %v466_v18 = vld [vmem:[%s6040_s1 + $0xe08] sm:$0xff] }
  0x1b   :  { %760 = vmatprep.subr.mxu0 %v337_v51  ;;  %831 = vmatprep.subr.mxu1 %v339_v52  ;;  %v467_v16 = vld [vmem:[%s6040_s1 + $0xe10] sm:$0xff]  ;;  %v469_v17 = vld [vmem:[%s6040_s1 + $0xe20] sm:$0xff]  ;;  %v468_v19 = vld [vmem:[%s6040_s1 + $0xe18] sm:$0xff] }
  0x1c   :  { %761 = vmatpush1.msra.mxu0 %v336_v53  ;;  %832 = vmatpush1.msra.mxu1 %v338_v54  ;;  %v404_v20 = vld [vmem:[%s6040_s1 + $0xc18] sm:$0xff]  ;;  %v406_v21 = vld [vmem:[%s6040_s1 + $0xc28] sm:$0xff]  ;;  %v403_v22 = vld [vmem:[%s6040_s1 + $0xc10] sm:$0xff] }
  0x1d   :  { %762 = vmatprep.subr.mxu0 %v274_v55  ;;  %833 = vmatprep.subr.mxu1 %v276_v56  ;;  %v405_v23 = vld [vmem:[%s6040_s1 + $0xc20] sm:$0xff]  ;;  %v343_v25 = vld [vmem:[%s6040_s1 + $0xa30] sm:$0xff]  ;;  %v340_v26 = vld [vmem:[%s6040_s1 + $0xa18] sm:$0xff] }
  0x1e   :  { %763 = vmatpush1.msra.mxu0 %v273_v57  ;;  %834 = vmatpush1.msra.mxu1 %v275_v58  ;;  %v341_v24 = vld [vmem:[%s6040_s1 + $0xa20] sm:$0xff]  ;;  %v342_v27 = vld [vmem:[%s6040_s1 + $0xa28] sm:$0xff]  ;;  %v280_v29 = vld [vmem:[%s6040_s1 + $0x838] sm:$0xff] }
  0x1f   :  { %764 = vmatprep.subr.mxu0 %v211_v59  ;;  %835 = vmatprep.subr.mxu1 %v213_v60  ;;  %v278_v28 = vld [vmem:[%s6040_s1 + $0x828] sm:$0xff]  ;;  %v277_v30 = vld [vmem:[%s6040_s1 + $0x820] sm:$0xff]  ;;  %v279_v31 = vld [vmem:[%s6040_s1 + $0x830] sm:$0xff] }
  0x20   :  { %765 = vmatpush1.msra.mxu0 %v210_v61  ;;  %836 = vmatpush1.msra.mxu1 %v212_v62  ;;  %v215_v32 = vld [vmem:[%s6040_s1 + $0x630] sm:$0xff]  ;;  %v217_v33 = vld [vmem:[%s6040_s1 + $0x640] sm:$0xff]  ;;  %v214_v34 = vld [vmem:[%s6040_s1 + $0x628] sm:$0xff] }
  0x21   :  { %766 = vmatprep.subr.mxu0 %v148_v63  ;;  %837 = vmatprep.subr.mxu1 %v150_v0  ;;  %v216_v35 = vld [vmem:[%s6040_s1 + $0x638] sm:$0xff]  ;;  %v154_v37 = vld [vmem:[%s6040_s1 + $0x448] sm:$0xff]  ;;  %v151_v39 = vld [vmem:[%s6040_s1 + $0x430] sm:$0xff] }
  0x22   :  { %767 = vmatpush1.msra.mxu0 %v147_v1  ;;  %838 = vmatpush1.msra.mxu1 %v149_v2  ;;  %v152_v36 = vld [vmem:[%s6040_s1 + $0x438] sm:$0xff]  ;;  %v153_v40 = vld [vmem:[%s6040_s1 + $0x440] sm:$0xff]  ;;  %v91_v42 = vld [vmem:[%s6040_s1 + $0x250] sm:$0xff] }
  0x23   :  { %768 = vmatprep.subr.mxu0 %v85_v4  ;;  %839 = vmatprep.subr.mxu1 %v87_v5  ;;  %v89_v41 = vld [vmem:[%s6040_s1 + $0x240] sm:$0xff]  ;;  %v88_v43 = vld [vmem:[%s6040_s1 + $0x238] sm:$0xff]  ;;  %v90_v44 = vld [vmem:[%s6040_s1 + $0x248] sm:$0xff] }
  0x24   :  { %769 = vmatpush1.msra.mxu0 %v84_v6  ;;  %840 = vmatpush1.msra.mxu1 %v86_v7  ;;  %v26_v45 = vld [vmem:[%s6040_s1 + $0x48] sm:$0xff]  ;;  %v28_v46 = vld [vmem:[%s6040_s1 + $0x58] sm:$0xff]  ;;  %v25_v47 = vld [vmem:[%s6040_s1 + $0x40] sm:$0xff] }
  0x25   :  { %770 = vmatprep.subr.mxu0 %v22_v8  ;;  %841 = vmatprep.subr.mxu1 %v24_v9  ;;  %v27_v48 = vld [vmem:[%s6040_s1 + $0x50] sm:$0xff]  ;;  %v534_v49 = vld [vmem:[%s6040_s1 + $0x1028] sm:$0xff]  ;;  %v536_v50 = vld [vmem:[%s6040_s1 + $0x1038] sm:$0xff] }
  0x26   :  { %771 = vmatpush1.msra.mxu0 %v21_v10  ;;  %804 = vmatprep.mubr.f32.mxu0 %v4047_v3  ;;  %v533_v51 = vld [vmem:[%s6040_s1 + $0x1020] sm:$0xff]  ;;  %v535_v52 = vld [vmem:[%s6040_s1 + $0x1030] sm:$0xff]  ;;  %v470_v55 = vld [vmem:[%s6040_s1 + $0xe28] sm:$0xff] }
  0x27   :  { %842 = vmatpush1.msra.mxu1 %v23_v11  ;;  %875 = vmatprep.mubr.f32.mxu1 %v4047_v3  ;;  %v471_v53 = vld [vmem:[%s6040_s1 + $0xe30] sm:$0xff]  ;;  %v473_v54 = vld [vmem:[%s6040_s1 + $0xe40] sm:$0xff]  ;;  %v472_v56 = vld [vmem:[%s6040_s1 + $0xe38] sm:$0xff] }
  0x28   :  { %3727 = vmatmul.mubr.msk.f32.vlgmr.msra.gmra.mxu0 %vm594_vm0, %v4187_v38  ;;  %3728 = vmatmul.mubr.msk.f32.vlgmr.msra.gmra.mxu1 %vm594_vm0, %v4187_v38  ;;  %v408_v57 = vld [vmem:[%s6040_s1 + $0xc38] sm:$0xff]  ;;  %v410_v58 = vld [vmem:[%s6040_s1 + $0xc48] sm:$0xff]  ;;  %v407_v59 = vld [vmem:[%s6040_s1 + $0xc30] sm:$0xff] }
  0x29   :  { %896 = vmatprep.subr.mxu0 %v530_v12  ;;  %967 = vmatprep.subr.mxu1 %v532_v13  ;;  %v409_v60 = vld [vmem:[%s6040_s1 + $0xc40] sm:$0xff]  ;;  %v347_v62 = vld [vmem:[%s6040_s1 + $0xa50] sm:$0xff]  ;;  %v344_v63 = vld [vmem:[%s6040_s1 + $0xa38] sm:$0xff] }
  0x2a   :  { %897 = vmatpush1.msra.mxu0 %v529_v14  ;;  %968 = vmatpush1.msra.mxu1 %v531_v15  ;;  %v345_v61 = vld [vmem:[%s6040_s1 + $0xa40] sm:$0xff]  ;;  %v346_v0 = vld [vmem:[%s6040_s1 + $0xa48] sm:$0xff]  ;;  %v284_v2 = vld [vmem:[%s6040_s1 + $0x858] sm:$0xff] }
  0x2b   :  { %898 = vmatprep.subr.mxu0 %v467_v16  ;;  %969 = vmatprep.subr.mxu1 %v469_v17  ;;  %v282_v1 = vld [vmem:[%s6040_s1 + $0x848] sm:$0xff]  ;;  %v281_v4 = vld [vmem:[%s6040_s1 + $0x840] sm:$0xff]  ;;  %v283_v5 = vld [vmem:[%s6040_s1 + $0x850] sm:$0xff] }
  0x2c   :  { %899 = vmatpush1.msra.mxu0 %v466_v18  ;;  %970 = vmatpush1.msra.mxu1 %v468_v19  ;;  %v219_v6 = vld [vmem:[%s6040_s1 + $0x650] sm:$0xff]  ;;  %v221_v7 = vld [vmem:[%s6040_s1 + $0x660] sm:$0xff]  ;;  %v218_v8 = vld [vmem:[%s6040_s1 + $0x648] sm:$0xff] }
  0x2d   :  { %900 = vmatprep.subr.mxu0 %v404_v20  ;;  %971 = vmatprep.subr.mxu1 %v406_v21  ;;  %v220_v9 = vld [vmem:[%s6040_s1 + $0x658] sm:$0xff]  ;;  %v158_v11 = vld [vmem:[%s6040_s1 + $0x468] sm:$0xff]  ;;  %v155_v12 = vld [vmem:[%s6040_s1 + $0x450] sm:$0xff] }
  0x2e   :  { %901 = vmatpush1.msra.mxu0 %v403_v22  ;;  %972 = vmatpush1.msra.mxu1 %v405_v23  ;;  %v156_v10 = vld [vmem:[%s6040_s1 + $0x458] sm:$0xff]  ;;  %v157_v13 = vld [vmem:[%s6040_s1 + $0x460] sm:$0xff]  ;;  %v95_v15 = vld [vmem:[%s6040_s1 + $0x270] sm:$0xff] }
  0x2f   :  { %902 = vmatprep.subr.mxu0 %v341_v24  ;;  %973 = vmatprep.subr.mxu1 %v343_v25  ;;  %v93_v14 = vld [vmem:[%s6040_s1 + $0x260] sm:$0xff]  ;;  %v92_v16 = vld [vmem:[%s6040_s1 + $0x258] sm:$0xff]  ;;  %v94_v17 = vld [vmem:[%s6040_s1 + $0x268] sm:$0xff] }
  0x30   :  { %903 = vmatpush1.msra.mxu0 %v340_v26  ;;  %974 = vmatpush1.msra.mxu1 %v342_v27  ;;  %v30_v18 = vld [vmem:[%s6040_s1 + $0x68] sm:$0xff]  ;;  %v32_v19 = vld [vmem:[%s6040_s1 + $0x78] sm:$0xff]  ;;  %v29_v20 = vld [vmem:[%s6040_s1 + $0x60] sm:$0xff] }
  0x31   :  { %904 = vmatprep.subr.mxu0 %v278_v28  ;;  %975 = vmatprep.subr.mxu1 %v280_v29  ;;  %v31_v21 = vld [vmem:[%s6040_s1 + $0x70] sm:$0xff]  ;;  %v538_v22 = vld [vmem:[%s6040_s1 + $0x1048] sm:$0xff]  ;;  %v540_v23 = vld [vmem:[%s6040_s1 + $0x1058] sm:$0xff] }
  0x32   :  { %905 = vmatpush1.msra.mxu0 %v277_v30  ;;  %976 = vmatpush1.msra.mxu1 %v279_v31  ;;  %v537_v24 = vld [vmem:[%s6040_s1 + $0x1040] sm:$0xff]  ;;  %v539_v25 = vld [vmem:[%s6040_s1 + $0x1050] sm:$0xff]  ;;  %v474_v28 = vld [vmem:[%s6040_s1 + $0xe48] sm:$0xff] }
  0x33   :  { %906 = vmatprep.subr.mxu0 %v215_v32  ;;  %977 = vmatprep.subr.mxu1 %v217_v33  ;;  %v475_v26 = vld [vmem:[%s6040_s1 + $0xe50] sm:$0xff]  ;;  %v477_v27 = vld [vmem:[%s6040_s1 + $0xe60] sm:$0xff]  ;;  %v476_v29 = vld [vmem:[%s6040_s1 + $0xe58] sm:$0xff] }
  0x34   :  { %907 = vmatpush1.msra.mxu0 %v214_v34  ;;  %978 = vmatpush1.msra.mxu1 %v216_v35  ;;  %v412_v30 = vld [vmem:[%s6040_s1 + $0xc58] sm:$0xff]  ;;  %v414_v31 = vld [vmem:[%s6040_s1 + $0xc68] sm:$0xff]  ;;  %v411_v32 = vld [vmem:[%s6040_s1 + $0xc50] sm:$0xff] }
  0x35   :  { %908 = vmatprep.subr.mxu0 %v152_v36  ;;  %979 = vmatprep.subr.mxu1 %v154_v37  ;;  %v413_v33 = vld [vmem:[%s6040_s1 + $0xc60] sm:$0xff]  ;;  %v351_v35 = vld [vmem:[%s6040_s1 + $0xa70] sm:$0xff]  ;;  %v348_v36 = vld [vmem:[%s6040_s1 + $0xa58] sm:$0xff] }
  0x36   :  { %909 = vmatpush1.msra.mxu0 %v151_v39  ;;  %980 = vmatpush1.msra.mxu1 %v153_v40  ;;  %v349_v34 = vld [vmem:[%s6040_s1 + $0xa60] sm:$0xff]  ;;  %v350_v37 = vld [vmem:[%s6040_s1 + $0xa68] sm:$0xff]  ;;  %v288_v40 = vld [vmem:[%s6040_s1 + $0x878] sm:$0xff] }
  0x37   :  { %910 = vmatprep.subr.mxu0 %v89_v41  ;;  %981 = vmatprep.subr.mxu1 %v91_v42  ;;  %v286_v39 = vld [vmem:[%s6040_s1 + $0x868] sm:$0xff]  ;;  %v285_v41 = vld [vmem:[%s6040_s1 + $0x860] sm:$0xff]  ;;  %v287_v42 = vld [vmem:[%s6040_s1 + $0x870] sm:$0xff] }
  0x38   :  { %911 = vmatpush1.msra.mxu0 %v88_v43  ;;  %982 = vmatpush1.msra.mxu1 %v90_v44  ;;  %v223_v43 = vld [vmem:[%s6040_s1 + $0x670] sm:$0xff]  ;;  %v225_v44 = vld [vmem:[%s6040_s1 + $0x680] sm:$0xff] }
  0x39   :  { %912 = vmatprep.subr.mxu0 %v26_v45  ;;  %983 = vmatprep.subr.mxu1 %v28_v46  ;;  %v222_v45 = vld [vmem:[%s6040_s1 + $0x668] sm:$0xff]  ;;  %v224_v46 = vld [vmem:[%s6040_s1 + $0x678] sm:$0xff] }
  0x3a   :  { %913 = vmatpush1.msra.mxu0 %v25_v47  ;;  %946 = vmatprep.mubr.f32.mxu0 %v4047_v3  ;;  %v160_v47 = vld [vmem:[%s6040_s1 + $0x478] sm:$0xff] }
  0x3b   :  { %984 = vmatpush1.msra.mxu1 %v27_v48  ;;  %1017 = vmatprep.mubr.f32.mxu1 %v4047_v3  ;;  %v162_v48 = vld [vmem:[%s6040_s1 + $0x488] sm:$0xff] }
  0x3c   :  { %3729 = vmatmul.mubr.msk.f32.vlgmr.msra.gmra.mxu0 %vm594_vm0, %v4187_v38  ;;  %3730 = vmatmul.mubr.msk.f32.vlgmr.msra.gmra.mxu1 %vm594_vm0, %v4187_v38 }
  0x3d   :  { %1038 = vmatprep.subr.mxu0 %v534_v49  ;;  %1109 = vmatprep.subr.mxu1 %v536_v50  ;;  %v159_v49 = vld [vmem:[%s6040_s1 + $0x470] sm:$0xff]  ;;  %v161_v50 = vld [vmem:[%s6040_s1 + $0x480] sm:$0xff] }
  0x3e   :  { %1039 = vmatpush1.msra.mxu0 %v533_v51  ;;  %1110 = vmatpush1.msra.mxu1 %v535_v52  ;;  %v584_v51 = vld [vmem:[#allocation2] sm:$0x1] }
  0x3f   :  { %1040 = vmatprep.subr.mxu0 %v471_v53  ;;  %1111 = vmatprep.subr.mxu1 %v473_v54  ;;  %v97_v52 = vld [vmem:[%s6040_s1 + $0x280] sm:$0xff]  ;;  %v99_v53 = vld [vmem:[%s6040_s1 + $0x290] sm:$0xff]  ;;  %v4048_v54 = vmov 0  }
  0x40   :  { %1041 = vmatpush1.msra.mxu0 %v470_v55  ;;  %1112 = vmatpush1.msra.mxu1 %v472_v56  ;;  %v96_v55 = vld [vmem:[%s6040_s1 + $0x278] sm:$0xff]  ;;  %v98_v56 = vld [vmem:[%s6040_s1 + $0x288] sm:$0xff] }
  0x41   :  { %1042 = vmatprep.subr.mxu0 %v408_v57  ;;  %1113 = vmatprep.subr.mxu1 %v410_v58  ;;  %v34_v57 = vld [vmem:[%s6040_s1 + $0x88] sm:$0xff]  ;;  %v36_v58 = vld [vmem:[%s6040_s1 + $0x98] sm:$0xff] }
  0x42   :  { %1043 = vmatpush1.msra.mxu0 %v407_v59  ;;  %1114 = vmatpush1.msra.mxu1 %v409_v60  ;;  %v33_v59 = vld [vmem:[%s6040_s1 + $0x80] sm:$0xff]  ;;  %v35_v60 = vld [vmem:[%s6040_s1 + $0x90] sm:$0xff] }
  0x43   :  { %1044 = vmatprep.subr.mxu0 %v345_v61  ;;  %1115 = vmatprep.subr.mxu1 %v347_v62  ;;  %v542_v61 = vld [vmem:[%s6040_s1 + $0x1068] sm:$0xff]  ;;  %v544_v62 = vld [vmem:[%s6040_s1 + $0x1078] sm:$0xff] }
  0x44   :  { %1045 = vmatpush1.msra.mxu0 %v344_v63  ;;  %1116 = vmatpush1.msra.mxu1 %v346_v0  ;;  %v541_v63 = vld [vmem:[%s6040_s1 + $0x1060] sm:$0xff]  ;;  %v543_v0 = vld [vmem:[%s6040_s1 + $0x1070] sm:$0xff] }
  0x45   :  { %1046 = vmatprep.subr.mxu0 %v282_v1  ;;  %1117 = vmatprep.subr.mxu1 %v284_v2  ;;  %v479_v1 = vld [vmem:[%s6040_s1 + $0xe70] sm:$0xff]  ;;  %v481_v2 = vld [vmem:[%s6040_s1 + $0xe80] sm:$0xff] }
  0x46   :  { %1047 = vmatpush1.msra.mxu0 %v281_v4  ;;  %1118 = vmatpush1.msra.mxu1 %v283_v5  ;;  %v478_v4 = vld [vmem:[%s6040_s1 + $0xe68] sm:$0xff]  ;;  %v480_v5 = vld [vmem:[%s6040_s1 + $0xe78] sm:$0xff] }
  0x47   :  { %1048 = vmatprep.subr.mxu0 %v219_v6  ;;  %1119 = vmatprep.subr.mxu1 %v221_v7  ;;  %v416_v6 = vld [vmem:[%s6040_s1 + $0xc78] sm:$0xff]  ;;  %v418_v7 = vld [vmem:[%s6040_s1 + $0xc88] sm:$0xff] }
  0x48   :  { %1049 = vmatpush1.msra.mxu0 %v218_v8  ;;  %1120 = vmatpush1.msra.mxu1 %v220_v9  ;;  %v415_v8 = vld [vmem:[%s6040_s1 + $0xc70] sm:$0xff]  ;;  %v417_v9 = vld [vmem:[%s6040_s1 + $0xc80] sm:$0xff] }
  0x49   :  { %1050 = vmatprep.subr.mxu0 %v156_v10  ;;  %1121 = vmatprep.subr.mxu1 %v158_v11  ;;  %v353_v10 = vld [vmem:[%s6040_s1 + $0xa80] sm:$0xff]  ;;  %v355_v11 = vld [vmem:[%s6040_s1 + $0xa90] sm:$0xff] }
  0x4a   :  { %1051 = vmatpush1.msra.mxu0 %v155_v12  ;;  %1122 = vmatpush1.msra.mxu1 %v157_v13  ;;  %v352_v12 = vld [vmem:[%s6040_s1 + $0xa78] sm:$0xff]  ;;  %v354_v13 = vld [vmem:[%s6040_s1 + $0xa88] sm:$0xff] }
  0x4b   :  { %1052 = vmatprep.subr.mxu0 %v93_v14  ;;  %1123 = vmatprep.subr.mxu1 %v95_v15  ;;  %v290_v14 = vld [vmem:[%s6040_s1 + $0x888] sm:$0xff]  ;;  %v292_v15 = vld [vmem:[%s6040_s1 + $0x898] sm:$0xff] }
  0x4c   :  { %1053 = vmatpush1.msra.mxu0 %v92_v16  ;;  %1124 = vmatpush1.msra.mxu1 %v94_v17  ;;  %v289_v16 = vld [vmem:[%s6040_s1 + $0x880] sm:$0xff]  ;;  %v291_v17 = vld [vmem:[%s6040_s1 + $0x890] sm:$0xff] }
  0x4d   :  { %1054 = vmatprep.subr.mxu0 %v30_v18  ;;  %1125 = vmatprep.subr.mxu1 %v32_v19  ;;  %v227_v18 = vld [vmem:[%s6040_s1 + $0x690] sm:$0xff]  ;;  %v229_v19 = vld [vmem:[%s6040_s1 + $0x6a0] sm:$0xff] }
  0x4e   :  { %1055 = vmatpush1.msra.mxu0 %v29_v20  ;;  %1088 = vmatprep.mubr.f32.mxu0 %v4047_v3  ;;  %v226_v20 = vld [vmem:[%s6040_s1 + $0x688] sm:$0xff] }
  0x4f   :  { %1126 = vmatpush1.msra.mxu1 %v31_v21  ;;  %1159 = vmatprep.mubr.f32.mxu1 %v4047_v3  ;;  %v228_v21 = vld [vmem:[%s6040_s1 + $0x698] sm:$0xff] }
  0x50   :  { %3731 = vmatmul.mubr.msk.f32.vlgmr.msra.gmra.mxu0 %vm594_vm0, %v4187_v38  ;;  %3732 = vmatmul.mubr.msk.f32.vlgmr.msra.gmra.mxu1 %vm594_vm0, %v4187_v38 }
  0x51   :  { %1180 = vmatprep.subr.mxu0 %v538_v22  ;;  %1251 = vmatprep.subr.mxu1 %v540_v23  ;;  %v164_v22 = vld [vmem:[%s6040_s1 + $0x498] sm:$0xff]  ;;  %v166_v23 = vld [vmem:[%s6040_s1 + $0x4a8] sm:$0xff] }
  0x52   :  { %1181 = vmatpush1.msra.mxu0 %v537_v24  ;;  %1252 = vmatpush1.msra.mxu1 %v539_v25  ;;  %v163_v24 = vld [vmem:[%s6040_s1 + $0x490] sm:$0xff]  ;;  %v165_v25 = vld [vmem:[%s6040_s1 + $0x4a0] sm:$0xff] }
  0x53   :  { %1182 = vmatprep.subr.mxu0 %v475_v26  ;;  %1253 = vmatprep.subr.mxu1 %v477_v27  ;;  %v101_v26 = vld [vmem:[%s6040_s1 + $0x2a0] sm:$0xff]  ;;  %v103_v27 = vld [vmem:[%s6040_s1 + $0x2b0] sm:$0xff] }
  0x54   :  { %1183 = vmatpush1.msra.mxu0 %v474_v28  ;;  %1254 = vmatpush1.msra.mxu1 %v476_v29  ;;  %v100_v28 = vld [vmem:[%s6040_s1 + $0x298] sm:$0xff]  ;;  %v102_v29 = vld [vmem:[%s6040_s1 + $0x2a8] sm:$0xff] }
  0x55   :  { %1184 = vmatprep.subr.mxu0 %v412_v30  ;;  %1255 = vmatprep.subr.mxu1 %v414_v31  ;;  %v38_v30 = vld [vmem:[%s6040_s1 + $0xa8] sm:$0xff]  ;;  %v40_v31 = vld [vmem:[%s6040_s1 + $0xb8] sm:$0xff] }
  0x56   :  { %1185 = vmatpush1.msra.mxu0 %v411_v32  ;;  %1256 = vmatpush1.msra.mxu1 %v413_v33  ;;  %v37_v32 = vld [vmem:[%s6040_s1 + $0xa0] sm:$0xff]  ;;  %v39_v33 = vld [vmem:[%s6040_s1 + $0xb0] sm:$0xff] }
  0x57   :  { %1186 = vmatprep.subr.mxu0 %v349_v34  ;;  %1257 = vmatprep.subr.mxu1 %v351_v35  ;;  %v546_v34 = vld [vmem:[%s6040_s1 + $0x1088] sm:$0xff]  ;;  %v548_v35 = vld [vmem:[%s6040_s1 + $0x1098] sm:$0xff] }
  0x58   :  { %1187 = vmatpush1.msra.mxu0 %v348_v36  ;;  %1258 = vmatpush1.msra.mxu1 %v350_v37  ;;  %v545_v36 = vld [vmem:[%s6040_s1 + $0x1080] sm:$0xff]  ;;  %v547_v37 = vld [vmem:[%s6040_s1 + $0x1090] sm:$0xff] }
  0x59   :  { %1188 = vmatprep.subr.mxu0 %v286_v39  ;;  %1259 = vmatprep.subr.mxu1 %v288_v40  ;;  %v483_v39 = vld [vmem:[%s6040_s1 + $0xe90] sm:$0xff]  ;;  %v485_v40 = vld [vmem:[%s6040_s1 + $0xea0] sm:$0xff] }
  0x5a   :  { %1189 = vmatpush1.msra.mxu0 %v285_v41  ;;  %1260 = vmatpush1.msra.mxu1 %v287_v42  ;;  %v482_v41 = vld [vmem:[%s6040_s1 + $0xe88] sm:$0xff]  ;;  %v484_v42 = vld [vmem:[%s6040_s1 + $0xe98] sm:$0xff] }
  0x5b   :  { %1190 = vmatprep.subr.mxu0 %v223_v43  ;;  %1261 = vmatprep.subr.mxu1 %v225_v44  ;;  %v420_v43 = vld [vmem:[%s6040_s1 + $0xc98] sm:$0xff]  ;;  %v422_v44 = vld [vmem:[%s6040_s1 + $0xca8] sm:$0xff] }
  0x5c   :  { %1191 = vmatpush1.msra.mxu0 %v222_v45  ;;  %1262 = vmatpush1.msra.mxu1 %v224_v46  ;;  %v419_v45 = vld [vmem:[%s6040_s1 + $0xc90] sm:$0xff]  ;;  %v421_v46 = vld [vmem:[%s6040_s1 + $0xca0] sm:$0xff] }
  0x5d   :  { %1192 = vmatprep.subr.mxu0 %v160_v47  ;;  %1263 = vmatprep.subr.mxu1 %v162_v48  ;;  %v357_v47 = vld [vmem:[%s6040_s1 + $0xaa0] sm:$0xff]  ;;  %v359_v48 = vld [vmem:[%s6040_s1 + $0xab0] sm:$0xff] }
  0x5e   :  { %3792 = vset.pattern.permute.xlu0 %v4048_v54  ;;  %1193 = vmatpush1.msra.mxu0 %v159_v49  ;;  %v356_v49 = vld [vmem:[%s6040_s1 + $0xa98] sm:$0xff]  ;;  %v295_v54 = vld [vmem:[%s6040_s1 + $0x8b0] sm:$0xff] }
  0x5f   :  { %1264 = vmatpush1.msra.mxu1 %v161_v50  ;;  %587 = vperm.xlu0 %3792, %v584_v51   ;;  %v358_v50 = vld [vmem:[%s6040_s1 + $0xaa8] sm:$0xff] }
  0x60   :  { %1194 = vmatprep.subr.mxu0 %v97_v52  ;;  %1265 = vmatprep.subr.mxu1 %v99_v53  ;;  %v294_v51 = vld [vmem:[%s6040_s1 + $0x8a8] sm:$0xff]  ;;  %v296_v52 = vld [vmem:[%s6040_s1 + $0x8b8] sm:$0xff]  ;;  %v293_v53 = vld [vmem:[%s6040_s1 + $0x8a0] sm:$0xff] }
  0x61   :  { %1195 = vmatpush1.msra.mxu0 %v96_v55  ;;  %1266 = vmatpush1.msra.mxu1 %v98_v56  ;;  %v231_v55 = vld [vmem:[%s6040_s1 + $0x6b0] sm:$0xff]  ;;  %v233_v56 = vld [vmem:[%s6040_s1 + $0x6c0] sm:$0xff] }
  0x62   :  { %1196 = vmatprep.subr.mxu0 %v34_v57  ;;  %1267 = vmatprep.subr.mxu1 %v36_v58  ;;  %v230_v57 = vld [vmem:[%s6040_s1 + $0x6a8] sm:$0xff]  ;;  %v232_v58 = vld [vmem:[%s6040_s1 + $0x6b8] sm:$0xff] }
  0x63   :  { %1197 = vmatpush1.msra.mxu0 %v33_v59  ;;  %1230 = vmatprep.mubr.f32.mxu0 %v4047_v3  ;;  %v168_v59 = vld [vmem:[%s6040_s1 + $0x4b8] sm:$0xff] }
  0x64   :  { %1268 = vmatpush1.msra.mxu1 %v35_v60  ;;  %1301 = vmatprep.mubr.f32.mxu1 %v4047_v3  ;;  %v170_v60 = vld [vmem:[%s6040_s1 + $0x4c8] sm:$0xff] }
  0x65   :  { %3733 = vmatmul.mubr.msk.f32.vlgmr.msra.gmra.mxu0 %vm594_vm0, %v4187_v38  ;;  %3734 = vmatmul.mubr.msk.f32.vlgmr.msra.gmra.mxu1 %vm594_vm0, %v4187_v38 }
  0x66   :  { %1322 = vmatprep.subr.mxu0 %v542_v61  ;;  %1393 = vmatprep.subr.mxu1 %v544_v62  ;;  %v167_v61 = vld [vmem:[%s6040_s1 + $0x4b0] sm:$0xff]  ;;  %v169_v62 = vld [vmem:[%s6040_s1 + $0x4c0] sm:$0xff] }
  0x67   :  { %1323 = vmatpush1.msra.mxu0 %v541_v63  ;;  %1394 = vmatpush1.msra.mxu1 %v543_v0  ;;  %v105_v63 = vld [vmem:[%s6040_s1 + $0x2c0] sm:$0xff]  ;;  %v107_v0 = vld [vmem:[%s6040_s1 + $0x2d0] sm:$0xff] }
  0x68   :  { %1324 = vmatprep.subr.mxu0 %v479_v1  ;;  %1395 = vmatprep.subr.mxu1 %v481_v2  ;;  %v104_v1 = vld [vmem:[%s6040_s1 + $0x2b8] sm:$0xff]  ;;  %v106_v2 = vld [vmem:[%s6040_s1 + $0x2c8] sm:$0xff] }
  0x69   :  { %1325 = vmatpush1.msra.mxu0 %v478_v4  ;;  %1396 = vmatpush1.msra.mxu1 %v480_v5  ;;  %v42_v4 = vld [vmem:[%s6040_s1 + $0xc8] sm:$0xff]  ;;  %v44_v5 = vld [vmem:[%s6040_s1 + $0xd8] sm:$0xff] }
  0x6a   :  { %1326 = vmatprep.subr.mxu0 %v416_v6  ;;  %1397 = vmatprep.subr.mxu1 %v418_v7  ;;  %v41_v6 = vld [vmem:[%s6040_s1 + $0xc0] sm:$0xff]  ;;  %v43_v7 = vld [vmem:[%s6040_s1 + $0xd0] sm:$0xff] }
  0x6b   :  { %1327 = vmatpush1.msra.mxu0 %v415_v8  ;;  %1398 = vmatpush1.msra.mxu1 %v417_v9  ;;  %v550_v8 = vld [vmem:[%s6040_s1 + $0x10a8] sm:$0xff]  ;;  %v552_v9 = vld [vmem:[%s6040_s1 + $0x10b8] sm:$0xff] }
  0x6c   :  { %1328 = vmatprep.subr.mxu0 %v353_v10  ;;  %1399 = vmatprep.subr.mxu1 %v355_v11  ;;  %v549_v10 = vld [vmem:[%s6040_s1 + $0x10a0] sm:$0xff]  ;;  %v551_v11 = vld [vmem:[%s6040_s1 + $0x10b0] sm:$0xff] }
  0x6d   :  { %1329 = vmatpush1.msra.mxu0 %v352_v12  ;;  %1400 = vmatpush1.msra.mxu1 %v354_v13  ;;  %v487_v12 = vld [vmem:[%s6040_s1 + $0xeb0] sm:$0xff]  ;;  %v489_v13 = vld [vmem:[%s6040_s1 + $0xec0] sm:$0xff] }
  0x6e   :  { %1330 = vmatprep.subr.mxu0 %v290_v14  ;;  %1401 = vmatprep.subr.mxu1 %v292_v15  ;;  %v486_v14 = vld [vmem:[%s6040_s1 + $0xea8] sm:$0xff]  ;;  %v488_v15 = vld [vmem:[%s6040_s1 + $0xeb8] sm:$0xff] }
  0x6f   :  { %1331 = vmatpush1.msra.mxu0 %v289_v16  ;;  %1402 = vmatpush1.msra.mxu1 %v291_v17  ;;  %v426_v16 = vld [vmem:[%s6040_s1 + $0xcc8] sm:$0xff]  ;;  %v423_v17 = vld [vmem:[%s6040_s1 + $0xcb0] sm:$0xff] }
  0x70   :  { %1332 = vmatprep.subr.mxu0 %v227_v18  ;;  %1403 = vmatprep.subr.mxu1 %v229_v19  ;;  %v425_v18 = vld [vmem:[%s6040_s1 + $0xcc0] sm:$0xff] }
  0x71   :  { %1333 = vmatpush1.msra.mxu0 %v226_v20  ;;  %1404 = vmatpush1.msra.mxu1 %v228_v21  ;;  %v361_v19 = vld [vmem:[%s6040_s1 + $0xac0] sm:$0xff]  ;;  %v363_v20 = vld [vmem:[%s6040_s1 + $0xad0] sm:$0xff]  ;;  %v360_v21 = vld [vmem:[%s6040_s1 + $0xab8] sm:$0xff] }
  0x72   :  { %1334 = vmatprep.subr.mxu0 %v164_v22  ;;  %1405 = vmatprep.subr.mxu1 %v166_v23  ;;  %v362_v22 = vld [vmem:[%s6040_s1 + $0xac8] sm:$0xff] }
  0x73   :  { %1335 = vmatpush1.msra.mxu0 %v163_v24  ;;  %1406 = vmatpush1.msra.mxu1 %v165_v25  ;;  %v298_v23 = vld [vmem:[%s6040_s1 + $0x8c8] sm:$0xff]  ;;  %v300_v24 = vld [vmem:[%s6040_s1 + $0x8d8] sm:$0xff]  ;;  %v297_v25 = vld [vmem:[%s6040_s1 + $0x8c0] sm:$0xff] }
  0x74   :  { %1336 = vmatprep.subr.mxu0 %v101_v26  ;;  %1407 = vmatprep.subr.mxu1 %v103_v27  ;;  %v299_v26 = vld [vmem:[%s6040_s1 + $0x8d0] sm:$0xff] }
  0x75   :  { %1337 = vmatpush1.msra.mxu0 %v100_v28  ;;  %1408 = vmatpush1.msra.mxu1 %v102_v29  ;;  %v235_v27 = vld [vmem:[%s6040_s1 + $0x6d0] sm:$0xff]  ;;  %v237_v28 = vld [vmem:[%s6040_s1 + $0x6e0] sm:$0xff]  ;;  %v234_v29 = vld [vmem:[%s6040_s1 + $0x6c8] sm:$0xff] }
  0x76   :  { %1338 = vmatprep.subr.mxu0 %v38_v30  ;;  %1409 = vmatprep.subr.mxu1 %v40_v31  ;;  %v236_v30 = vld [vmem:[%s6040_s1 + $0x6d8] sm:$0xff] }
  0x77   :  { %1339 = vmatpush1.msra.mxu0 %v37_v32  ;;  %1372 = vmatprep.mubr.f32.mxu0 %v4047_v3  ;;  %v172_v31 = vld [vmem:[%s6040_s1 + $0x4d8] sm:$0xff]  ;;  %v174_v32 = vld [vmem:[%s6040_s1 + $0x4e8] sm:$0xff] }
  0x78   :  { %1410 = vmatpush1.msra.mxu1 %v39_v33  ;;  %1443 = vmatprep.mubr.f32.mxu1 %v4047_v3  ;;  %v171_v33 = vld [vmem:[%s6040_s1 + $0x4d0] sm:$0xff] }
  0x79   :  { %3735 = vmatmul.mubr.msk.f32.vlgmr.msra.gmra.mxu0 %vm594_vm0, %v4187_v38  ;;  %3736 = vmatmul.mubr.msk.f32.vlgmr.msra.gmra.mxu1 %vm594_vm0, %v4187_v38 }
  0x7a   :  { %1464 = vmatprep.subr.mxu0 %v546_v34  ;;  %1535 = vmatprep.subr.mxu1 %v548_v35  ;;  %v173_v34 = vld [vmem:[%s6040_s1 + $0x4e0] sm:$0xff] }
  0x7b   :  { %1465 = vmatpush1.msra.mxu0 %v545_v36  ;;  %1536 = vmatpush1.msra.mxu1 %v547_v37  ;;  %v109_v35 = vld [vmem:[%s6040_s1 + $0x2e0] sm:$0xff]  ;;  %v111_v36 = vld [vmem:[%s6040_s1 + $0x2f0] sm:$0xff]  ;;  %v108_v37 = vld [vmem:[%s6040_s1 + $0x2d8] sm:$0xff] }
  0x7c   :  { %1466 = vmatprep.subr.mxu0 %v483_v39  ;;  %1537 = vmatprep.subr.mxu1 %v485_v40  ;;  %v110_v39 = vld [vmem:[%s6040_s1 + $0x2e8] sm:$0xff] }
  0x7d   :  { %1467 = vmatpush1.msra.mxu0 %v482_v41  ;;  %1538 = vmatpush1.msra.mxu1 %v484_v42  ;;  %v46_v40 = vld [vmem:[%s6040_s1 + $0xe8] sm:$0xff]  ;;  %v48_v41 = vld [vmem:[%s6040_s1 + $0xf8] sm:$0xff]  ;;  %v45_v42 = vld [vmem:[%s6040_s1 + $0xe0] sm:$0xff] }
  0x7e   :  { %1468 = vmatprep.subr.mxu0 %v420_v43  ;;  %1539 = vmatprep.subr.mxu1 %v422_v44  ;;  %v47_v43 = vld [vmem:[%s6040_s1 + $0xf0] sm:$0xff]  ;;  %v554_v44 = vld [vmem:[%s6040_s1 + $0x10c8] sm:$0xff] }
  0x7f   :  { %1469 = vmatpush1.msra.mxu0 %v419_v45  ;;  %1540 = vmatpush1.msra.mxu1 %v421_v46  ;;  %v556_v45 = vld [vmem:[%s6040_s1 + $0x10d8] sm:$0xff]  ;;  %v553_v46 = vld [vmem:[%s6040_s1 + $0x10c0] sm:$0xff] }
  0x80   :  { %1470 = vmatprep.subr.mxu0 %v357_v47  ;;  %1541 = vmatprep.subr.mxu1 %v359_v48  ;;  %v555_v47 = vld [vmem:[%s6040_s1 + $0x10d0] sm:$0xff]  ;;  %v5002_v48 = vld [vmem:[%s6042_s0] sm:$0x1] }
  0x81   :  { %1471 = vmatpush1.msra.mxu0 %v356_v49  ;;  %1542 = vmatpush1.msra.mxu1 %v358_v50  ;;  %v491_v49 = vld [vmem:[%s6040_s1 + $0xed0] sm:$0xff]  ;;  %v493_v50 = vld [vmem:[%s6040_s1 + $0xee0] sm:$0xff] }
  0x82   :  { %1472 = vmatprep.subr.mxu0 %v294_v51  ;;  %1543 = vmatprep.subr.mxu1 %v296_v52  ;;  %v490_v51 = vld [vmem:[%s6040_s1 + $0xec8] sm:$0xff]  ;;  %v492_v52 = vld [vmem:[%s6040_s1 + $0xed8] sm:$0xff] }
  0x83   :  { %1473 = vmatpush1.msra.mxu0 %v293_v53  ;;  %1544 = vmatpush1.msra.mxu1 %v295_v54  ;;  %v428_v53 = vld [vmem:[%s6040_s1 + $0xcd8] sm:$0xff]  ;;  %v430_v54 = vld [vmem:[%s6040_s1 + $0xce8] sm:$0xff] }
  0x84   :  { %1474 = vmatprep.subr.mxu0 %v231_v55  ;;  %1545 = vmatprep.subr.mxu1 %v233_v56  ;;  %v427_v55 = vld [vmem:[%s6040_s1 + $0xcd0] sm:$0xff]  ;;  %v429_v56 = vld [vmem:[%s6040_s1 + $0xce0] sm:$0xff] }
  0x85   :  { %1475 = vmatpush1.msra.mxu0 %v230_v57  ;;  %1546 = vmatpush1.msra.mxu1 %v232_v58  ;;  %v365_v57 = vld [vmem:[%s6040_s1 + $0xae0] sm:$0xff]  ;;  %v367_v58 = vld [vmem:[%s6040_s1 + $0xaf0] sm:$0xff] }
  0x86   :  { %1476 = vmatprep.subr.mxu0 %v168_v59  ;;  %1547 = vmatprep.subr.mxu1 %v170_v60  ;;  %v364_v59 = vld [vmem:[%s6040_s1 + $0xad8] sm:$0xff]  ;;  %v366_v60 = vld [vmem:[%s6040_s1 + $0xae8] sm:$0xff] }
  0x87   :  { %1477 = vmatpush1.msra.mxu0 %v167_v61  ;;  %1548 = vmatpush1.msra.mxu1 %v169_v62  ;;  %v302_v61 = vld [vmem:[%s6040_s1 + $0x8e8] sm:$0xff]  ;;  %v304_v62 = vld [vmem:[%s6040_s1 + $0x8f8] sm:$0xff] }
  0x88   :  { %1478 = vmatprep.subr.mxu0 %v105_v63  ;;  %1549 = vmatprep.subr.mxu1 %v107_v0  ;;  %v301_v63 = vld [vmem:[%s6040_s1 + $0x8e0] sm:$0xff]  ;;  %v303_v0 = vld [vmem:[%s6040_s1 + $0x8f0] sm:$0xff] }
  0x89   :  { %1479 = vmatpush1.msra.mxu0 %v104_v1  ;;  %1550 = vmatpush1.msra.mxu1 %v106_v2  ;;  %v239_v1 = vld [vmem:[%s6040_s1 + $0x6f0] sm:$0xff]  ;;  %v241_v2 = vld [vmem:[%s6040_s1 + $0x700] sm:$0xff] }
  0x8a   :  { %1480 = vmatprep.subr.mxu0 %v42_v4  ;;  %1551 = vmatprep.subr.mxu1 %v44_v5  ;;  %v238_v4 = vld [vmem:[%s6040_s1 + $0x6e8] sm:$0xff]  ;;  %v240_v5 = vld [vmem:[%s6040_s1 + $0x6f8] sm:$0xff] }
  0x8b   :  { %1481 = vmatpush1.msra.mxu0 %v41_v6  ;;  %1514 = vmatprep.mubr.f32.mxu0 %v4047_v3  ;;  %v176_v6 = vld [vmem:[%s6040_s1 + $0x4f8] sm:$0xff] }
  0x8c   :  { %1552 = vmatpush1.msra.mxu1 %v43_v7  ;;  %1585 = vmatprep.mubr.f32.mxu1 %v4047_v3  ;;  %v178_v7 = vld [vmem:[%s6040_s1 + $0x508] sm:$0xff] }
  0x8d   :  { %3737 = vmatmul.mubr.msk.f32.vlgmr.msra.gmra.mxu0 %vm594_vm0, %v4187_v38  ;;  %3738 = vmatmul.mubr.msk.f32.vlgmr.msra.gmra.mxu1 %vm594_vm0, %v4187_v38  ;;  %v424_v38 = vld [vmem:[%s6040_s1 + $0xcb8] sm:$0xff] }
  0x8e   :  { %1606 = vmatprep.subr.mxu0 %v550_v8  ;;  %1677 = vmatprep.subr.mxu1 %v552_v9  ;;  %v175_v8 = vld [vmem:[%s6040_s1 + $0x4f0] sm:$0xff]  ;;  %v177_v9 = vld [vmem:[%s6040_s1 + $0x500] sm:$0xff] }
  0x8f   :  { %1607 = vmatpush1.msra.mxu0 %v549_v10  ;;  %1678 = vmatpush1.msra.mxu1 %v551_v11  ;;  %v113_v10 = vld [vmem:[%s6040_s1 + $0x300] sm:$0xff]  ;;  %v115_v11 = vld [vmem:[%s6040_s1 + $0x310] sm:$0xff] }
  0x90   :  { %1608 = vmatprep.subr.mxu0 %v487_v12  ;;  %1679 = vmatprep.subr.mxu1 %v489_v13  ;;  %v112_v12 = vld [vmem:[%s6040_s1 + $0x2f8] sm:$0xff]  ;;  %v114_v13 = vld [vmem:[%s6040_s1 + $0x308] sm:$0xff] }
  0x91   :  { %1609 = vmatpush1.msra.mxu0 %v486_v14  ;;  %1680 = vmatpush1.msra.mxu1 %v488_v15  ;;  %v50_v14 = vld [vmem:[%s6040_s1 + $0x108] sm:$0xff]  ;;  %v52_v15 = vld [vmem:[%s6040_s1 + $0x118] sm:$0xff] }
  0x92   :  { %1610 = vmatprep.subr.mxu0 %v424_v38  ;;  %1681 = vmatprep.subr.mxu1 %v426_v16  ;;  %v49_v38 = vld [vmem:[%s6040_s1 + $0x100] sm:$0xff]  ;;  %v51_v16 = vld [vmem:[%s6040_s1 + $0x110] sm:$0xff] }
  0x93   :  { %1611 = vmatpush1.msra.mxu0 %v423_v17  ;;  %1682 = vmatpush1.msra.mxu1 %v425_v18  ;;  %v558_v17 = vld [vmem:[%s6040_s1 + $0x10e8] sm:$0xff]  ;;  %v560_v18 = vld [vmem:[%s6040_s1 + $0x10f8] sm:$0xff] }
  0x94   :  { %1612 = vmatprep.subr.mxu0 %v361_v19  ;;  %1683 = vmatprep.subr.mxu1 %v363_v20  ;;  %v557_v19 = vld [vmem:[%s6040_s1 + $0x10e0] sm:$0xff]  ;;  %v559_v20 = vld [vmem:[%s6040_s1 + $0x10f0] sm:$0xff] }
  0x95   :  { %1613 = vmatpush1.msra.mxu0 %v360_v21  ;;  %1684 = vmatpush1.msra.mxu1 %v362_v22  ;;  %v495_v21 = vld [vmem:[%s6040_s1 + $0xef0] sm:$0xff]  ;;  %v497_v22 = vld [vmem:[%s6040_s1 + $0xf00] sm:$0xff] }
  0x96   :  { %1614 = vmatprep.subr.mxu0 %v298_v23  ;;  %1685 = vmatprep.subr.mxu1 %v300_v24  ;;  %v494_v23 = vld [vmem:[%s6040_s1 + $0xee8] sm:$0xff]  ;;  %v496_v24 = vld [vmem:[%s6040_s1 + $0xef8] sm:$0xff] }
  0x97   :  { %1615 = vmatpush1.msra.mxu0 %v297_v25  ;;  %1686 = vmatpush1.msra.mxu1 %v299_v26  ;;  %v432_v25 = vld [vmem:[%s6040_s1 + $0xcf8] sm:$0xff]  ;;  %v434_v26 = vld [vmem:[%s6040_s1 + $0xd08] sm:$0xff] }
  0x98   :  { %1616 = vmatprep.subr.mxu0 %v235_v27  ;;  %1687 = vmatprep.subr.mxu1 %v237_v28  ;;  %v431_v27 = vld [vmem:[%s6040_s1 + $0xcf0] sm:$0xff]  ;;  %v433_v28 = vld [vmem:[%s6040_s1 + $0xd00] sm:$0xff] }
  0x99   :  { %1617 = vmatpush1.msra.mxu0 %v234_v29  ;;  %1688 = vmatpush1.msra.mxu1 %v236_v30  ;;  %v369_v29 = vld [vmem:[%s6040_s1 + $0xb00] sm:$0xff]  ;;  %v371_v30 = vld [vmem:[%s6040_s1 + $0xb10] sm:$0xff] }
  0x9a   :  { %1618 = vmatprep.subr.mxu0 %v172_v31  ;;  %1689 = vmatprep.subr.mxu1 %v174_v32  ;;  %v368_v31 = vld [vmem:[%s6040_s1 + $0xaf8] sm:$0xff]  ;;  %v370_v32 = vld [vmem:[%s6040_s1 + $0xb08] sm:$0xff] }
  0x9b   :  { %1619 = vmatpush1.msra.mxu0 %v171_v33  ;;  %1690 = vmatpush1.msra.mxu1 %v173_v34  ;;  %v306_v33 = vld [vmem:[%s6040_s1 + $0x908] sm:$0xff]  ;;  %v308_v34 = vld [vmem:[%s6040_s1 + $0x918] sm:$0xff] }
  0x9c   :  { %1620 = vmatprep.subr.mxu0 %v109_v35  ;;  %1691 = vmatprep.subr.mxu1 %v111_v36  ;;  %v305_v35 = vld [vmem:[%s6040_s1 + $0x900] sm:$0xff]  ;;  %v307_v36 = vld [vmem:[%s6040_s1 + $0x910] sm:$0xff] }
  0x9d   :  { %1621 = vmatpush1.msra.mxu0 %v108_v37  ;;  %1692 = vmatpush1.msra.mxu1 %v110_v39  ;;  %v243_v37 = vld [vmem:[%s6040_s1 + $0x710] sm:$0xff]  ;;  %v245_v39 = vld [vmem:[%s6040_s1 + $0x720] sm:$0xff] }
  0x9e   :  { %1622 = vmatprep.subr.mxu0 %v46_v40  ;;  %1693 = vmatprep.subr.mxu1 %v48_v41  ;;  %v242_v40 = vld [vmem:[%s6040_s1 + $0x708] sm:$0xff]  ;;  %v244_v41 = vld [vmem:[%s6040_s1 + $0x718] sm:$0xff] }
  0x9f   :  { %1623 = vmatpush1.msra.mxu0 %v45_v42  ;;  %1656 = vmatprep.mubr.f32.mxu0 %v4047_v3  ;;  %v180_v42 = vld [vmem:[%s6040_s1 + $0x518] sm:$0xff] }
  0xa0   :  { %1694 = vmatpush1.msra.mxu1 %v47_v43  ;;  %1727 = vmatprep.mubr.f32.mxu1 %v4047_v3  ;;  %v182_v43 = vld [vmem:[%s6040_s1 + $0x528] sm:$0xff] }
  0xa1   :  { %3739 = vmatmul.mubr.msk.f32.vlgmr.msra.gmra.mxu0 %vm594_vm0, %v5002_v48  ;;  %3740 = vmatmul.mubr.msk.f32.vlgmr.msra.gmra.mxu1 %vm594_vm0, %v5002_v48 }
  0xa2   :  { %1748 = vmatprep.subr.mxu0 %v554_v44  ;;  %1819 = vmatprep.subr.mxu1 %v556_v45  ;;  %v179_v44 = vld [vmem:[%s6040_s1 + $0x510] sm:$0xff]  ;;  %v181_v45 = vld [vmem:[%s6040_s1 + $0x520] sm:$0xff] }
  0xa3   :  { %1749 = vmatpush1.msra.mxu0 %v553_v46  ;;  %1820 = vmatpush1.msra.mxu1 %v555_v47  ;;  %v117_v46 = vld [vmem:[%s6040_s1 + $0x320] sm:$0xff]  ;;  %v119_v47 = vld [vmem:[%s6040_s1 + $0x330] sm:$0xff] }
  0xa4   :  { %1750 = vmatprep.subr.mxu0 %v491_v49  ;;  %1821 = vmatprep.subr.mxu1 %v493_v50  ;;  %v116_v49 = vld [vmem:[%s6040_s1 + $0x318] sm:$0xff]  ;;  %v118_v50 = vld [vmem:[%s6040_s1 + $0x328] sm:$0xff] }
  0xa5   :  { %1751 = vmatpush1.msra.mxu0 %v490_v51  ;;  %1822 = vmatpush1.msra.mxu1 %v492_v52  ;;  %v54_v51 = vld [vmem:[%s6040_s1 + $0x128] sm:$0xff]  ;;  %v56_v52 = vld [vmem:[%s6040_s1 + $0x138] sm:$0xff] }
  0xa6   :  { %1752 = vmatprep.subr.mxu0 %v428_v53  ;;  %1823 = vmatprep.subr.mxu1 %v430_v54  ;;  %v53_v53 = vld [vmem:[%s6040_s1 + $0x120] sm:$0xff]  ;;  %v55_v54 = vld [vmem:[%s6040_s1 + $0x130] sm:$0xff] }
  0xa7   :  { %1753 = vmatpush1.msra.mxu0 %v427_v55  ;;  %1824 = vmatpush1.msra.mxu1 %v429_v56  ;;  %v562_v55 = vld [vmem:[%s6040_s1 + $0x1108] sm:$0xff]  ;;  %v564_v56 = vld [vmem:[%s6040_s1 + $0x1118] sm:$0xff] }
  0xa8   :  { %1754 = vmatprep.subr.mxu0 %v365_v57  ;;  %1825 = vmatprep.subr.mxu1 %v367_v58  ;;  %v561_v57 = vld [vmem:[%s6040_s1 + $0x1100] sm:$0xff]  ;;  %v563_v58 = vld [vmem:[%s6040_s1 + $0x1110] sm:$0xff] }
  0xa9   :  { %1755 = vmatpush1.msra.mxu0 %v364_v59  ;;  %1826 = vmatpush1.msra.mxu1 %v366_v60  ;;  %v499_v59 = vld [vmem:[%s6040_s1 + $0xf10] sm:$0xff]  ;;  %v501_v60 = vld [vmem:[%s6040_s1 + $0xf20] sm:$0xff] }
  0xaa   :  { %1756 = vmatprep.subr.mxu0 %v302_v61  ;;  %1827 = vmatprep.subr.mxu1 %v304_v62  ;;  %v498_v61 = vld [vmem:[%s6040_s1 + $0xf08] sm:$0xff]  ;;  %v500_v62 = vld [vmem:[%s6040_s1 + $0xf18] sm:$0xff] }
  0xab   :  { %1757 = vmatpush1.msra.mxu0 %v301_v63  ;;  %1828 = vmatpush1.msra.mxu1 %v303_v0  ;;  %v436_v63 = vld [vmem:[%s6040_s1 + $0xd18] sm:$0xff]  ;;  %v438_v0 = vld [vmem:[%s6040_s1 + $0xd28] sm:$0xff] }
  0xac   :  { %1758 = vmatprep.subr.mxu0 %v239_v1  ;;  %1829 = vmatprep.subr.mxu1 %v241_v2  ;;  %v435_v1 = vld [vmem:[%s6040_s1 + $0xd10] sm:$0xff]  ;;  %v437_v2 = vld [vmem:[%s6040_s1 + $0xd20] sm:$0xff] }
  0xad   :  { %1759 = vmatpush1.msra.mxu0 %v238_v4  ;;  %1830 = vmatpush1.msra.mxu1 %v240_v5  ;;  %v373_v4 = vld [vmem:[%s6040_s1 + $0xb20] sm:$0xff]  ;;  %v375_v5 = vld [vmem:[%s6040_s1 + $0xb30] sm:$0xff] }
  0xae   :  { %1760 = vmatprep.subr.mxu0 %v176_v6  ;;  %1831 = vmatprep.subr.mxu1 %v178_v7  ;;  %v372_v6 = vld [vmem:[%s6040_s1 + $0xb18] sm:$0xff]  ;;  %v374_v7 = vld [vmem:[%s6040_s1 + $0xb28] sm:$0xff] }
  0xaf   :  { %1761 = vmatpush1.msra.mxu0 %v175_v8  ;;  %1832 = vmatpush1.msra.mxu1 %v177_v9  ;;  %v310_v8 = vld [vmem:[%s6040_s1 + $0x928] sm:$0xff]  ;;  %v312_v9 = vld [vmem:[%s6040_s1 + $0x938] sm:$0xff] }
  0xb0   :  { %1762 = vmatprep.subr.mxu0 %v113_v10  ;;  %1833 = vmatprep.subr.mxu1 %v115_v11  ;;  %v590_v10 = vlaneseq  ;;  %v309_v11 = vld [vmem:[%s6040_s1 + $0x920] sm:$0xff] }
  0xb1   :  { %1763 = vmatpush1.msra.mxu0 %v112_v12  ;;  %1834 = vmatpush1.msra.mxu1 %v114_v13  ;;  %v311_v12 = vld [vmem:[%s6040_s1 + $0x930] sm:$0xff] }
  0xb2   :  { %1764 = vmatprep.subr.mxu0 %v50_v14  ;;  %1835 = vmatprep.subr.mxu1 %v52_v15  ;;  %v247_v13 = vld [vmem:[%s6040_s1 + $0x730] sm:$0xff]  ;;  %v249_v14 = vld [vmem:[%s6040_s1 + $0x740] sm:$0xff]  ;;  %v246_v15 = vld [vmem:[%s6040_s1 + $0x728] sm:$0xff]  ;;  %vm3718_vm2 = vcmp.lt.s32.totalorder %v590_v10, 770 }
  0xb3   :  { %1765 = vmatpush1.msra.mxu0 %v49_v38  ;;  %1798 = vmatprep.mubr.f32.mxu0 %v4047_v3  ;;  %v248_v38 = vld [vmem:[%s6040_s1 + $0x738] sm:$0xff] }
  0xb4   :  { %1836 = vmatpush1.msra.mxu1 %v51_v16  ;;  %1869 = vmatprep.mubr.f32.mxu1 %v4047_v3  ;;  %v184_v16 = vld [vmem:[%s6040_s1 + $0x538] sm:$0xff] }
  0xb5   :  { %3741 = vmatmul.mubr.msk.f32.vlgmr.msra.gmra.mxu0 %vm594_vm0, %v5002_v48  ;;  %3742 = vmatmul.mubr.msk.f32.vlgmr.msra.gmra.mxu1 %vm594_vm0, %v5002_v48 }
  0xb6   :  { %1890 = vmatprep.subr.mxu0 %v558_v17  ;;  %1961 = vmatprep.subr.mxu1 %v560_v18  ;;  %v186_v17 = vld [vmem:[%s6040_s1 + $0x548] sm:$0xff]  ;;  %v5303_v18 = vshrl.u32 %v590_v10, 7 }
  0xb7   :  { %1891 = vmatpush1.msra.mxu0 %v557_v19  ;;  %1962 = vmatpush1.msra.mxu1 %v559_v20  ;;  %v183_v19 = vld [vmem:[%s6040_s1 + $0x530] sm:$0xff]  ;;  %v185_v20 = vld [vmem:[%s6040_s1 + $0x540] sm:$0xff] }
  0xb8   :  { %1892 = vmatprep.subr.mxu0 %v495_v21  ;;  %1963 = vmatprep.subr.mxu1 %v497_v22  ;;  %v121_v21 = vld [vmem:[%s6040_s1 + $0x340] sm:$0xff]  ;;  %v123_v22 = vld [vmem:[%s6040_s1 + $0x350] sm:$0xff] }
  0xb9   :  { %1893 = vmatpush1.msra.mxu0 %v494_v23  ;;  %1964 = vmatpush1.msra.mxu1 %v496_v24  ;;  %v120_v23 = vld [vmem:[%s6040_s1 + $0x338] sm:$0xff]  ;;  %v122_v24 = vld [vmem:[%s6040_s1 + $0x348] sm:$0xff] }
  0xba   :  { %1894 = vmatprep.subr.mxu0 %v432_v25  ;;  %1965 = vmatprep.subr.mxu1 %v434_v26  ;;  %v58_v26 = vld [vmem:[%s6040_s1 + $0x148] sm:$0xff] }
  0xbb   :  { %1895 = vmatpush1.msra.mxu0 %v431_v27  ;;  %1966 = vmatpush1.msra.mxu1 %v433_v28  ;;  %v60_v27 = vld [vmem:[%s6040_s1 + $0x158] sm:$0xff]  ;;  %v592_v28 = vsub.s32 0, %v5303_v18 }
  0xbc   :  { %1896 = vmatprep.subr.mxu0 %v369_v29  ;;  %1967 = vmatprep.subr.mxu1 %v371_v30  ;;  %v57_v30 = vld [vmem:[%s6040_s1 + $0x140] sm:$0xff] }
  0xbd   :  { %1897 = vmatpush1.msra.mxu0 %v368_v31  ;;  %1968 = vmatpush1.msra.mxu1 %v370_v32  ;;  %v59_v31 = vld [vmem:[%s6040_s1 + $0x150] sm:$0xff] }
  0xbe   :  { %1898 = vmatprep.subr.mxu0 %v306_v33  ;;  %1969 = vmatprep.subr.mxu1 %v308_v34  ;;  %v566_v34 = vld [vmem:[%s6040_s1 + $0x1128] sm:$0xff] }
  0xbf   :  { %1899 = vmatpush1.msra.mxu0 %v305_v35  ;;  %1970 = vmatpush1.msra.mxu1 %v307_v36  ;;  %v568_v35 = vld [vmem:[%s6040_s1 + $0x1138] sm:$0xff] }
  0xc0   :  { %1900 = vmatprep.subr.mxu0 %v243_v37  ;;  %1971 = vmatprep.subr.mxu1 %v245_v39  ;;  %v565_v39 = vld [vmem:[%s6040_s1 + $0x1120] sm:$0xff] }
  0xc1   :  { %1901 = vmatpush1.msra.mxu0 %v242_v40  ;;  %1972 = vmatpush1.msra.mxu1 %v244_v41  ;;  %v567_v40 = vld [vmem:[%s6040_s1 + $0x1130] sm:$0xff] }
  0xc2   :  { %1902 = vmatprep.subr.mxu0 %v180_v42  ;;  %1973 = vmatprep.subr.mxu1 %v182_v43  ;;  %v503_v41 = vld [vmem:[%s6040_s1 + $0xf30] sm:$0xff]  ;;  %v505_v42 = vld [vmem:[%s6040_s1 + $0xf40] sm:$0xff] }
  0xc3   :  { %1903 = vmatpush1.msra.mxu0 %v179_v44  ;;  %1974 = vmatpush1.msra.mxu1 %v181_v45 }
  0xc4   :  { %1904 = vmatprep.subr.mxu0 %v117_v46  ;;  %1975 = vmatprep.subr.mxu1 %v119_v47  ;;  %v502_v46 = vld [vmem:[%s6040_s1 + $0xf28] sm:$0xff]  ;;  %v504_v47 = vld [vmem:[%s6040_s1 + $0xf38] sm:$0xff] }
  0xc5   :  { %1905 = vmatpush1.msra.mxu0 %v116_v49  ;;  %1976 = vmatpush1.msra.mxu1 %v118_v50  ;;  %v440_v50 = vld [vmem:[%s6040_s1 + $0xd38] sm:$0xff] }
  0xc6   :  { %1906 = vmatprep.subr.mxu0 %v54_v51  ;;  %1977 = vmatprep.subr.mxu1 %v56_v52  ;;  %v442_v51 = vld [vmem:[%s6040_s1 + $0xd48] sm:$0xff]  ;;  %v439_v52 = vld [vmem:[%s6040_s1 + $0xd30] sm:$0xff] }
  0xc7   :  { %1907 = vmatpush1.msra.mxu0 %v53_v53  ;;  %1940 = vmatprep.mubr.f32.mxu0 %v4047_v3 }
  0xc8   :  { %1978 = vmatpush1.msra.mxu1 %v55_v54  ;;  %2011 = vmatprep.mubr.f32.mxu1 %v4047_v3 }
  0xc9   :  { %3743 = vmatmul.mubr.msk.f32.vlgmr.msra.gmra.mxu0 %vm594_vm0, %v5002_v48  ;;  %3744 = vmatmul.mubr.msk.f32.vlgmr.msra.gmra.mxu1 %vm594_vm0, %v5002_v48 }
  0xca   :  { %2032 = vmatprep.subr.mxu0 %v562_v55  ;;  %2103 = vmatprep.subr.mxu1 %v564_v56  ;;  %v441_v56 = vld [vmem:[%s6040_s1 + $0xd40] sm:$0xff] }
  0xcb   :  { %2033 = vmatpush1.msra.mxu0 %v561_v57  ;;  %2104 = vmatpush1.msra.mxu1 %v563_v58  ;;  %v377_v57 = vld [vmem:[%s6040_s1 + $0xb40] sm:$0xff]  ;;  %v379_v58 = vld [vmem:[%s6040_s1 + $0xb50] sm:$0xff] }
  0xcc   :  { %2034 = vmatprep.subr.mxu0 %v499_v59  ;;  %2105 = vmatprep.subr.mxu1 %v501_v60 }
  0xcd   :  { %2035 = vmatpush1.msra.mxu0 %v498_v61  ;;  %2106 = vmatpush1.msra.mxu1 %v500_v62 }
  0xce   :  { %2036 = vmatprep.subr.mxu0 %v436_v63  ;;  %2107 = vmatprep.subr.mxu1 %v438_v0  ;;  %v376_v63 = vld [vmem:[%s6040_s1 + $0xb38] sm:$0xff]  ;;  %v378_v0 = vld [vmem:[%s6040_s1 + $0xb48] sm:$0xff] }
  0xcf   :  { %2037 = vmatpush1.msra.mxu0 %v435_v1  ;;  %2108 = vmatpush1.msra.mxu1 %v437_v2  ;;  %v314_v2 = vld [vmem:[%s6040_s1 + $0x948] sm:$0xff] }
  0xd0   :  { %2038 = vmatprep.subr.mxu0 %v373_v4  ;;  %2109 = vmatprep.subr.mxu1 %v375_v5  ;;  %v316_v4 = vld [vmem:[%s6040_s1 + $0x958] sm:$0xff]  ;;  %v313_v5 = vld [vmem:[%s6040_s1 + $0x940] sm:$0xff] }
  0xd1   :  { %2039 = vmatpush1.msra.mxu0 %v372_v6  ;;  %2110 = vmatpush1.msra.mxu1 %v374_v7  ;;  %v315_v6 = vld [vmem:[%s6040_s1 + $0x950] sm:$0xff] }
  0xd2   :  { %2040 = vmatprep.subr.mxu0 %v310_v8  ;;  %2111 = vmatprep.subr.mxu1 %v312_v9  ;;  %v251_v7 = vld [vmem:[%s6040_s1 + $0x750] sm:$0xff]  ;;  %v253_v8 = vld [vmem:[%s6040_s1 + $0x760] sm:$0xff]  ;;  %v250_v9 = vld [vmem:[%s6040_s1 + $0x748] sm:$0xff] }
  0xd3   :  { %2041 = vmatpush1.msra.mxu0 %v309_v11  ;;  %2112 = vmatpush1.msra.mxu1 %v311_v12  ;;  %v252_v11 = vld [vmem:[%s6040_s1 + $0x758] sm:$0xff] }
  0xd4   :  { %2042 = vmatprep.subr.mxu0 %v247_v13  ;;  %2113 = vmatprep.subr.mxu1 %v249_v14  ;;  %v664_v25 = vpop.f32.mrf.mxu0  ;;  %v735_v29 = vpop.f32.mrf.mxu1  ;;  %v188_v12 = vld [vmem:[%s6040_s1 + $0x558] sm:$0xff]  ;;  %v190_v13 = vld [vmem:[%s6040_s1 + $0x568] sm:$0xff]  ;;  %v187_v14 = vld [vmem:[%s6040_s1 + $0x550] sm:$0xff] }
  0xd5   :  { %2043 = vmatpush1.msra.mxu0 %v246_v15  ;;  %2114 = vmatpush1.msra.mxu1 %v248_v38  ;;  %v189_v15 = vld [vmem:[%s6040_s1 + $0x560] sm:$0xff] }
  0xd6   :  { %2044 = vmatprep.subr.mxu0 %v184_v16  ;;  %2115 = vmatprep.subr.mxu1 %v186_v17  ;;  %v666_v33 = vpop.f32.mrf.mxu0  ;;  %v737_v37 = vpop.f32.mrf.mxu1  ;;  %v125_v17 = vld [vmem:[%s6040_s1 + $0x360] sm:$0xff] }
  0xd7   :  { %2045 = vmatpush1.msra.mxu0 %v183_v19  ;;  %2116 = vmatpush1.msra.mxu1 %v185_v20  ;;  %v127_v19 = vld [vmem:[%s6040_s1 + $0x370] sm:$0xff] }
  0xd8   :  { %2046 = vmatprep.subr.mxu0 %v121_v21  ;;  %2117 = vmatprep.subr.mxu1 %v123_v22  ;;  %v124_v22 = vld [vmem:[%s6040_s1 + $0x358] sm:$0xff] }
  0xd9   :  { %2047 = vmatpush1.msra.mxu0 %v120_v23  ;;  %2118 = vmatpush1.msra.mxu1 %v122_v24  ;;  %v126_v23 = vld [vmem:[%s6040_s1 + $0x368] sm:$0xff] }
  0xda   :  { %2048 = vmatprep.subr.mxu0 %v58_v26  ;;  %2119 = vmatprep.subr.mxu1 %v60_v27  ;;  %v588_v32 = vpop.permute.xlu0 %587  ;;  %v62_v26 = vld [vmem:[%s6040_s1 + $0x168] sm:$0xff]  ;;  %v64_v27 = vld [vmem:[%s6040_s1 + $0x178] sm:$0xff] }
  0xdb   :  { %2049 = vmatpush1.msra.mxu0 %v57_v30  ;;  %2082 = vmatprep.mubr.f32.mxu0 %v4047_v3  ;;  %v5343_v36 = vrot.slane %v588_v32, %v592_v28  ;;  %v61_v32 = vld [vmem:[%s6040_s1 + $0x160] sm:$0xff] }
  0xdc   :  { %2120 = vmatpush1.msra.mxu1 %v59_v31  ;;  %2153 = vmatprep.mubr.f32.mxu1 %v4047_v3 }
  0xdd   :  { %3745 = vmatmul.mubr.msk.f32.vlgmr.msra.gmra.mxu0 %vm594_vm0, %v5002_v48  ;;  %3746 = vmatmul.mubr.msk.f32.vlgmr.msra.gmra.mxu1 %vm594_vm0, %v5002_v48  ;;  %v665_v43 = vadd.f32 %v664_v25, %v5343_v36  ;;  %v736_v44 = vadd.f32 %v735_v29, %v5343_v36  ;;  %v667_v45 = vadd.f32 %v666_v33, %v5343_v36  ;;  %v63_v33 = vld [vmem:[%s6040_s1 + $0x170] sm:$0xff] }
  0xde   :  { %2174 = vmatprep.subr.mxu0 %v566_v34  ;;  %2245 = vmatprep.subr.mxu1 %v568_v35  ;;  %v738_v49 = vadd.f32 %v737_v37, %v5343_v36 }
  0xdf   :  { %2175 = vmatpush1.msra.mxu0 %v565_v39  ;;  %2246 = vmatpush1.msra.mxu1 %v567_v40  ;;  %v2869_v53 = vsub.f32 0.0, %v665_v43  ;;  %v2871_v54 = vsub.f32 0.0, %v736_v44  ;;  %v2870_v55 = vsub.f32 0.0, %v667_v45  ;;  %v570_v40 = vld [vmem:[%s6040_s1 + $0x1148] sm:$0xff]  ;;  %v569_v45 = vld [vmem:[%s6040_s1 + $0x1140] sm:$0xff] }
  0xe0   :  { %2176 = vmatprep.subr.mxu0 %v503_v41  ;;  %2247 = vmatprep.subr.mxu1 %v505_v42  ;;  %v2872_v59 = vsub.f32 0.0, %v738_v49  ;;  %v572_v41 = vld [vmem:[%s6040_s1 + $0x1158] sm:$0xff]  ;;  %v507_v49 = vld [vmem:[%s6040_s1 + $0xf50] sm:$0xff] }
  0xe1   :  { %2177 = vmatpush1.msra.mxu0 %v502_v46  ;;  %2248 = vmatpush1.msra.mxu1 %v504_v47  ;;  %v2932_v60 = vmul.f32 1.442695, %v2869_v53  ;;  %v2936_v61 = vmul.f32 1.442695, %v2871_v54  ;;  %v2934_v62 = vmul.f32 1.442695, %v2870_v55 }
  0xe2   :  { %2178 = vmatprep.subr.mxu0 %v440_v50  ;;  %2249 = vmatprep.subr.mxu1 %v442_v51  ;;  %v2938_v1 = vmul.f32 1.442695, %v2872_v59  ;;  %v571_v46 = vld [vmem:[%s6040_s1 + $0x1150] sm:$0xff]  ;;  %v509_v50 = vld [vmem:[%s6040_s1 + $0xf60] sm:$0xff]  ;;  %v508_v53 = vld [vmem:[%s6040_s1 + $0xf58] sm:$0xff] }
  0xe3   :  { %2179 = vmatpush1.msra.mxu0 %v439_v52  ;;  %2250 = vmatpush1.msra.mxu1 %v441_v56  ;;  %3793 = vpow2.f32 %v2932_v60  ;;  %v506_v52 = vld [vmem:[%s6040_s1 + $0xf48] sm:$0xff]  ;;  %v444_v56 = vld [vmem:[%s6040_s1 + $0xd58] sm:$0xff]  ;;  %v443_v59 = vld [vmem:[%s6040_s1 + $0xd50] sm:$0xff] }
  0xe4   :  { %2180 = vmatprep.subr.mxu0 %v377_v57  ;;  %2251 = vmatprep.subr.mxu1 %v379_v58  ;;  %3795 = vpow2.f32 %v2936_v61  ;;  %v446_v57 = vld [vmem:[%s6040_s1 + $0xd68] sm:$0xff]  ;;  %v445_v60 = vld [vmem:[%s6040_s1 + $0xd60] sm:$0xff] }
  0xe5   :  { %2181 = vmatpush1.msra.mxu0 %v376_v63  ;;  %2252 = vmatpush1.msra.mxu1 %v378_v0  ;;  %3797 = vpow2.f32 %v2934_v62  ;;  %v381_v62 = vld [vmem:[%s6040_s1 + $0xb60] sm:$0xff]  ;;  %v383_v63 = vld [vmem:[%s6040_s1 + $0xb70] sm:$0xff] }
  0xe6   :  { %2182 = vmatprep.subr.mxu0 %v314_v2  ;;  %2253 = vmatprep.subr.mxu1 %v316_v4  ;;  %3799 = vpow2.f32 %v2938_v1  ;;  %v380_v1 = vld [vmem:[%s6040_s1 + $0xb58] sm:$0xff]  ;;  %v382_v2 = vld [vmem:[%s6040_s1 + $0xb68] sm:$0xff] }
  0xe7   :  { %2183 = vmatpush1.msra.mxu0 %v313_v5  ;;  %2254 = vmatpush1.msra.mxu1 %v315_v6  ;;  %v318_v4 = vld [vmem:[%s6040_s1 + $0x968] sm:$0xff]  ;;  %v320_v5 = vld [vmem:[%s6040_s1 + $0x978] sm:$0xff]  ;;  %v317_v6 = vld [vmem:[%s6040_s1 + $0x960] sm:$0xff] }
  0xe8   :  { %2184 = vmatprep.subr.mxu0 %v251_v7  ;;  %2255 = vmatprep.subr.mxu1 %v253_v8  ;;  %v806_v38 = vpop.f32.mrf.mxu0  ;;  %v877_v16 = vpop.f32.mrf.mxu1  ;;  %v319_v7 = vld [vmem:[%s6040_s1 + $0x970] sm:$0xff] }
  0xe9   :  { %2185 = vmatpush1.msra.mxu0 %v250_v9  ;;  %2256 = vmatpush1.msra.mxu1 %v252_v11  ;;  %v807_v20 = vadd.f32 %v806_v38, %v5343_v36  ;;  %v878_v21 = vadd.f32 %v877_v16, %v5343_v36  ;;  %v255_v8 = vld [vmem:[%s6040_s1 + $0x770] sm:$0xff]  ;;  %v257_v9 = vld [vmem:[%s6040_s1 + $0x780] sm:$0xff]  ;;  %v254_v11 = vld [vmem:[%s6040_s1 + $0x768] sm:$0xff] }
  0xea   :  { %2186 = vmatprep.subr.mxu0 %v188_v12  ;;  %2257 = vmatprep.subr.mxu1 %v190_v13  ;;  %v808_v24 = vpop.f32.mrf.mxu0  ;;  %v879_v25 = vpop.f32.mrf.mxu1  ;;  %v256_v12 = vld [vmem:[%s6040_s1 + $0x778] sm:$0xff]  ;;  %v191_v38 = vld [vmem:[%s6040_s1 + $0x570] sm:$0xff]  ;;  %v193_v16 = vld [vmem:[%s6040_s1 + $0x580] sm:$0xff] }
  0xeb   :  { %2187 = vmatpush1.msra.mxu0 %v187_v14  ;;  %2258 = vmatpush1.msra.mxu1 %v189_v15  ;;  %v2873_v28 = vsub.f32 0.0, %v807_v20  ;;  %v2875_v29 = vsub.f32 0.0, %v878_v21  ;;  %v809_v30 = vadd.f32 %v808_v24, %v5343_v36  ;;  %v880_v31 = vadd.f32 %v879_v25, %v5343_v36  ;;  %v192_v13 = vld [vmem:[%s6040_s1 + $0x578] sm:$0xff]  ;;  %v194_v14 = vld [vmem:[%s6040_s1 + $0x588] sm:$0xff] }
  0xec   :  { %2188 = vmatprep.subr.mxu0 %v125_v17  ;;  %2259 = vmatprep.subr.mxu1 %v127_v19 }
  0xed   :  { %2189 = vmatpush1.msra.mxu0 %v124_v22  ;;  %2260 = vmatpush1.msra.mxu1 %v126_v23  ;;  %v2940_v34 = vmul.f32 1.442695, %v2873_v28  ;;  %v2944_v35 = vmul.f32 1.442695, %v2875_v29  ;;  %v2874_v37 = vsub.f32 0.0, %v809_v30  ;;  %v2876_v39 = vsub.f32 0.0, %v880_v31 }
  0xee   :  { %2190 = vmatprep.subr.mxu0 %v62_v26  ;;  %2261 = vmatprep.subr.mxu1 %v64_v27  ;;  %v129_v22 = vld [vmem:[%s6040_s1 + $0x380] sm:$0xff]  ;;  %v131_v23 = vld [vmem:[%s6040_s1 + $0x390] sm:$0xff]  ;;  %v128_v26 = vld [vmem:[%s6040_s1 + $0x378] sm:$0xff] }
  0xef   :  { %2191 = vmatpush1.msra.mxu0 %v61_v32  ;;  %2224 = vmatprep.mubr.f32.mxu0 %v4047_v3  ;;  %3801 = vpow2.f32 %v2940_v34  ;;  %v2942_v42 = vmul.f32 1.442695, %v2874_v37  ;;  %v2946_v43 = vmul.f32 1.442695, %v2876_v39  ;;  %v130_v27 = vld [vmem:[%s6040_s1 + $0x388] sm:$0xff]  ;;  %v68_v31 = vld [vmem:[%s6040_s1 + $0x198] sm:$0xff] }
  0xf0   :  { %v3794_v44 = vpop.eup %3793  ;;  %2262 = vmatpush1.msra.mxu1 %v63_v33  ;;  %2295 = vmatprep.mubr.f32.mxu1 %v4047_v3  ;;  %3803 = vpow2.f32 %v2944_v35  ;;  %v66_v30 = vld [vmem:[%s6040_s1 + $0x188] sm:$0xff]  ;;  %v65_v34 = vld [vmem:[%s6040_s1 + $0x180] sm:$0xff]  ;;  %v67_v39 = vld [vmem:[%s6040_s1 + $0x190] sm:$0xff] }
  0xf1   :  { %v3796_v47 = vpop.eup %3795  ;;  %3747 = vmatmul.mubr.msk.f32.vlgmr.msra.gmra.mxu0 %vm594_vm0, %v5002_v48  ;;  %3748 = vmatmul.mubr.msk.f32.vlgmr.msra.gmra.mxu1 %vm594_vm0, %v5002_v48  ;;  %3805 = vpow2.f32 %v2942_v42  ;;  %v3058_v55 = vadd.f32 1.0, %v3794_v44  ;;  %v574_v44 = vld [vmem:[%s6040_s1 + $0x1168] sm:$0xff] }
  0xf2   :  { %v3798_v51 = vpop.eup %3797  ;;  %2316 = vmatprep.subr.mxu0 %v570_v40  ;;  %2387 = vmatprep.subr.mxu1 %v572_v41  ;;  %3807 = vpow2.f32 %v2946_v43  ;;  %v3060_v58 = vadd.f32 1.0, %v3796_v47  ;;  %v4049_v41 = vmov 1966171168  }
  0xf3   :  { %v3800_v54 = vpop.eup %3799  ;;  %2317 = vmatpush1.msra.mxu0 %v569_v45  ;;  %2388 = vmatpush1.msra.mxu1 %v571_v46  ;;  %v3059_v61 = vadd.f32 1.0, %v3798_v51  ;;  %3809 = vrcp.f32 %v3058_v55  ;;  %v3315_v42 = vunpack.c.l.s4 %v4049_v41  ;;  %v576_v45 = vld [vmem:[%s6040_s1 + $0x1178] sm:$0xff] }
  0xf4   :  { %2318 = vmatprep.subr.mxu0 %v507_v49  ;;  %2389 = vmatprep.subr.mxu1 %v509_v50  ;;  %v3061_v0 = vadd.f32 1.0, %v3800_v54  ;;  %3811 = vrcp.f32 %v3060_v58  ;;  %v573_v49 = vld [vmem:[%s6040_s1 + $0x1160] sm:$0xff]  ;;  %v575_v50 = vld [vmem:[%s6040_s1 + $0x1170] sm:$0xff]  ;;  %v510_v58 = vld [vmem:[%s6040_s1 + $0xf68] sm:$0xff] }
  0xf5   :  { %2319 = vmatpush1.msra.mxu0 %v506_v52  ;;  %2390 = vmatpush1.msra.mxu1 %v508_v53  ;;  %3813 = vrcp.f32 %v3059_v61  ;;  %v511_v53 = vld [vmem:[%s6040_s1 + $0xf70] sm:$0xff]  ;;  %v513_v54 = vld [vmem:[%s6040_s1 + $0xf80] sm:$0xff]  ;;  %v448_v61 = vld [vmem:[%s6040_s1 + $0xd78] sm:$0xff] }
  0xf6   :  { %2320 = vmatprep.subr.mxu0 %v444_v56  ;;  %2391 = vmatprep.subr.mxu1 %v446_v57  ;;  %3815 = vrcp.f32 %v3061_v0  ;;  %v3316_v57 = vunpack.c.0.s8 %v3315_v42  ;;  %v447_v0 = vld [vmem:[%s6040_s1 + $0xd70] sm:$0xff] }
  0xf7   :  { %2321 = vmatpush1.msra.mxu0 %v443_v59  ;;  %2392 = vmatpush1.msra.mxu1 %v445_v60 }
  0xf8   :  { %2322 = vmatprep.subr.mxu0 %v381_v62  ;;  %2393 = vmatprep.subr.mxu1 %v383_v63  ;;  %v450_v62 = vld [vmem:[%s6040_s1 + $0xd88] sm:$0xff] }
  0xf9   :  { %2323 = vmatpush1.msra.mxu0 %v380_v1  ;;  %2394 = vmatpush1.msra.mxu1 %v382_v2  ;;  %v449_v1 = vld [vmem:[%s6040_s1 + $0xd80] sm:$0xff] }
  0xfa   :  { %2324 = vmatprep.subr.mxu0 %v318_v4  ;;  %2395 = vmatprep.subr.mxu1 %v320_v5  ;;  %v385_v4 = vld [vmem:[%s6040_s1 + $0xb80] sm:$0xff]  ;;  %v387_v5 = vld [vmem:[%s6040_s1 + $0xb90] sm:$0xff] }
  0xfb   :  { %2325 = vmatpush1.msra.mxu0 %v317_v6  ;;  %2396 = vmatpush1.msra.mxu1 %v319_v7 }
  0xfc   :  { %v3802_v15 = vpop.eup %3801  ;;  %2326 = vmatprep.subr.mxu0 %v255_v8  ;;  %2397 = vmatprep.subr.mxu1 %v257_v9  ;;  %v948_v17 = vpop.f32.mrf.mxu0  ;;  %v5627_v8 = vsub.s32 %v3316_v57, %v5303_v18  ;;  %v324_v18 = vld [vmem:[%s6040_s1 + $0x998] sm:$0xff] }
  0xfd   :  { %v1019_v19 = vpop.f32.mrf.mxu1  ;;  %v3804_v20 = vpop.eup %3803  ;;  %2327 = vmatpush1.msra.mxu0 %v254_v11  ;;  %2398 = vmatpush1.msra.mxu1 %v256_v12  ;;  %v3062_v21 = vadd.f32 1.0, %v3802_v15  ;;  %v949_v35 = vadd.f32 %v948_v17, %v5343_v36  ;;  %v384_v11 = vld [vmem:[%s6040_s1 + $0xb78] sm:$0xff]  ;;  %v386_v12 = vld [vmem:[%s6040_s1 + $0xb88] sm:$0xff]  ;;  %v323_v17 = vld [vmem:[%s6040_s1 + $0x990] sm:$0xff] }
  0xfe   :  { %v3806_v24 = vpop.eup %3805  ;;  %v3064_v25 = vadd.f32 1.0, %v3804_v20  ;;  %2328 = vmatprep.subr.mxu0 %v192_v13  ;;  %2399 = vmatprep.subr.mxu1 %v194_v14  ;;  %v950_v32 = vpop.f32.mrf.mxu0  ;;  %v1020_v40 = vadd.f32 %v1019_v19, %v5343_v36  ;;  %v322_v14 = vld [vmem:[%s6040_s1 + $0x988] sm:$0xff]  ;;  %v259_v20 = vld [vmem:[%s6040_s1 + $0x790] sm:$0xff] }
  0xff   :  { %v3808_v28 = vpop.eup %3807  ;;  %3817 = vrcp.f32 %v3062_v21  ;;  %2329 = vmatpush1.msra.mxu0 %v191_v38  ;;  %2400 = vmatpush1.msra.mxu1 %v193_v16  ;;  %v3063_v29 = vadd.f32 1.0, %v3806_v24  ;;  %v1021_v37 = vpop.f32.mrf.mxu1  ;;  %v951_v43 = vadd.f32 %v950_v32, %v5343_v36  ;;  %v2877_v51 = vsub.f32 0.0, %v949_v35  ;;  %v321_v16 = vld [vmem:[%s6040_s1 + $0x980] sm:$0xff]  ;;  %v195_v32 = vld [vmem:[%s6040_s1 + $0x590] sm:$0xff] }
 0x100   :  { %3819 = vrcp.f32 %v3064_v25  ;;  %v3065_v33 = vadd.f32 1.0, %v3808_v28  ;;  %2330 = vmatprep.subr.mxu0 %v129_v22  ;;  %2401 = vmatprep.subr.mxu1 %v131_v23  ;;  %v1022_v46 = vadd.f32 %v1021_v37, %v5343_v36  ;;  %v3810_v47 = vpop.eup %3809  ;;  %v2879_v55 = vsub.f32 0.0, %v1020_v40  ;;  %v261_v21 = vld [vmem:[%s6040_s1 + $0x7a0] sm:$0xff]  ;;  %v258_v25 = vld [vmem:[%s6040_s1 + $0x788] sm:$0xff]  ;;  %v135_v40 = vld [vmem:[%s6040_s1 + $0x3b0] sm:$0xff] }
 0x101   :  { %3821 = vrcp.f32 %v3063_v29  ;;  %2331 = vmatpush1.msra.mxu0 %v128_v26  ;;  %2402 = vmatpush1.msra.mxu1 %v130_v27  ;;  %v3812_v52 = vpop.eup %3811  ;;  %v2878_v59 = vsub.f32 0.0, %v951_v43  ;;  %v2948_v2 = vmul.f32 1.442695, %v2877_v51  ;;  %v260_v26 = vld [vmem:[%s6040_s1 + $0x798] sm:$0xff] }
 0x102   :  { %3823 = vrcp.f32 %v3065_v33  ;;  %2332 = vmatprep.subr.mxu0 %v66_v30  ;;  %2403 = vmatprep.subr.mxu1 %v68_v31  ;;  %v3814_v56 = vpop.eup %3813  ;;  %v2880_v63 = vsub.f32 0.0, %v1022_v46  ;;  %v2952_v6 = vmul.f32 1.442695, %v2879_v55  ;;  %v196_v29 = vld [vmem:[%s6040_s1 + $0x598] sm:$0xff]  ;;  %v198_v30 = vld [vmem:[%s6040_s1 + $0x5a8] sm:$0xff]  ;;  %v197_v33 = vld [vmem:[%s6040_s1 + $0x5a0] sm:$0xff] }
 0x103   :  { %2333 = vmatpush1.msra.mxu0 %v65_v34  ;;  %2366 = vmatprep.mubr.f32.mxu0 %v4047_v3  ;;  %v3816_v60 = vpop.eup %3815  ;;  %v3310_v7 = vcombine.low %v3810_v47, %v3814_v56  ;;  %v2950_v13 = vmul.f32 1.442695, %v2878_v59  ;;  %3825 = vpow2.f32 %v2948_v2  ;;  %v134_v46 = vld [vmem:[%s6040_s1 + $0x3a8] sm:$0xff]  ;;  %v72_v51 = vld [vmem:[%s6040_s1 + $0x1b8] sm:$0xff]  ;;  %v69_v56 = vld [vmem:[%s6040_s1 + $0x1a0] sm:$0xff] }
 0x104   :  { %2404 = vmatpush1.msra.mxu1 %v67_v39  ;;  %2437 = vmatprep.mubr.f32.mxu1 %v4047_v3  ;;  %v3311_v9 = vcombine.low %v3812_v52, %v3816_v60  ;;  %v2954_v15 = vmul.f32 1.442695, %v2880_v63  ;;  %3827 = vpow2.f32 %v2952_v6  ;;  %v133_v39 = vld [vmem:[%s6040_s1 + $0x3a0] sm:$0xff]  ;;  %v579_v6 = vld [vmem:[%s6040_s1 + $0x1190] sm:$0xff] }
 0x105   :  { %3749 = vmatmul.mubr.msk.f32.vlgmr.msra.gmra.mxu0 %vm594_vm0, %v5002_v48  ;;  %3750 = vmatmul.mubr.msk.f32.vlgmr.msra.gmra.mxu1 %vm594_vm0, %v5002_v48  ;;  %v512_v48 = vld [vmem:[%s6040_s1 + $0xf78] sm:$0xff]  ;;  %v3320_v23 = vrot.slane %v3310_v7, %v5627_v8  ;;  %3829 = vpow2.f32 %v2950_v13  ;;  %v517_v13 = vld [vmem:[%s6040_s1 + $0xfa0] sm:$0xff] }
 0x106   :  { %2458 = vmatprep.subr.mxu0 %v574_v44  ;;  %2529 = vmatprep.subr.mxu1 %v576_v45  ;;  %v3327_v24 = vrot.slane %v3311_v9, %v5627_v8  ;;  %3831 = vpow2.f32 %v2954_v15  ;;  %v132_v45 = vld [vmem:[%s6040_s1 + $0x398] sm:$0xff] }
 0x107   :  { %2459 = vmatpush1.msra.mxu0 %v573_v49  ;;  %2530 = vmatpush1.msra.mxu1 %v575_v50  ;;  %v70_v50 = vld [vmem:[%s6040_s1 + $0x1a8] sm:$0xff]  ;;  %v516_v15 = vld [vmem:[%s6040_s1 + $0xf98] sm:$0xff] }
 0x108   :  { %2460 = vmatprep.subr.mxu0 %v511_v53  ;;  %2531 = vmatprep.subr.mxu1 %v513_v54  ;;  %v3342_v43 = vcombine.low %v3320_v23, %v3327_v24  ;;  %v389_v24 = vld [vmem:[%s6040_s1 + $0xba0] sm:$0xff] }
 0x109   :  { %2461 = vmatpush1.msra.mxu0 %v510_v58  ;;  %2532 = vmatpush1.msra.mxu1 %v512_v48  ;;  %v71_v58 = vld [vmem:[%s6040_s1 + $0x1b0] sm:$0xff] }
 0x10a   :  { %2462 = vmatprep.subr.mxu0 %v448_v61  ;;  %2533 = vmatprep.subr.mxu1 %v450_v62  ;;  %v3350_v61 = vrot.slane %v3342_v43, %v5627_v8  ;;  %v201_v43 = vld [vmem:[%s6040_s1 + $0x5c0] sm:$0xff] }
 0x10b   :  { %2463 = vmatpush1.msra.mxu0 %v447_v0  ;;  %2534 = vmatpush1.msra.mxu1 %v449_v1  ;;  %v578_v0 = vld [vmem:[%s6040_s1 + $0x1188] sm:$0xff]  ;;  %v580_v1 = vld [vmem:[%s6040_s1 + $0x1198] sm:$0xff] }
 0x10c   :  { %v3818_v38 = vpop.eup %3817  ;;  %2464 = vmatprep.subr.mxu0 %v385_v4  ;;  %2535 = vmatprep.subr.mxu1 %v387_v5  ;;  %v577_v5 = vld [vmem:[%s6040_s1 + $0x1180] sm:$0xff] }
 0x10d   :  { %v3820_v19 = vpop.eup %3819  ;;  %2465 = vmatpush1.msra.mxu0 %v384_v11  ;;  %2536 = vmatpush1.msra.mxu1 %v386_v12  ;;  %v5722_v11 = vld [vmem:[%s6042_s0] sm:$0x1]  ;;  %v515_v12 = vld [vmem:[%s6040_s1 + $0xf90] sm:$0xff] }
 0x10e   :  { %v3822_v22 = vpop.eup %3821  ;;  %2466 = vmatprep.subr.mxu0 %v322_v14  ;;  %2537 = vmatprep.subr.mxu1 %v324_v18  ;;  %v514_v18 = vld [vmem:[%s6040_s1 + $0xf88] sm:$0xff] }
 0x10f   :  { %v3824_v27 = vpop.eup %3823  ;;  %v3312_v28 = vcombine.low %v3818_v38, %v3822_v22  ;;  %2467 = vmatpush1.msra.mxu0 %v321_v16  ;;  %2538 = vmatpush1.msra.mxu1 %v323_v17  ;;  %v452_v16 = vld [vmem:[%s6040_s1 + $0xd98] sm:$0xff]  ;;  %v454_v17 = vld [vmem:[%s6040_s1 + $0xda8] sm:$0xff]  ;;  %v453_v22 = vld [vmem:[%s6040_s1 + $0xda0] sm:$0xff] }
 0x110   :  { %v3313_v31 = vcombine.low %v3820_v19, %v3824_v27  ;;  %2468 = vmatprep.subr.mxu0 %v259_v20  ;;  %2539 = vmatprep.subr.mxu1 %v261_v21  ;;  %v1090_v34 = vpop.f32.mrf.mxu0  ;;  %v1161_v35 = vpop.f32.mrf.mxu1  ;;  %v451_v21 = vld [vmem:[%s6040_s1 + $0xd90] sm:$0xff]  ;;  %v388_v27 = vld [vmem:[%s6040_s1 + $0xb98] sm:$0xff] }
 0x111   :  { %v3334_v37 = vrot.slane %v3312_v28, %v5627_v8  ;;  %2469 = vmatpush1.msra.mxu0 %v258_v25  ;;  %2540 = vmatpush1.msra.mxu1 %v260_v26  ;;  %v1091_v41 = vadd.f32 %v1090_v34, %v5343_v36  ;;  %v1162_v42 = vadd.f32 %v1161_v35, %v5343_v36  ;;  %v3826_v9 = vpop.eup %3825  ;;  %v391_v25 = vld [vmem:[%s6040_s1 + $0xbb0] sm:$0xff]  ;;  %v390_v28 = vld [vmem:[%s6040_s1 + $0xba8] sm:$0xff]  ;;  %v265_v35 = vld [vmem:[%s6040_s1 + $0x7c0] sm:$0xff] }
 0x112   :  { %v3341_v44 = vrot.slane %v3313_v31, %v5627_v8  ;;  %2470 = vmatprep.subr.mxu0 %v196_v29  ;;  %2541 = vmatprep.subr.mxu1 %v198_v30  ;;  %v1092_v47 = vpop.f32.mrf.mxu0  ;;  %v1163_v49 = vpop.f32.mrf.mxu1  ;;  %v3066_v20 = vadd.f32 1.0, %v3826_v9  ;;  %v326_v30 = vld [vmem:[%s6040_s1 + $0x9a8] sm:$0xff]  ;;  %v328_v31 = vld [vmem:[%s6040_s1 + $0x9b8] sm:$0xff]  ;;  %v263_v34 = vld [vmem:[%s6040_s1 + $0x7b0] sm:$0xff] }
 0x113   :  { %2471 = vmatpush1.msra.mxu0 %v195_v32  ;;  %2542 = vmatpush1.msra.mxu1 %v197_v33  ;;  %v2881_v52 = vsub.f32 0.0, %v1091_v41  ;;  %v2883_v53 = vsub.f32 0.0, %v1162_v42  ;;  %v1093_v54 = vadd.f32 %v1092_v47, %v5343_v36  ;;  %v1164_v57 = vadd.f32 %v1163_v49, %v5343_v36  ;;  %v3828_v14 = vpop.eup %3827  ;;  %v325_v32 = vld [vmem:[%s6040_s1 + $0x9a0] sm:$0xff]  ;;  %v327_v33 = vld [vmem:[%s6040_s1 + $0x9b0] sm:$0xff]  ;;  %v202_v41 = vld [vmem:[%s6040_s1 + $0x5c8] sm:$0xff] }
 0x114   :  { %v3343_v55 = vcombine.low %v3334_v37, %v3341_v44  ;;  %2472 = vmatprep.subr.mxu0 %v133_v39  ;;  %2543 = vmatprep.subr.mxu1 %v135_v40  ;;  %v3830_v38 = vpop.eup %3829  ;;  %v3068_v23 = vadd.f32 1.0, %v3828_v14  ;;  %v262_v37 = vld [vmem:[%s6040_s1 + $0x7a8] sm:$0xff]  ;;  %v264_v39 = vld [vmem:[%s6040_s1 + $0x7b8] sm:$0xff]  ;;  %v199_v42 = vld [vmem:[%s6040_s1 + $0x5b0] sm:$0xff] }
 0x115   :  { %2473 = vmatpush1.msra.mxu0 %v132_v45  ;;  %2544 = vmatpush1.msra.mxu1 %v134_v46  ;;  %v2956_v48 = vmul.f32 1.442695, %v2881_v52  ;;  %v2960_v59 = vmul.f32 1.442695, %v2883_v53  ;;  %v2882_v60 = vsub.f32 0.0, %v1093_v54  ;;  %v2884_v63 = vsub.f32 0.0, %v1164_v57  ;;  %v3832_v19 = vpop.eup %3831 }
 0x116   :  { %v3357_v62 = vrot.slane %v3343_v55, %v5627_v8  ;;  %2474 = vmatprep.subr.mxu0 %v70_v50  ;;  %2545 = vmatprep.subr.mxu1 %v72_v51  ;;  %v3067_v26 = vadd.f32 1.0, %v3830_v38  ;;  %v3069_v29 = vadd.f32 1.0, %v3832_v19  ;;  %v200_v40 = vld [vmem:[%s6040_s1 + $0x5b8] sm:$0xff]  ;;  %v137_v45 = vld [vmem:[%s6040_s1 + $0x3c0] sm:$0xff]  ;;  %v139_v46 = vld [vmem:[%s6040_s1 + $0x3d0] sm:$0xff] }
 0x117   :  { %2475 = vmatpush1.msra.mxu0 %v69_v56  ;;  %2508 = vmatprep.mubr.f32.mxu0 %v4047_v3  ;;  %v2958_v2 = vmul.f32 1.442695, %v2882_v60  ;;  %3833 = vpow2.f32 %v2956_v48  ;;  %v2962_v7 = vmul.f32 1.442695, %v2884_v63  ;;  %v136_v52 = vld [vmem:[%s6040_s1 + $0x3b8] sm:$0xff]  ;;  %v138_v53 = vld [vmem:[%s6040_s1 + $0x3c8] sm:$0xff] }
 0x118   :  { %v3358_v4 = vcombine.low %v3350_v61, %v3357_v62  ;;  %2546 = vmatpush1.msra.mxu1 %v71_v58  ;;  %2579 = vmatprep.mubr.f32.mxu1 %v4047_v3  ;;  %3835 = vpow2.f32 %v2960_v59  ;;  %v74_v56 = vld [vmem:[%s6040_s1 + $0x1c8] sm:$0xff]  ;;  %v76_v57 = vld [vmem:[%s6040_s1 + $0x1d8] sm:$0xff]  ;;  %v73_v59 = vld [vmem:[%s6040_s1 + $0x1c0] sm:$0xff] }
 0x119   :  { %3751 = vmatmul.mubr.msk.f32.vlgmr.msra.gmra.mxu0 %vm594_vm0, %v5722_v11  ;;  %3752 = vmatmul.mubr.msk.f32.vlgmr.msra.gmra.mxu1 %vm594_vm0, %v5722_v11  ;;  %3837 = vpow2.f32 %v2958_v2  ;;  %v75_v62 = vld [vmem:[%s6040_s1 + $0x1d0] sm:$0xff]  ;;  %v582_v2 = vld [vmem:[%s6040_s1 + $0x11a8] sm:$0xff] }
 0x11a   :  { %3709 = vst [vmem:[%s6043_s3] sm:$0xff] %v3358_v4  ;;  %2600 = vmatprep.subr.mxu0 %v578_v0  ;;  %2671 = vmatprep.subr.mxu1 %v580_v1  ;;  %3839 = vpow2.f32 %v2962_v7 }
 0x11b   :  { %2601 = vmatpush1.msra.mxu0 %v577_v5  ;;  %2672 = vmatpush1.msra.mxu1 %v579_v6  ;;  %3841 = vrcp.f32 %v3066_v20  ;;  %v581_v5 = vld [vmem:[%s6040_s1 + $0x11a0] sm:$0xff]  ;;  %v583_v6 = vld [vmem:[%s6040_s1 + $0x11b0] sm:$0xff] }
 0x11c   :  { %2602 = vmatprep.subr.mxu0 %v515_v12  ;;  %2673 = vmatprep.subr.mxu1 %v517_v13  ;;  %3843 = vrcp.f32 %v3068_v23  ;;  %v519_v12 = vld [vmem:[%s6040_s1 + $0xfb0] sm:$0xff] }
 0x11d   :  { %2603 = vmatpush1.msra.mxu0 %v514_v18  ;;  %2674 = vmatpush1.msra.mxu1 %v516_v15  ;;  %3845 = vrcp.f32 %v3067_v26  ;;  %v518_v18 = vld [vmem:[%s6040_s1 + $0xfa8] sm:$0xff]  ;;  %v520_v15 = vld [vmem:[%s6040_s1 + $0xfb8] sm:$0xff] }
 0x11e   :  { %2604 = vmatprep.subr.mxu0 %v452_v16  ;;  %2675 = vmatprep.subr.mxu1 %v454_v17  ;;  %3847 = vrcp.f32 %v3069_v29  ;;  %v456_v17 = vld [vmem:[%s6040_s1 + $0xdb8] sm:$0xff] }
 0x11f   :  { %2605 = vmatpush1.msra.mxu0 %v451_v21  ;;  %2676 = vmatpush1.msra.mxu1 %v453_v22  ;;  %v455_v21 = vld [vmem:[%s6040_s1 + $0xdb0] sm:$0xff]  ;;  %v457_v22 = vld [vmem:[%s6040_s1 + $0xdc0] sm:$0xff]  ;;  %v392_v26 = vld [vmem:[%s6040_s1 + $0xbb8] sm:$0xff] }
 0x120   :  { %2606 = vmatprep.subr.mxu0 %v389_v24  ;;  %2677 = vmatprep.subr.mxu1 %v391_v25  ;;  %v393_v24 = vld [vmem:[%s6040_s1 + $0xbc0] sm:$0xff] }
 0x121   :  { %2607 = vmatpush1.msra.mxu0 %v388_v27  ;;  %2678 = vmatpush1.msra.mxu1 %v390_v28  ;;  %v394_v27 = vld [vmem:[%s6040_s1 + $0xbc8] sm:$0xff] }
 0x122   :  { %2608 = vmatprep.subr.mxu0 %v326_v30  ;;  %2679 = vmatprep.subr.mxu1 %v328_v31  ;;  %v330_v31 = vld [vmem:[%s6040_s1 + $0x9c8] sm:$0xff] }
 0x123   :  { %2609 = vmatpush1.msra.mxu0 %v325_v32  ;;  %2680 = vmatpush1.msra.mxu1 %v327_v33  ;;  %v329_v33 = vld [vmem:[%s6040_s1 + $0x9c0] sm:$0xff] }
 0x124   :  { %2610 = vmatprep.subr.mxu0 %v263_v34  ;;  %2681 = vmatprep.subr.mxu1 %v265_v35  ;;  %v3834_v44 = vpop.eup %3833  ;;  %v331_v34 = vld [vmem:[%s6040_s1 + $0x9d0] sm:$0xff] }
 0x125   :  { %2611 = vmatpush1.msra.mxu0 %v262_v37  ;;  %2682 = vmatpush1.msra.mxu1 %v264_v39  ;;  %v1232_v47 = vpop.f32.mrf.mxu0  ;;  %v1303_v49 = vpop.f32.mrf.mxu1  ;;  %v3070_v51 = vadd.f32 1.0, %v3834_v44  ;;  %v267_v39 = vld [vmem:[%s6040_s1 + $0x7d0] sm:$0xff] }
 0x126   :  { %v3836_v50 = vpop.eup %3835  ;;  %2612 = vmatprep.subr.mxu0 %v200_v40  ;;  %2683 = vmatprep.subr.mxu1 %v202_v41  ;;  %v1233_v63 = vadd.f32 %v1232_v47, %v5343_v36  ;;  %v1304_v1 = vadd.f32 %v1303_v49, %v5343_v36  ;;  %v266_v41 = vld [vmem:[%s6040_s1 + $0x7c8] sm:$0xff] }
 0x127   :  { %v3838_v54 = vpop.eup %3837  ;;  %v3072_v55 = vadd.f32 1.0, %v3836_v50  ;;  %2613 = vmatpush1.msra.mxu0 %v199_v42  ;;  %2684 = vmatpush1.msra.mxu1 %v201_v43  ;;  %3849 = vrcp.f32 %v3070_v51  ;;  %v1234_v60 = vpop.f32.mrf.mxu0  ;;  %v268_v42 = vld [vmem:[%s6040_s1 + $0x7d8] sm:$0xff]  ;;  %v203_v50 = vld [vmem:[%s6040_s1 + $0x5d0] sm:$0xff]  ;;  %v205_v51 = vld [vmem:[%s6040_s1 + $0x5e0] sm:$0xff] }
 0x128   :  { %v3840_v58 = vpop.eup %3839  ;;  %v3071_v48 = vadd.f32 1.0, %v3838_v54  ;;  %2614 = vmatprep.subr.mxu0 %v137_v45  ;;  %2685 = vmatprep.subr.mxu1 %v139_v46  ;;  %v1305_v0 = vpop.f32.mrf.mxu1  ;;  %v1235_v4 = vadd.f32 %v1234_v60, %v5343_v36  ;;  %v2885_v13 = vsub.f32 0.0, %v1233_v63  ;;  %v2887_v38 = vsub.f32 0.0, %v1304_v1  ;;  %v204_v46 = vld [vmem:[%s6040_s1 + $0x5d8] sm:$0xff]  ;;  %v77_v1 = vld [vmem:[%s6040_s1 + $0x1e0] sm:$0xff] }
 0x129   :  { %3851 = vrcp.f32 %v3072_v55  ;;  %v3073_v61 = vadd.f32 1.0, %v3840_v58  ;;  %2615 = vmatpush1.msra.mxu0 %v136_v52  ;;  %2686 = vmatpush1.msra.mxu1 %v138_v53  ;;  %v1306_v7 = vadd.f32 %v1305_v0, %v5343_v36  ;;  %v3842_v9 = vpop.eup %3841  ;;  %v141_v53 = vld [vmem:[%s6040_s1 + $0x3e0] sm:$0xff] }
 0x12a   :  { %3853 = vrcp.f32 %v3071_v48  ;;  %2616 = vmatprep.subr.mxu0 %v74_v56  ;;  %2687 = vmatprep.subr.mxu1 %v76_v57  ;;  %v3844_v14 = vpop.eup %3843  ;;  %v2886_v19 = vsub.f32 0.0, %v1235_v4  ;;  %v2964_v25 = vmul.f32 1.442695, %v2885_v13  ;;  %v2968_v28 = vmul.f32 1.442695, %v2887_v38  ;;  %v140_v57 = vld [vmem:[%s6040_s1 + $0x3d8] sm:$0xff] }
 0x12b   :  { %3855 = vrcp.f32 %v3073_v61  ;;  %2617 = vmatpush1.msra.mxu0 %v73_v59  ;;  %2650 = vmatprep.mubr.f32.mxu0 %v4047_v3  ;;  %v3846_v16 = vpop.eup %3845  ;;  %v2888_v23 = vsub.f32 0.0, %v1306_v7  ;;  %v78_v61 = vld [vmem:[%s6040_s1 + $0x1e8] sm:$0xff]  ;;  %v79_v7 = vld [vmem:[%s6040_s1 + $0x1f0] sm:$0xff] }
 0x12c   :  { %2688 = vmatpush1.msra.mxu1 %v75_v62  ;;  %2721 = vmatprep.mubr.f32.mxu1 %v4047_v3  ;;  %v3848_v20 = vpop.eup %3847  ;;  %v3359_v29 = vcombine.low %v3842_v9, %v3846_v16  ;;  %v2966_v32 = vmul.f32 1.442695, %v2886_v19  ;;  %3857 = vpow2.f32 %v2964_v25  ;;  %v142_v62 = vld [vmem:[%s6040_s1 + $0x3e8] sm:$0xff] }
 0x12d   :  { %3753 = vmatmul.mubr.msk.f32.vlgmr.msra.gmra.mxu0 %vm594_vm0, %v5722_v11  ;;  %3754 = vmatmul.mubr.msk.f32.vlgmr.msra.gmra.mxu1 %vm594_vm0, %v5722_v11  ;;  %v3360_v30 = vcombine.low %v3844_v14, %v3848_v20  ;;  %v2970_v35 = vmul.f32 1.442695, %v2888_v23  ;;  %3859 = vpow2.f32 %v2968_v28 }
 0x12e   :  { %2742 = vmatprep.subr.mxu0 %v582_v2  ;;  %3767 = vmatprep.subr.mxu1 %v4047_v3  ;;  %v3369_v44 = vrot.slane %v3359_v29, %v5627_v8  ;;  %3861 = vpow2.f32 %v2966_v32 }
 0x12f   :  { %2743 = vmatpush1.msra.mxu0 %v581_v5  ;;  %3768 = vmatpush3.msra.mxu1 %v583_v6  ;;  %v3376_v45 = vrot.slane %v3360_v30, %v5627_v8  ;;  %3863 = vpow2.f32 %v2970_v35 }
 0x130   :  { %2744 = vmatprep.subr.mxu0 %v519_v12  ;;  %3769 = vmatprep.subr.mxu1 %v4047_v3 }
 0x131   :  { %2745 = vmatpush1.msra.mxu0 %v518_v18  ;;  %3770 = vmatpush3.msra.mxu1 %v520_v15  ;;  %v3391_v59 = vcombine.low %v3369_v44, %v3376_v45 }
 0x132   :  { %2746 = vmatprep.subr.mxu0 %v456_v17  ;;  %3771 = vmatprep.subr.mxu1 %v4047_v3 }
 0x133   :  { %2747 = vmatpush1.msra.mxu0 %v455_v21  ;;  %3772 = vmatpush3.msra.mxu1 %v457_v22  ;;  %v3399_v18 = vrot.slane %v3391_v59, %v5627_v8 }
 0x134   :  { %2748 = vmatprep.subr.mxu0 %v393_v24  ;;  %3773 = vmatprep.subr.mxu1 %v4047_v3  ;;  %v3850_v37 = vpop.eup %3849 }
 0x135   :  { %2749 = vmatpush1.msra.mxu0 %v392_v26  ;;  %3774 = vmatpush3.msra.mxu1 %v394_v27 }
 0x136   :  { %v3852_v40 = vpop.eup %3851  ;;  %2750 = vmatprep.subr.mxu0 %v330_v31  ;;  %3775 = vmatprep.subr.mxu1 %v4047_v3 }
 0x137   :  { %v3854_v43 = vpop.eup %3853  ;;  %2751 = vmatpush1.msra.mxu0 %v329_v33  ;;  %3776 = vmatpush3.msra.mxu1 %v331_v34 }
 0x138   :  { %v3856_v47 = vpop.eup %3855  ;;  %v3361_v49 = vcombine.low %v3850_v37, %v3854_v43  ;;  %2752 = vmatprep.subr.mxu0 %v267_v39  ;;  %3777 = vmatprep.subr.mxu1 %v4047_v3 }
 0x139   :  { %v3362_v52 = vcombine.low %v3852_v40, %v3856_v47  ;;  %2753 = vmatpush1.msra.mxu0 %v266_v41  ;;  %3778 = vmatpush3.msra.mxu1 %v268_v42  ;;  %v1374_v54 = vpop.f32.mrf.mxu0  ;;  %v1445_v55 = vpop.f32.mrf.mxu1 }
 0x13a   :  { %v3383_v56 = vrot.slane %v3361_v49, %v5627_v8  ;;  %2754 = vmatprep.subr.mxu0 %v204_v46  ;;  %3779 = vmatprep.subr.mxu1 %v4047_v3  ;;  %v1375_v58 = vadd.f32 %v1374_v54, %v5343_v36  ;;  %v1446_v48 = vadd.f32 %v1445_v55, %v5343_v36  ;;  %v3858_v20 = vpop.eup %3857 }
 0x13b   :  { %v3390_v60 = vrot.slane %v3362_v52, %v5627_v8  ;;  %2755 = vmatpush1.msra.mxu0 %v203_v50  ;;  %3780 = vmatpush3.msra.mxu1 %v205_v51  ;;  %v1376_v63 = vpop.f32.mrf.mxu0  ;;  %v1447_v0 = vpop.f32.mrf.mxu1  ;;  %v3074_v24 = vadd.f32 1.0, %v3858_v20 }
 0x13c   :  { %2756 = vmatprep.subr.mxu0 %v141_v53  ;;  %3781 = vmatprep.subr.mxu1 %v4047_v3  ;;  %v2889_v2 = vsub.f32 0.0, %v1375_v58  ;;  %v2891_v4 = vsub.f32 0.0, %v1446_v48  ;;  %v1377_v5 = vadd.f32 %v1376_v63, %v5343_v36  ;;  %v1448_v9 = vadd.f32 %v1447_v0, %v5343_v36  ;;  %v3860_v21 = vpop.eup %3859 }
 0x13d   :  { %v3392_v6 = vcombine.low %v3383_v56, %v3390_v60  ;;  %2757 = vmatpush1.msra.mxu0 %v140_v57  ;;  %2792 = vmatprep.mubr.f32.mxu0 %v4047_v3  ;;  %v3862_v22 = vpop.eup %3861  ;;  %v3076_v25 = vadd.f32 1.0, %v3860_v21 }
 0x13e   :  { %2758 = vmatprep.subr.mxu0 %v78_v61  ;;  %3782 = vmatpush3.msra.mxu1 %v142_v62  ;;  %v2972_v12 = vmul.f32 1.442695, %v2889_v2  ;;  %v2976_v13 = vmul.f32 1.442695, %v2891_v4  ;;  %v2890_v14 = vsub.f32 0.0, %v1377_v5  ;;  %v2892_v38 = vsub.f32 0.0, %v1448_v9  ;;  %v3864_v23 = vpop.eup %3863 }
 0x13f   :  { %v3406_v15 = vrot.slane %v3392_v6, %v5627_v8  ;;  %2759 = vmatpush1.msra.mxu0 %v77_v1  ;;  %3783 = vmatprep.subr.mxu1 %v4047_v3  ;;  %v3075_v26 = vadd.f32 1.0, %v3862_v22 }
 0x140   :  { %3755 = vmatmul.mubr.msk.f32.vlgmr.msra.gmra.mxu0 %vm594_vm0, %v5722_v11  ;;  %3784 = vmatpush3.msra.mxu1 %v79_v7  ;;  %v2974_v16 = vmul.f32 1.442695, %v2890_v14  ;;  %3865 = vpow2.f32 %v2972_v12  ;;  %v2978_v19 = vmul.f32 1.442695, %v2892_v38 }
 0x141   :  { %v3407_v17 = vcombine.low %v3399_v18, %v3406_v15  ;;  %3785 = vmatprep.mubr.msk.f32.mxu1 %vm4050_vm1, %v4047_v3  ;;  %3867 = vpow2.f32 %v2976_v13  ;;  %v3077_v3 = vadd.f32 1.0, %v3864_v23 }
 0x142   :  { %3786 = vmatmul.mubr.msk.f32.vlgmr.msra.gmra.mxu1 %vm594_vm0, %v5722_v11  ;;  %3869 = vpow2.f32 %v2974_v16 }
 0x143   :  { %3710 = vst [vmem:[%s6043_s3 + $0x8] sm:$0xff] %v3407_v17  ;;  %3871 = vpow2.f32 %v2978_v19 }
 0x144   :  { %3873 = vrcp.f32 %v3074_v24 }
 0x145   :  { %3875 = vrcp.f32 %v3076_v25 }
 0x146   :  { %3877 = vrcp.f32 %v3075_v26 }
 0x147   :  { %3879 = vrcp.f32 %v3077_v3 }
 0x14d   :  { %v1516_v27 = vpop.f32.mrf.mxu0  ;;  %v1587_v11 = vpop.f32.mrf.mxu1 }
 0x14e   :  { %v3866_v28 = vpop.eup %3865  ;;  %v1517_v37 = vadd.f32 %v1516_v27, %v5343_v36  ;;  %v1588_v41 = vadd.f32 %v1587_v11, %v5343_v36 }
 0x14f   :  { %v3868_v29 = vpop.eup %3867  ;;  %v3078_v30 = vadd.f32 1.0, %v3866_v28  ;;  %v1518_v33 = vpop.f32.mrf.mxu0 }
 0x150   :  { %v3870_v31 = vpop.eup %3869  ;;  %v3080_v32 = vadd.f32 1.0, %v3868_v29  ;;  %v1589_v39 = vpop.f32.mrf.mxu1  ;;  %v1519_v42 = vadd.f32 %v1518_v33, %v5343_v36  ;;  %v2893_v44 = vsub.f32 0.0, %v1517_v37  ;;  %v2895_v46 = vsub.f32 0.0, %v1588_v41 }
 0x151   :  { %v3872_v34 = vpop.eup %3871  ;;  %3881 = vrcp.f32 %v3078_v30  ;;  %v3079_v35 = vadd.f32 1.0, %v3870_v31  ;;  %v1590_v43 = vadd.f32 %v1589_v39, %v5343_v36 }
 0x152   :  { %3883 = vrcp.f32 %v3080_v32  ;;  %v3081_v40 = vadd.f32 1.0, %v3872_v34  ;;  %v3874_v45 = vpop.eup %3873  ;;  %v2894_v49 = vsub.f32 0.0, %v1519_v42  ;;  %v2980_v53 = vmul.f32 1.442695, %v2893_v44 }
 0x153   :  { %3885 = vrcp.f32 %v3079_v35  ;;  %v3876_v47 = vpop.eup %3875  ;;  %v2896_v51 = vsub.f32 0.0, %v1590_v43  ;;  %v2984_v54 = vmul.f32 1.442695, %v2895_v46 }
 0x154   :  { %3887 = vrcp.f32 %v3081_v40  ;;  %v3878_v50 = vpop.eup %3877  ;;  %v2982_v55 = vmul.f32 1.442695, %v2894_v49 }
 0x155   :  { %v3880_v52 = vpop.eup %3879  ;;  %v3408_v56 = vcombine.low %v3874_v45, %v3878_v50  ;;  %v2986_v58 = vmul.f32 1.442695, %v2896_v51  ;;  %3889 = vpow2.f32 %v2980_v53 }
 0x156   :  { %v3409_v57 = vcombine.low %v3876_v47, %v3880_v52  ;;  %3891 = vpow2.f32 %v2984_v54 }
 0x157   :  { %3893 = vpow2.f32 %v2982_v55  ;;  %v3418_v61 = vrot.slane %v3408_v56, %v5627_v8 }
 0x158   :  { %v3425_v62 = vrot.slane %v3409_v57, %v5627_v8  ;;  %3895 = vpow2.f32 %v2986_v58 }
 0x15a   :  { %v3440_v13 = vcombine.low %v3418_v61, %v3425_v62 }
 0x15c   :  { %v3448_v23 = vrot.slane %v3440_v13, %v5627_v8 }
 0x15e   :  { %v3882_v48 = vpop.eup %3881 }
 0x15f   :  { %v3884_v59 = vpop.eup %3883 }
 0x160   :  { %v3886_v60 = vpop.eup %3885 }
 0x161   :  { %v3888_v63 = vpop.eup %3887  ;;  %v3410_v0 = vcombine.low %v3882_v48, %v3886_v60  ;;  %v1658_v1 = vpop.f32.mrf.mxu0 }
 0x162   :  { %v1729_v2 = vpop.f32.mrf.mxu1  ;;  %v3411_v4 = vcombine.low %v3884_v59, %v3888_v63  ;;  %v1659_v5 = vadd.f32 %v1658_v1, %v5343_v36  ;;  %v3890_v3 = vpop.eup %3889 }
 0x163   :  { %v1730_v6 = vadd.f32 %v1729_v2, %v5343_v36  ;;  %v3432_v7 = vrot.slane %v3410_v0, %v5627_v8  ;;  %v1660_v9 = vpop.f32.mrf.mxu0  ;;  %v3892_v11 = vpop.eup %3891  ;;  %v3082_v30 = vadd.f32 1.0, %v3890_v3 }
 0x164   :  { %v1731_v12 = vpop.f32.mrf.mxu1  ;;  %v3439_v14 = vrot.slane %v3411_v4, %v5627_v8  ;;  %v2897_v18 = vsub.f32 0.0, %v1659_v5  ;;  %v1661_v38 = vadd.f32 %v1660_v9, %v5343_v36  ;;  %v3894_v28 = vpop.eup %3893  ;;  %v3084_v31 = vadd.f32 1.0, %v3892_v11 }
 0x165   :  { %v2899_v15 = vsub.f32 0.0, %v1730_v6  ;;  %v1732_v16 = vadd.f32 %v1731_v12, %v5343_v36  ;;  %v3896_v29 = vpop.eup %3895  ;;  %v3083_v32 = vadd.f32 1.0, %v3894_v28 }
 0x166   :  { %v3441_v17 = vcombine.low %v3432_v7, %v3439_v14  ;;  %v2988_v19 = vmul.f32 1.442695, %v2897_v18  ;;  %v2898_v21 = vsub.f32 0.0, %v1661_v38  ;;  %v3085_v33 = vadd.f32 1.0, %v3896_v29 }
 0x167   :  { %v2992_v20 = vmul.f32 1.442695, %v2899_v15  ;;  %v2900_v22 = vsub.f32 0.0, %v1732_v16 }
 0x168   :  { %v3455_v24 = vrot.slane %v3441_v17, %v5627_v8  ;;  %3897 = vpow2.f32 %v2988_v19  ;;  %v2990_v25 = vmul.f32 1.442695, %v2898_v21 }
 0x169   :  { %v2994_v26 = vmul.f32 1.442695, %v2900_v22  ;;  %3899 = vpow2.f32 %v2992_v20 }
 0x16a   :  { %v3456_v27 = vcombine.low %v3448_v23, %v3455_v24  ;;  %3901 = vpow2.f32 %v2990_v25 }
 0x16b   :  { %3903 = vpow2.f32 %v2994_v26 }
 0x16c   :  { %3711 = vst [vmem:[%s6043_s3 + $0x10] sm:$0xff] %v3456_v27  ;;  %3905 = vrcp.f32 %v3082_v30 }
 0x16d   :  { %3907 = vrcp.f32 %v3084_v31 }
 0x16e   :  { %3909 = vrcp.f32 %v3083_v32 }
 0x16f   :  { %3911 = vrcp.f32 %v3085_v33 }
 0x175   :  { %v1800_v34 = vpop.f32.mrf.mxu0  ;;  %v1871_v35 = vpop.f32.mrf.mxu1 }
 0x176   :  { %v3898_v37 = vpop.eup %3897  ;;  %v1801_v46 = vadd.f32 %v1800_v34, %v5343_v36  ;;  %v1872_v50 = vadd.f32 %v1871_v35, %v5343_v36 }
 0x177   :  { %v3900_v39 = vpop.eup %3899  ;;  %v3086_v40 = vadd.f32 1.0, %v3898_v37  ;;  %v1802_v43 = vpop.f32.mrf.mxu0 }
 0x178   :  { %v3902_v41 = vpop.eup %3901  ;;  %v3088_v42 = vadd.f32 1.0, %v3900_v39  ;;  %v1873_v47 = vpop.f32.mrf.mxu1  ;;  %v1803_v51 = vadd.f32 %v1802_v43, %v5343_v36  ;;  %v2901_v53 = vsub.f32 0.0, %v1801_v46  ;;  %v2903_v55 = vsub.f32 0.0, %v1872_v50 }
 0x179   :  { %v3904_v44 = vpop.eup %3903  ;;  %3913 = vrcp.f32 %v3086_v40  ;;  %v3087_v45 = vadd.f32 1.0, %v3902_v41  ;;  %v1874_v52 = vadd.f32 %v1873_v47, %v5343_v36 }
 0x17a   :  { %3915 = vrcp.f32 %v3088_v42  ;;  %v3089_v49 = vadd.f32 1.0, %v3904_v44  ;;  %v3906_v54 = vpop.eup %3905  ;;  %v2902_v57 = vsub.f32 0.0, %v1803_v51  ;;  %v2996_v60 = vmul.f32 1.442695, %v2901_v53 }
 0x17b   :  { %3917 = vrcp.f32 %v3087_v45  ;;  %v3908_v56 = vpop.eup %3907  ;;  %v2904_v48 = vsub.f32 0.0, %v1874_v52  ;;  %v3000_v61 = vmul.f32 1.442695, %v2903_v55 }
 0x17c   :  { %3919 = vrcp.f32 %v3089_v49  ;;  %v3910_v58 = vpop.eup %3909  ;;  %v2998_v62 = vmul.f32 1.442695, %v2902_v57 }
 0x17d   :  { %v3912_v59 = vpop.eup %3911  ;;  %v3457_v63 = vcombine.low %v3906_v54, %v3910_v58  ;;  %v3002_v1 = vmul.f32 1.442695, %v2904_v48  ;;  %3921 = vpow2.f32 %v2996_v60 }
 0x17e   :  { %v3458_v0 = vcombine.low %v3908_v56, %v3912_v59  ;;  %3923 = vpow2.f32 %v3000_v61 }
 0x17f   :  { %3925 = vpow2.f32 %v2998_v62  ;;  %v3467_v6 = vrot.slane %v3457_v63, %v5627_v8 }
 0x180   :  { %v3474_v7 = vrot.slane %v3458_v0, %v5627_v8  ;;  %3927 = vpow2.f32 %v3002_v1 }
 0x182   :  { %v3489_v20 = vcombine.low %v3467_v6, %v3474_v7 }
 0x184   :  { %v3497_v29 = vrot.slane %v3489_v20, %v5627_v8 }
 0x186   :  { %v3914_v2 = vpop.eup %3913 }
 0x187   :  { %v3916_v4 = vpop.eup %3915 }
 0x188   :  { %v3918_v5 = vpop.eup %3917 }
 0x189   :  { %v3920_v9 = vpop.eup %3919  ;;  %v3459_v12 = vcombine.low %v3914_v2, %v3918_v5  ;;  %v1942_v13 = vpop.f32.mrf.mxu0 }
 0x18a   :  { %v2013_v14 = vpop.f32.mrf.mxu1  ;;  %v3460_v18 = vcombine.low %v3916_v4, %v3920_v9  ;;  %v1943_v15 = vadd.f32 %v1942_v13, %v5343_v36  ;;  %v3922_v33 = vpop.eup %3921 }
 0x18b   :  { %v2014_v38 = vadd.f32 %v2013_v14, %v5343_v36  ;;  %v3481_v16 = vrot.slane %v3459_v12, %v5627_v8  ;;  %v1944_v17 = vpop.f32.mrf.mxu0  ;;  %v3924_v35 = vpop.eup %3923  ;;  %v3090_v40 = vadd.f32 1.0, %v3922_v33 }
 0x18c   :  { %v2015_v19 = vpop.f32.mrf.mxu1  ;;  %v3488_v21 = vrot.slane %v3460_v18, %v5627_v8  ;;  %v2905_v22 = vsub.f32 0.0, %v1943_v15  ;;  %v1945_v24 = vadd.f32 %v1944_v17, %v5343_v36  ;;  %v3926_v37 = vpop.eup %3925  ;;  %v3092_v41 = vadd.f32 1.0, %v3924_v35 }
 0x18d   :  { %v2907_v23 = vsub.f32 0.0, %v2014_v38  ;;  %v2016_v25 = vadd.f32 %v2015_v19, %v5343_v36  ;;  %v3928_v39 = vpop.eup %3927  ;;  %v3091_v42 = vadd.f32 1.0, %v3926_v37 }
 0x18e   :  { %v3490_v26 = vcombine.low %v3481_v16, %v3488_v21  ;;  %v3004_v3 = vmul.f32 1.442695, %v2905_v22  ;;  %v2906_v11 = vsub.f32 0.0, %v1945_v24  ;;  %v3093_v43 = vadd.f32 1.0, %v3928_v39 }
 0x18f   :  { %v3008_v27 = vmul.f32 1.442695, %v2907_v23  ;;  %v2908_v28 = vsub.f32 0.0, %v2016_v25 }
 0x190   :  { %v3504_v30 = vrot.slane %v3490_v26, %v5627_v8  ;;  %3929 = vpow2.f32 %v3004_v3  ;;  %v3006_v31 = vmul.f32 1.442695, %v2906_v11 }
 0x191   :  { %v3010_v32 = vmul.f32 1.442695, %v2908_v28  ;;  %3931 = vpow2.f32 %v3008_v27 }
 0x192   :  { %v3505_v34 = vcombine.low %v3497_v29, %v3504_v30  ;;  %3933 = vpow2.f32 %v3006_v31 }
 0x193   :  { %3935 = vpow2.f32 %v3010_v32 }
 0x194   :  { %3712 = vst [vmem:[%s6043_s3 + $0x18] sm:$0xff] %v3505_v34  ;;  %3937 = vrcp.f32 %v3090_v40 }
 0x195   :  { %3939 = vrcp.f32 %v3092_v41 }
 0x196   :  { %3941 = vrcp.f32 %v3091_v42 }
 0x197   :  { %3943 = vrcp.f32 %v3093_v43 }
 0x19d   :  { %v2084_v44 = vpop.f32.mrf.mxu0  ;;  %v2155_v45 = vpop.f32.mrf.mxu1 }
 0x19e   :  { %v3930_v46 = vpop.eup %3929  ;;  %v2085_v55 = vadd.f32 %v2084_v44, %v5343_v36  ;;  %v2156_v58 = vadd.f32 %v2155_v45, %v5343_v36 }
 0x19f   :  { %v3932_v47 = vpop.eup %3931  ;;  %v3094_v49 = vadd.f32 1.0, %v3930_v46  ;;  %v2086_v52 = vpop.f32.mrf.mxu0 }
 0x1a0   :  { %v3934_v50 = vpop.eup %3933  ;;  %v3096_v51 = vadd.f32 1.0, %v3932_v47  ;;  %v2157_v56 = vpop.f32.mrf.mxu1  ;;  %v2087_v48 = vadd.f32 %v2086_v52, %v5343_v36  ;;  %v2909_v60 = vsub.f32 0.0, %v2085_v55  ;;  %v2911_v62 = vsub.f32 0.0, %v2156_v58 }
 0x1a1   :  { %v3936_v53 = vpop.eup %3935  ;;  %3945 = vrcp.f32 %v3094_v49  ;;  %v3095_v54 = vadd.f32 1.0, %v3934_v50  ;;  %v2158_v59 = vadd.f32 %v2157_v56, %v5343_v36 }
 0x1a2   :  { %3947 = vrcp.f32 %v3096_v51  ;;  %v3097_v57 = vadd.f32 1.0, %v3936_v53  ;;  %v3938_v61 = vpop.eup %3937  ;;  %v2910_v0 = vsub.f32 0.0, %v2087_v48  ;;  %v3012_v5 = vmul.f32 1.442695, %v2909_v60 }
 0x1a3   :  { %3949 = vrcp.f32 %v3095_v54  ;;  %v3940_v63 = vpop.eup %3939  ;;  %v2912_v2 = vsub.f32 0.0, %v2158_v59  ;;  %v3016_v6 = vmul.f32 1.442695, %v2911_v62 }
 0x1a4   :  { %3951 = vrcp.f32 %v3097_v57  ;;  %v3942_v1 = vpop.eup %3941  ;;  %v3014_v7 = vmul.f32 1.442695, %v2910_v0 }
 0x1a5   :  { %v3944_v4 = vpop.eup %3943  ;;  %v3506_v9 = vcombine.low %v3938_v61, %v3942_v1  ;;  %v3018_v13 = vmul.f32 1.442695, %v2912_v2  ;;  %3953 = vpow2.f32 %v3012_v5 }
 0x1a6   :  { %v3507_v12 = vcombine.low %v3940_v63, %v3944_v4  ;;  %3955 = vpow2.f32 %v3016_v6 }
 0x1a7   :  { %3957 = vpow2.f32 %v3014_v7  ;;  %v3516_v38 = vrot.slane %v3506_v9, %v5627_v8 }
 0x1a8   :  { %v3523_v16 = vrot.slane %v3507_v12, %v5627_v8  ;;  %3959 = vpow2.f32 %v3018_v13 }
 0x1aa   :  { %v3538_v27 = vcombine.low %v3516_v38, %v3523_v16 }
 0x1ac   :  { %v3546_v39 = vrot.slane %v3538_v27, %v5627_v8 }
 0x1ae   :  { %v3946_v14 = vpop.eup %3945 }
 0x1af   :  { %v3948_v18 = vpop.eup %3947 }
 0x1b0   :  { %v3950_v15 = vpop.eup %3949 }
 0x1b1   :  { %v3952_v17 = vpop.eup %3951  ;;  %v3508_v19 = vcombine.low %v3946_v14, %v3950_v15  ;;  %v2226_v20 = vpop.f32.mrf.mxu0 }
 0x1b2   :  { %v2297_v21 = vpop.f32.mrf.mxu1  ;;  %v3509_v22 = vcombine.low %v3948_v18, %v3952_v17  ;;  %v2227_v23 = vadd.f32 %v2226_v20, %v5343_v36  ;;  %v3954_v43 = vpop.eup %3953 }
 0x1b3   :  { %v2298_v24 = vadd.f32 %v2297_v21, %v5343_v36  ;;  %v3530_v25 = vrot.slane %v3508_v19, %v5627_v8  ;;  %v2228_v26 = vpop.f32.mrf.mxu0  ;;  %v3956_v45 = vpop.eup %3955  ;;  %v3098_v49 = vadd.f32 1.0, %v3954_v43 }
 0x1b4   :  { %v2299_v3 = vpop.f32.mrf.mxu1  ;;  %v3537_v11 = vrot.slane %v3509_v22, %v5627_v8  ;;  %v2913_v28 = vsub.f32 0.0, %v2227_v23  ;;  %v2229_v30 = vadd.f32 %v2228_v26, %v5343_v36  ;;  %v3958_v46 = vpop.eup %3957  ;;  %v3100_v50 = vadd.f32 1.0, %v3956_v45 }
 0x1b5   :  { %v2915_v29 = vsub.f32 0.0, %v2298_v24  ;;  %v2300_v31 = vadd.f32 %v2299_v3, %v5343_v36  ;;  %v3960_v47 = vpop.eup %3959  ;;  %v3099_v51 = vadd.f32 1.0, %v3958_v46 }
 0x1b6   :  { %v3539_v32 = vcombine.low %v3530_v25, %v3537_v11  ;;  %v3020_v33 = vmul.f32 1.442695, %v2913_v28  ;;  %v2914_v35 = vsub.f32 0.0, %v2229_v30  ;;  %v3101_v52 = vadd.f32 1.0, %v3960_v47 }
 0x1b7   :  { %v3024_v34 = vmul.f32 1.442695, %v2915_v29  ;;  %v2916_v37 = vsub.f32 0.0, %v2300_v31 }
 0x1b8   :  { %v3553_v40 = vrot.slane %v3539_v32, %v5627_v8  ;;  %3961 = vpow2.f32 %v3020_v33  ;;  %v3022_v41 = vmul.f32 1.442695, %v2914_v35 }
 0x1b9   :  { %v3026_v42 = vmul.f32 1.442695, %v2916_v37  ;;  %3963 = vpow2.f32 %v3024_v34 }
 0x1ba   :  { %v3554_v44 = vcombine.low %v3546_v39, %v3553_v40  ;;  %3965 = vpow2.f32 %v3022_v41 }
 0x1bb   :  { %3967 = vpow2.f32 %v3026_v42 }
 0x1bc   :  { %3713 = vst [vmem:[%s6043_s3 + $0x20] sm:$0xff] %v3554_v44  ;;  %3969 = vrcp.f32 %v3098_v49 }
 0x1bd   :  { %3971 = vrcp.f32 %v3100_v50 }
 0x1be   :  { %3973 = vrcp.f32 %v3099_v51 }
 0x1bf   :  { %3975 = vrcp.f32 %v3101_v52 }
 0x1c5   :  { %v2368_v53 = vpop.f32.mrf.mxu0  ;;  %v2439_v54 = vpop.f32.mrf.mxu1 }
 0x1c6   :  { %v3962_v55 = vpop.eup %3961  ;;  %v2369_v62 = vadd.f32 %v2368_v53, %v5343_v36  ;;  %v2440_v1 = vadd.f32 %v2439_v54, %v5343_v36 }
 0x1c7   :  { %v3964_v56 = vpop.eup %3963  ;;  %v3102_v57 = vadd.f32 1.0, %v3962_v55  ;;  %v2370_v59 = vpop.f32.mrf.mxu0 }
 0x1c8   :  { %v3966_v58 = vpop.eup %3965  ;;  %v3104_v48 = vadd.f32 1.0, %v3964_v56  ;;  %v2441_v63 = vpop.f32.mrf.mxu1  ;;  %v2371_v2 = vadd.f32 %v2370_v59, %v5343_v36  ;;  %v2917_v5 = vsub.f32 0.0, %v2369_v62  ;;  %v2919_v7 = vsub.f32 0.0, %v2440_v1 }
 0x1c9   :  { %v3968_v60 = vpop.eup %3967  ;;  %3977 = vrcp.f32 %v3102_v57  ;;  %v3103_v61 = vadd.f32 1.0, %v3966_v58  ;;  %v2442_v4 = vadd.f32 %v2441_v63, %v5343_v36 }
 0x1ca   :  { %3979 = vrcp.f32 %v3104_v48  ;;  %v3105_v0 = vadd.f32 1.0, %v3968_v60  ;;  %v3970_v6 = vpop.eup %3969  ;;  %v2918_v12 = vsub.f32 0.0, %v2371_v2  ;;  %v3028_v15 = vmul.f32 1.442695, %v2917_v5 }
 0x1cb   :  { %3981 = vrcp.f32 %v3103_v61  ;;  %v3972_v9 = vpop.eup %3971  ;;  %v2920_v14 = vsub.f32 0.0, %v2442_v4  ;;  %v3032_v38 = vmul.f32 1.442695, %v2919_v7 }
 0x1cc   :  { %3983 = vrcp.f32 %v3105_v0  ;;  %v3974_v13 = vpop.eup %3973  ;;  %v3030_v16 = vmul.f32 1.442695, %v2918_v12 }
 0x1cd   :  { %v3976_v18 = vpop.eup %3975  ;;  %v3555_v17 = vcombine.low %v3970_v6, %v3974_v13  ;;  %v3034_v20 = vmul.f32 1.442695, %v2920_v14  ;;  %3985 = vpow2.f32 %v3028_v15 }
 0x1ce   :  { %v3556_v19 = vcombine.low %v3972_v9, %v3976_v18  ;;  %3987 = vpow2.f32 %v3032_v38 }
 0x1cf   :  { %3989 = vpow2.f32 %v3030_v16  ;;  %v3565_v24 = vrot.slane %v3555_v17, %v5627_v8 }
 0x1d0   :  { %v3572_v25 = vrot.slane %v3556_v19, %v5627_v8  ;;  %3991 = vpow2.f32 %v3034_v20 }
 0x1d2   :  { %v3587_v34 = vcombine.low %v3565_v24, %v3572_v25 }
 0x1d4   :  { %v3595_v47 = vrot.slane %v3587_v34, %v5627_v8 }
 0x1d6   :  { %v3978_v21 = vpop.eup %3977 }
 0x1d7   :  { %v3980_v22 = vpop.eup %3979 }
 0x1d8   :  { %v3982_v23 = vpop.eup %3981 }
 0x1d9   :  { %v3984_v26 = vpop.eup %3983  ;;  %v3557_v3 = vcombine.low %v3978_v21, %v3982_v23  ;;  %v2510_v27 = vpop.f32.mrf.mxu0 }
 0x1da   :  { %v2581_v11 = vpop.f32.mrf.mxu1  ;;  %v3558_v28 = vcombine.low %v3980_v22, %v3984_v26  ;;  %v2511_v29 = vadd.f32 %v2510_v27, %v5343_v36  ;;  %v3986_v52 = vpop.eup %3985 }
 0x1db   :  { %v2582_v30 = vadd.f32 %v2581_v11, %v5343_v36  ;;  %v3579_v31 = vrot.slane %v3557_v3, %v5627_v8  ;;  %v2512_v32 = vpop.f32.mrf.mxu0  ;;  %v3988_v54 = vpop.eup %3987  ;;  %v3106_v57 = vadd.f32 1.0, %v3986_v52 }
 0x1dc   :  { %v2583_v33 = vpop.f32.mrf.mxu1  ;;  %v3586_v35 = vrot.slane %v3558_v28, %v5627_v8  ;;  %v2921_v37 = vsub.f32 0.0, %v2511_v29  ;;  %v2513_v40 = vadd.f32 %v2512_v32, %v5343_v36  ;;  %v3990_v55 = vpop.eup %3989  ;;  %v3108_v58 = vadd.f32 1.0, %v3988_v54 }
 0x1dd   :  { %v2923_v39 = vsub.f32 0.0, %v2582_v30  ;;  %v2584_v41 = vadd.f32 %v2583_v33, %v5343_v36  ;;  %v3992_v56 = vpop.eup %3991  ;;  %v3107_v48 = vadd.f32 1.0, %v3990_v55 }
 0x1de   :  { %v3588_v42 = vcombine.low %v3579_v31, %v3586_v35  ;;  %v3036_v43 = vmul.f32 1.442695, %v2921_v37  ;;  %v2922_v45 = vsub.f32 0.0, %v2513_v40  ;;  %v3109_v59 = vadd.f32 1.0, %v3992_v56 }
 0x1df   :  { %v3040_v44 = vmul.f32 1.442695, %v2923_v39  ;;  %v2924_v46 = vsub.f32 0.0, %v2584_v41 }
 0x1e0   :  { %v3602_v49 = vrot.slane %v3588_v42, %v5627_v8  ;;  %3993 = vpow2.f32 %v3036_v43  ;;  %v3038_v50 = vmul.f32 1.442695, %v2922_v45 }
 0x1e1   :  { %v3042_v51 = vmul.f32 1.442695, %v2924_v46  ;;  %3995 = vpow2.f32 %v3040_v44 }
 0x1e2   :  { %v3603_v53 = vcombine.low %v3595_v47, %v3602_v49  ;;  %3997 = vpow2.f32 %v3038_v50 }
 0x1e3   :  { %3999 = vpow2.f32 %v3042_v51 }
 0x1e4   :  { %3714 = vst [vmem:[%s6043_s3 + $0x28] sm:$0xff] %v3603_v53  ;;  %4001 = vrcp.f32 %v3106_v57 }
 0x1e5   :  { %4003 = vrcp.f32 %v3108_v58 }
 0x1e6   :  { %4005 = vrcp.f32 %v3107_v48 }
 0x1e7   :  { %4007 = vrcp.f32 %v3109_v59 }
 0x1ed   :  { %v2652_v60 = vpop.f32.mrf.mxu0  ;;  %v2723_v61 = vpop.f32.mrf.mxu1 }
 0x1ee   :  { %v3994_v62 = vpop.eup %3993  ;;  %v2653_v1 = vadd.f32 %v2652_v60, %v5343_v36  ;;  %v2724_v7 = vadd.f32 %v2723_v61, %v5343_v36 }
 0x1ef   :  { %v3996_v63 = vpop.eup %3995  ;;  %v3110_v0 = vadd.f32 1.0, %v3994_v62  ;;  %v2654_v2 = vpop.f32.mrf.mxu0 }
 0x1f0   :  { %v2725_v4 = vpop.f32.mrf.mxu1  ;;  %v3998_v5 = vpop.eup %3997  ;;  %v3112_v6 = vadd.f32 1.0, %v3996_v63  ;;  %v2655_v13 = vadd.f32 %v2654_v2, %v5343_v36  ;;  %v2925_v15 = vsub.f32 0.0, %v2653_v1  ;;  %v2927_v38 = vsub.f32 0.0, %v2724_v7 }
 0x1f1   :  { %v4000_v9 = vpop.eup %3999  ;;  %4009 = vrcp.f32 %v3110_v0  ;;  %v3111_v12 = vadd.f32 1.0, %v3998_v5  ;;  %v2726_v18 = vadd.f32 %v2725_v4, %v5343_v36 }
 0x1f2   :  { %4011 = vrcp.f32 %v3112_v6  ;;  %v3113_v14 = vadd.f32 1.0, %v4000_v9  ;;  %v2926_v16 = vsub.f32 0.0, %v2655_v13  ;;  %v4002_v17 = vpop.eup %4001  ;;  %v3044_v21 = vmul.f32 1.442695, %v2925_v15 }
 0x1f3   :  { %4013 = vrcp.f32 %v3111_v12  ;;  %v2928_v19 = vsub.f32 0.0, %v2726_v18  ;;  %v4004_v20 = vpop.eup %4003  ;;  %v3048_v23 = vmul.f32 1.442695, %v2927_v38 }
 0x1f4   :  { %4015 = vrcp.f32 %v3113_v14  ;;  %v4006_v22 = vpop.eup %4005  ;;  %v3046_v25 = vmul.f32 1.442695, %v2926_v16 }
 0x1f5   :  { %v4008_v24 = vpop.eup %4007  ;;  %v3050_v26 = vmul.f32 1.442695, %v2928_v19  ;;  %4017 = vpow2.f32 %v3044_v21  ;;  %v3604_v3 = vcombine.low %v4002_v17, %v4006_v22 }
 0x1f6   :  { %v3605_v27 = vcombine.low %v4004_v20, %v4008_v24  ;;  %4019 = vpow2.f32 %v3048_v23 }
 0x1f7   :  { %4021 = vpow2.f32 %v3046_v25  ;;  %v3614_v30 = vrot.slane %v3604_v3, %v5627_v8 }
 0x1f8   :  { %4023 = vpow2.f32 %v3050_v26  ;;  %v3621_v31 = vrot.slane %v3605_v27, %v5627_v8 }
 0x1fa   :  { %v3636_v44 = vcombine.low %v3614_v30, %v3621_v31 }
 0x1fc   :  { %v3644_v55 = vrot.slane %v3636_v44, %v5627_v8 }
 0x1fe   :  { %v4010_v11 = vpop.eup %4009 }
 0x1ff   :  { %v4012_v28 = vpop.eup %4011 }
 0x200   :  { %v4014_v29 = vpop.eup %4013  ;;  %v2794_v32 = vpop.f32.mrf.mxu0 }
 0x201   :  { %v4016_v33 = vpop.eup %4015  ;;  %v3606_v34 = vcombine.low %v4010_v11, %v4014_v29  ;;  %v2795_v35 = vadd.f32 %v2794_v32, %v5343_v36 }
 0x202   :  { %v3607_v37 = vcombine.low %v4012_v28, %v4016_v33  ;;  %v2796_v39 = vpop.f32.mrf.mxu0  ;;  %v2865_v40 = vpop.f32.mrf.mxu1 }
 0x203   :  { %v3628_v41 = vrot.slane %v3606_v34, %v5627_v8  ;;  %v2929_v42 = vsub.f32 0.0, %v2795_v35  ;;  %v2797_v43 = vadd.f32 %v2796_v39, %v5343_v36  ;;  %v2866_v46 = vadd.f32 %v2865_v40, %v5343_v36  ;;  %v4018_v54 = vpop.eup %4017 }
 0x204   :  { %v3635_v45 = vrot.slane %v3607_v37, %v5627_v8  ;;  %v3787_v47 = vpop.f32.mrf.mxu1  ;;  %v4020_v58 = vpop.eup %4019  ;;  %v3114_v61 = vadd.f32 1.0, %v4018_v54 }
 0x205   :  { %v3052_v49 = vmul.f32 1.442695, %v2929_v42  ;;  %v2930_v50 = vsub.f32 0.0, %v2797_v43  ;;  %v2931_v52 = vsub.f32 0.0, %v2866_v46  ;;  %v4022_v48 = vpop.eup %4021  ;;  %v3116_v36 = vadd.f32 1.0, %v4020_v58 }
 0x206   :  { %v3637_v51 = vcombine.low %v3628_v41, %v3635_v45  ;;  %v4024_v60 = vpop.eup %4023  ;;  %v3115_v62 = vadd.f32 1.0, %v4022_v48 }
 0x207   :  { %v3054_v53 = vmul.f32 1.442695, %v2930_v50  ;;  %v3056_v57 = vmul.f32 1.442695, %v2931_v52  ;;  %4025 = vpow2.f32 %v3052_v49  ;;  %v3117_v63 = vadd.f32 1.0, %v4024_v60 }
 0x208   :  { %v3651_v56 = vrot.slane %v3637_v51, %v5627_v8 }
 0x209   :  { %4027 = vpow2.f32 %v3054_v53 }
 0x20a   :  { %v3652_v59 = vcombine.low %v3644_v55, %v3651_v56  ;;  %4029 = vpow2.f32 %v3056_v57 }
 0x20b   :  { %4031 = vrcp.f32 %v3114_v61 }
 0x20c   :  { %3715 = vst [vmem:[%s6043_s3 + $0x30] sm:$0xff] %v3652_v59  ;;  %4033 = vrcp.f32 %v3116_v36 }
 0x20d   :  { %4035 = vrcp.f32 %v3115_v62 }
 0x20e   :  { %4037 = vrcp.f32 %v3117_v63 }
 0x214   :  { %v4026_v0 = vpop.eup %4025 }
 0x215   :  { %v3118_v2 = vadd.f32 1.0, %v4026_v0 }
 0x216   :  { %v4028_v1 = vpop.eup %4027 }
 0x217   :  { %v4030_v4 = vpop.eup %4029  ;;  %v3119_v5 = vadd.f32 1.0, %v4028_v1  ;;  %4039 = vrcp.f32 %v3118_v2 }
 0x218   :  { %v3120_v6 = vadd.f32 1.0, %v4030_v4  ;;  %v4032_v7 = vpop.eup %4031 }
 0x219   :  { %4041 = vrcp.f32 %v3119_v5  ;;  %v4034_v9 = vpop.eup %4033 }
 0x21a   :  { %4043 = vrcp.f32 %v3120_v6  ;;  %v4036_v12 = vpop.eup %4035 }
 0x21b   :  { %v4038_v13 = vpop.eup %4037  ;;  %v3653_v14 = vcombine.low %v4032_v7, %v4036_v12 }
 0x21c   :  { %v3654_v18 = vcombine.low %v4034_v9, %v4038_v13 }
 0x21d   :  { %v3662_v38 = vrot.slane %v3653_v14, %v5627_v8 }
 0x21e   :  { %v3669_v16 = vrot.slane %v3654_v18, %v5627_v8 }
 0x220   :  { %v3684_v21 = vcombine.low %v3662_v38, %v3669_v16 }
 0x222   :  { %v3692_v25 = vrot.slane %v3684_v21, %v5627_v8 }
 0x224   :  { %v4040_v15 = vpop.eup %4039 }
 0x226   :  { %v4042_v17 = vpop.eup %4041 }
 0x227   :  { %v4044_v19 = vpop.eup %4043  ;;  %v3655_v20 = vcombine.low %v4040_v15, %v4042_v17 }
 0x228   :  { %v3683_v23 = vrot.slane %v4044_v19, %v5627_v8 }
 0x229   :  { %v3676_v22 = vrot.slane %v3655_v20, %v5627_v8 }
 0x22b   :  { %v3685_v24 = vcombine.low %v3676_v22, %v3683_v23 }
 0x22d   :  { %v3699_v26 = vrot.slane %v3685_v24, %v5627_v8 }
 0x22f   :  { %v3700_v3 = vcombine.low %v3692_v25, %v3699_v26 }
 0x231   :  { %3720 = vst.msk [vmem:[%s6043_s3 + $0x38] sm:$0x7f] %vm3718_vm2, %v3700_v3 }

</bundles_post_ra>
